<compile_context>
chip_gen: v7x
topology: tpu7x:2x2x1
jax: 0.10.0
libtpu: 0.0.40
codegen_flags: <defaults>
</compile_context>

<pallas_src>
import jax
import jax.numpy as jnp
from jax.experimental import pallas as pl
from jax.experimental.pallas import tpu as pltpu  # noqa: F401  (TPU backend; kept for tuning hooks)

LN_EPS = 1e-5
_LANES = 128


# ----------------------------------------------------------------------------
# In-kernel building blocks (trace-time helpers, operate on loaded f32 arrays)
# ----------------------------------------------------------------------------
def _ln_rows(h, gamma):
    """LayerNorm over the last axis (feature axis on lanes). gamma: (1, D)."""
    mu = jnp.mean(h, axis=-1, keepdims=True)
    d = h - mu
    var = jnp.mean(d * d, axis=-1, keepdims=True)
    return d * jax.lax.rsqrt(var + LN_EPS) * gamma


def _ln_cols(h, gamma):
    """LayerNorm over axis 0 (feature axis on sublanes, transposed layout). gamma: (D, 1)."""
    mu = jnp.mean(h, axis=0, keepdims=True)
    d = h - mu
    var = jnp.mean(d * d, axis=0, keepdims=True)
    return d * jax.lax.rsqrt(var + LN_EPS) * gamma


def _attn_layer_rows_stacked(xs, ns, seq, d, w):
    """Post-norm TransformerEncoderLayer with nhead == d_model (head_dim == 1, scale == 1),
    applied to `ns` samples stacked on the sublane axis: xs = (ns*seq, d).

    All matmuls are per-token, so they run once on the stacked rows; only the attention
    score/softmax/context part, which mixes tokens WITHIN a sample, is unrolled per sample.
    """
    wqkv, wo, g1, w1, w2, g2 = w
    qkv = jnp.dot(xs, wqkv, preferred_element_type=jnp.float32)       # (ns*seq, 3d)
    parts = []
    for b in range(ns):
        r0 = b * seq
        q = qkv[r0:r0 + seq, 0:d]
        k = qkv[r0:r0 + seq, d:2 * d]
        v = qkv[r0:r0 + seq, 2 * d:3 * d]
        # head_dim == 1  =>  scores[i, j, h] = q[i, h] * k[j, h]; softmax over j.
        s = q[:, None, :] * k[None, :, :]                             # (seq, seq, d)
        m = jnp.max(s, axis=1, keepdims=True)
        p = jnp.exp(s - m)
        den = jnp.sum(p, axis=1)                                      # (seq, d)
        num = jnp.sum(p * v[None, :, :], axis=1)                      # (seq, d)
        parts.append(num / den)
    ctx = jnp.concatenate(parts, axis=0)                              # (ns*seq, d)
    h = _ln_rows(xs + jnp.dot(ctx, wo, preferred_element_type=jnp.float32), g1)
    f = jnp.dot(jnp.maximum(jnp.dot(h, w1, preferred_element_type=jnp.float32), 0.0),
                w2, preferred_element_type=jnp.float32)
    return _ln_rows(h + f, g2)


def _attn_layer_cols(z, w, d):
    """Same layer computed entirely in the transposed layout z = x.T : (d, seq).

    Avoids the x.transpose(1,2) ... .transpose(1,2) round-trip of the PyTorch code: weights
    stay in PyTorch (out, in) layout and are LEFT-multiplied; LayerNorm runs over axis 0
    (the d_model axis), so no transposes are materialised anywhere.
    """
    wqkv, wo, g1, w1, w2, g2 = w
    qkv = jnp.dot(wqkv, z, preferred_element_type=jnp.float32)        # (3d, seq)
    qT, kT, vT = qkv[0:d, :], qkv[d:2 * d, :], qkv[2 * d:3 * d, :]
    s = qT[:, :, None] * kT[:, None, :]                               # (d, seq, seq)
    m = jnp.max(s, axis=2, keepdims=True)
    p = jnp.exp(s - m)
    den = jnp.sum(p, axis=2)                                          # (d, seq)
    num = jnp.sum(p * vT[:, None, :], axis=2)                         # (d, seq)
    ctxT = num / den
    hT = _ln_cols(z + jnp.dot(wo, ctxT, preferred_element_type=jnp.float32), g1)
    fT = jnp.dot(w2, jnp.maximum(jnp.dot(w1, hT, preferred_element_type=jnp.float32), 0.0),
                 preferred_element_type=jnp.float32)
    return _ln_cols(hT + fT, g2)


# ----------------------------------------------------------------------------
# Host-side weight packing: one lane-dense slab, one DMA
# ----------------------------------------------------------------------------
def _pack_weights(ws):
    """Pack 2-D weights into one lane-dense (rows, 128) f32 slab.

    Each weight starts at a sublane-tile (multiple-of-8) row offset so the in-kernel static
    slices never straddle tile boundaries. Returns (slab, [(row_off, rows, cols), ...]).
    """
    entries, off = [], 0
    for w in ws:
        r, c = w.shape
        assert c <= _LANES, f"weight wider than one lane tile: {w.shape}"
        entries.append((off, r, c))
        off += ((r + 7) // 8) * 8
    slab = jnp.zeros((off, _LANES), jnp.float32)
    for w, (o, r, c) in zip(ws, entries):
        slab = slab.at[o:o + r, 0:c].set(w.astype(jnp.float32))
    return slab, entries


# ----------------------------------------------------------------------------
# Fused encoder forward: ONE grid-less pallas_call, batch stacked on sublanes.
# ----------------------------------------------------------------------------
def encoder_forward(x, params):
    """Returns (x_VC_VL, x_VC) exactly like the PyTorch module (x_VC is the PRE-softmax
    ff_C output). Inference mode => all dropout layers are identity."""
    NS, C, L = x.shape
    ca = params["color_attn"]      # row layout (right-mult), d_model = L
    ffc = params["ff_C"]           # PyTorch (out, in) layout, acts on the channel axis
    lv = params["loc_attn_V"]      # row layout (right-mult), d_model = L
    lc = params["loc_attn_C"]      # PyTorch layout, computed in transposed space, d_model = VC
    ffl = params["ff_L"]           # (in, out) layout (right-mult), acts on the location axis
    VC = ffc[-1].shape[0]
    L_out = ffl[-1].shape[1]
    n_ffc, n_ffl = len(ffc), len(ffl)

    # Kernel assumes nhead == d_model (head_dim == 1, scale == 1), like the PyTorch module.
    assert ca[0].shape == (L, 3 * L) and lv[0].shape == (L, 3 * L)
    assert lc[0].shape == (3 * VC, VC)

    # ---- host-side packing (done per call here; cache it for repeated use) ------------
    # ff_C left-multiplies per sample; block-diagonalising it over the batch (kron(I_NS, W))
    # turns the channel MLP into plain stacked matmuls in-kernel.
    ffc_bd = [jnp.kron(jnp.eye(NS, dtype=jnp.float32), w.astype(jnp.float32)) for w in ffc]
    weight_list = list(ca) + ffc_bd + list(lv) + list(lc) + list(ffl)
    slab, entries = _pack_weights(weight_list)

    it = iter(range(len(weight_list)))
    idx_ca = [next(it) for _ in range(6)]
    idx_ffc = [next(it) for _ in range(n_ffc)]
    idx_lv = [next(it) for _ in range(6)]
    idx_lc = [next(it) for _ in range(6)]
    idx_ffl = [next(it) for _ in range(n_ffl)]

    def kernel(x_ref, w_ref, xvcvl_ref, xvc_ref):
        def W(i):  # static slab slice -> the (rows, cols) weight; free view + tiny VMEM load
            o, r, c = entries[i]
            return w_ref[o:o + r, 0:c]

        xs = x_ref[...].astype(jnp.float32)                           # (NS*C, L)

        # ---- ColorEncoder --------------------------------------------------------------
        x1 = _attn_layer_rows_stacked(xs, NS, C, L, tuple(W(i) for i in idx_ca))
        h = x1                                                        # channel MLP (block-diag)
        for j, i in enumerate(idx_ffc):
            h = jnp.dot(W(i), h, preferred_element_type=jnp.float32)
            if j != n_ffc - 1:
                h = jnp.maximum(h, 0.0)
        x_vc = h                                                      # (NS*VC, L), pre-softmax
        # softmax over the VC axis, per sample (rows b*VC : (b+1)*VC, tile-aligned)
        parts = []
        for b in range(NS):
            xb = x_vc[b * VC:(b + 1) * VC, :]
            e = jnp.exp(xb - jnp.max(xb, axis=0, keepdims=True))
            parts.append(e / jnp.sum(e, axis=0, keepdims=True))
        x_soft = jnp.concatenate(parts, axis=0)                       # (NS*VC, L)

        # ---- LocationEncoder -----------------------------------------------------------
        y = _attn_layer_rows_stacked(x_soft, NS, VC, L, tuple(W(i) for i in idx_lv))
        lc_w = tuple(W(i) for i in idx_lc)
        z = jnp.concatenate(
            [_attn_layer_cols(y[b * VC:(b + 1) * VC, :], lc_w, VC) for b in range(NS)],
            axis=0)                                                   # (NS*VC, L)
        g = z                                                         # location MLP (stacked rows)
        for j, i in enumerate(idx_ffl):
            g = jnp.dot(g, W(i), preferred_element_type=jnp.float32)
            if j != n_ffl - 1:
                g = jnp.maximum(g, 0.0)

        xvcvl_ref[...] = g.astype(xvcvl_ref.dtype)                    # (NS*VC, L_out)
        xvc_ref[...] = x_vc.astype(xvc_ref.dtype)                     # (NS*VC, L)

    # Rough advisory cost so XLA schedules this few-microsecond custom call sensibly.
    mm_flops = 2 * NS * max(C, VC) * sum(int(w.shape[0]) * int(w.shape[1]) for w in weight_list)
    ew_flops = 8 * NS * (C * C * L + VC * VC * L + VC * L * L)
    n_exp = NS * (C * C * L + VC * L + VC * VC * L + VC * L * L)
    n_bytes = 4 * (int(x.size) + int(slab.size) + NS * VC * (L + L_out))
    cost = pl.CostEstimate(flops=mm_flops + ew_flops, transcendentals=n_exp,
                           bytes_accessed=n_bytes)

    x_vc_vl, x_vc = pl.pallas_call(
        kernel,
        out_shape=(jax.ShapeDtypeStruct((NS * VC, L_out), x.dtype),
                   jax.ShapeDtypeStruct((NS * VC, L), x.dtype)),
        cost_estimate=cost,
    )(x.reshape(NS * C, L), slab)
    # Reshapes below are free in XLA (row-major contiguous).
    return x_vc_vl.reshape(NS, VC, L_out), x_vc.reshape(NS, VC, L)


# ----------------------------------------------------------------------------
# Parameter init (deterministic, synthetic; matches PyTorch module shapes)
# ----------------------------------------------------------------------------
def init_attn_params_rows(key, d_model, d_ff, scale=0.1):
    """Weights for the (tokens x features) layout: pre-transposed, QKV fused to (D, 3D)."""
    ks = jax.random.split(key, 4)
    in_proj = jax.random.normal(ks[0], (3 * d_model, d_model), jnp.float32) * scale
    wq, wk, wv = jnp.split(in_proj, 3, axis=0)
    wo = jax.random.normal(ks[1], (d_model, d_model), jnp.float32) * scale
    w1 = jax.random.normal(ks[2], (d_ff, d_model), jnp.float32) * scale
    w2 = jax.random.normal(ks[3], (d_model, d_ff), jnp.float32) * scale
    wqkv_t = jnp.concatenate([wq.T, wk.T, wv.T], axis=1)              # (D, 3D)
    g1 = jnp.ones((1, d_model), jnp.float32)                          # LayerNorm weight (bias=False)
    g2 = jnp.ones((1, d_model), jnp.float32)
    return (wqkv_t, wo.T, g1, w1.T, w2.T, g2)


def init_attn_params_cols(key, d_model, d_ff, scale=0.1):
    """Weights for the transposed-layout layer: PyTorch (out, in) layout, left-multiplied."""
    ks = jax.random.split(key, 4)
    in_proj = jax.random.normal(ks[0], (3 * d_model, d_model), jnp.float32) * scale  # stacked QKV
    wo = jax.random.normal(ks[1], (d_model, d_model), jnp.float32) * scale
    w1 = jax.random.normal(ks[2], (d_ff, d_model), jnp.float32) * scale
    w2 = jax.random.normal(ks[3], (d_model, d_ff), jnp.float32) * scale
    g1 = jnp.ones((d_model, 1), jnp.float32)
    g2 = jnp.ones((d_model, 1), jnp.float32)
    return (in_proj, wo, g1, w1, w2, g2)


def init_mlp_params_py(key, dims, scale=0.1):
    """Linear chain weights in PyTorch (out, in) layout (used by the left-multiplied ff_C)."""
    ks = jax.random.split(key, len(dims) - 1)
    return [jax.random.normal(ks[i], (dims[i + 1], dims[i]), jnp.float32) * scale
            for i in range(len(dims) - 1)]


def init_mlp_params_t(key, dims, scale=0.1):
    """Linear chain weights pre-transposed to (in, out) (used by the right-multiplied ff_L)."""
    return [w.T for w in init_mlp_params_py(key, dims, scale)]


# ----------------------------------------------------------------------------
if __name__ == "__main__":
    key = jax.random.PRNGKey(0)

    NS = 2
    C_dims_encoded = [4, 16, 8]      # ff_C: 4 -> 16 -> 8 (ReLU between), VC = 8
    L_dims_encoded = [16, 32, 24]    # ff_L: 16 -> 32 -> 24 (ReLU between), L = 16
    L_dim_feedforward = 32
    C_dim_feedforward = 32

    C, L = C_dims_encoded[0], L_dims_encoded[0]
    VC = C_dims_encoded[-1]

    ks = jax.random.split(key, 6)
    params = {
        "color_attn": init_attn_params_rows(ks[0], L, L_dim_feedforward),
        "ff_C": init_mlp_params_py(ks[1], C_dims_encoded),
        "loc_attn_V": init_attn_params_rows(ks[2], L, C_dim_feedforward),
        "loc_attn_C": init_attn_params_cols(ks[3], VC, C_dim_feedforward),
        "ff_L": init_mlp_params_t(ks[4], L_dims_encoded),
    }

    x = jax.random.normal(ks[5], (NS, C, L), jnp.float32)

    x_VC_VL, x_VC = encoder_forward(x, params)
    jax.block_until_ready((x_VC_VL, x_VC))

    assert x_VC_VL.shape == (NS, VC, L_dims_encoded[-1])
    assert x_VC.shape == (NS, VC, L)
    print("KERNEL_OK")
</pallas_src>

<mosaic_0001>
module attributes {stable_mosaic.version = 11 : i64} {
  func.func @kernel(%arg0: memref<8x16xf32, #tpu.memory_space<vmem>>, %arg1: memref<376x128xf32, #tpu.memory_space<vmem>>, %arg2: memref<16x24xf32, #tpu.memory_space<vmem>>, %arg3: memref<16x16xf32, #tpu.memory_space<vmem>>) attributes {dimension_semantics = [], scalar_prefetch = 0 : i64, scratch_operands = 0 : i64, tpu.core_type = #tpu.core_type<tc>} {
    %c0 = arith.constant 0 : index
    %c0_0 = arith.constant 0 : index
    %0 = vector.load %arg0[%c0, %c0_0] : memref<8x16xf32, #tpu.memory_space<vmem>>, vector<8x16xf32>
    %c0_1 = arith.constant 0 : index
    %c0_2 = arith.constant 0 : index
    %1 = vector.load %arg1[%c0_1, %c0_2] : memref<376x128xf32, #tpu.memory_space<vmem>>, vector<16x48xf32>
    %c16 = arith.constant 16 : index
    %c0_3 = arith.constant 0 : index
    %2 = vector.load %arg1[%c16, %c0_3] : memref<376x128xf32, #tpu.memory_space<vmem>>, vector<16x16xf32>
    %c32 = arith.constant 32 : index
    %c0_4 = arith.constant 0 : index
    %3 = vector.load %arg1[%c32, %c0_4] : memref<376x128xf32, #tpu.memory_space<vmem>>, vector<1x16xf32>
    %c40 = arith.constant 40 : index
    %c0_5 = arith.constant 0 : index
    %4 = vector.load %arg1[%c40, %c0_5] : memref<376x128xf32, #tpu.memory_space<vmem>>, vector<16x32xf32>
    %c56 = arith.constant 56 : index
    %c0_6 = arith.constant 0 : index
    %5 = vector.load %arg1[%c56, %c0_6] : memref<376x128xf32, #tpu.memory_space<vmem>>, vector<32x16xf32>
    %c88 = arith.constant 88 : index
    %c0_7 = arith.constant 0 : index
    %6 = vector.load %arg1[%c88, %c0_7] : memref<376x128xf32, #tpu.memory_space<vmem>>, vector<1x16xf32>
    %cst = arith.constant dense<0.000000e+00> : vector<8x48xf32>
    %7 = tpu.matmul %0, %1, %cst {dimension_numbers = #tpu.dot_dimension_numbers<[1], [0], [0], [1], [0, 0, 1, 1], [], []>} : vector<8x16xf32>, vector<16x48xf32>, vector<8x48xf32> -> vector<8x48xf32>
    %8 = vector.extract_strided_slice %7 {offsets = [0, 0], sizes = [4, 16], strides = [1, 1]} : vector<8x48xf32> to vector<4x16xf32>
    %9 = vector.extract_strided_slice %7 {offsets = [0, 16], sizes = [4, 16], strides = [1, 1]} : vector<8x48xf32> to vector<4x16xf32>
    %10 = vector.extract_strided_slice %7 {offsets = [0, 32], sizes = [4, 16], strides = [1, 1]} : vector<8x48xf32> to vector<4x16xf32>
    %11 = vector.shape_cast %8 : vector<4x16xf32> to vector<4x1x16xf32>
    %12 = vector.shape_cast %9 : vector<4x16xf32> to vector<1x4x16xf32>
    %13 = vector.broadcast %11 : vector<4x1x16xf32> to vector<4x4x16xf32>
    %14 = vector.broadcast %12 : vector<1x4x16xf32> to vector<4x4x16xf32>
    %15 = arith.mulf %13, %14 : vector<4x4x16xf32>
    %cst_8 = arith.constant dense<0xFF800000> : vector<4x16xf32>
    %16 = vector.multi_reduction <maximumf>, %15, %cst_8 [1] : vector<4x4x16xf32> to vector<4x16xf32>
    %17 = vector.shape_cast %16 : vector<4x16xf32> to vector<4x1x16xf32>
    %18 = vector.broadcast %17 : vector<4x1x16xf32> to vector<4x4x16xf32>
    %19 = arith.subf %15, %18 : vector<4x4x16xf32>
    %20 = math.exp %19 : vector<4x4x16xf32>
    %cst_9 = arith.constant dense<0.000000e+00> : vector<4x16xf32>
    %21 = vector.multi_reduction <add>, %20, %cst_9 [1] : vector<4x4x16xf32> to vector<4x16xf32>
    %22 = vector.shape_cast %10 : vector<4x16xf32> to vector<1x4x16xf32>
    %23 = vector.broadcast %22 : vector<1x4x16xf32> to vector<4x4x16xf32>
    %24 = arith.mulf %20, %23 : vector<4x4x16xf32>
    %cst_10 = arith.constant dense<0.000000e+00> : vector<4x16xf32>
    %25 = vector.multi_reduction <add>, %24, %cst_10 [1] : vector<4x4x16xf32> to vector<4x16xf32>
    %26 = arith.divf %25, %21 : vector<4x16xf32>
    %27 = vector.extract_strided_slice %7 {offsets = [4, 0], sizes = [4, 16], strides = [1, 1]} : vector<8x48xf32> to vector<4x16xf32>
    %28 = vector.extract_strided_slice %7 {offsets = [4, 16], sizes = [4, 16], strides = [1, 1]} : vector<8x48xf32> to vector<4x16xf32>
    %29 = vector.extract_strided_slice %7 {offsets = [4, 32], sizes = [4, 16], strides = [1, 1]} : vector<8x48xf32> to vector<4x16xf32>
    %30 = vector.shape_cast %27 : vector<4x16xf32> to vector<4x1x16xf32>
    %31 = vector.shape_cast %28 : vector<4x16xf32> to vector<1x4x16xf32>
    %32 = vector.broadcast %30 : vector<4x1x16xf32> to vector<4x4x16xf32>
    %33 = vector.broadcast %31 : vector<1x4x16xf32> to vector<4x4x16xf32>
    %34 = arith.mulf %32, %33 : vector<4x4x16xf32>
    %cst_11 = arith.constant dense<0xFF800000> : vector<4x16xf32>
    %35 = vector.multi_reduction <maximumf>, %34, %cst_11 [1] : vector<4x4x16xf32> to vector<4x16xf32>
    %36 = vector.shape_cast %35 : vector<4x16xf32> to vector<4x1x16xf32>
    %37 = vector.broadcast %36 : vector<4x1x16xf32> to vector<4x4x16xf32>
    %38 = arith.subf %34, %37 : vector<4x4x16xf32>
    %39 = math.exp %38 : vector<4x4x16xf32>
    %cst_12 = arith.constant dense<0.000000e+00> : vector<4x16xf32>
    %40 = vector.multi_reduction <add>, %39, %cst_12 [1] : vector<4x4x16xf32> to vector<4x16xf32>
    %41 = vector.shape_cast %29 : vector<4x16xf32> to vector<1x4x16xf32>
    %42 = vector.broadcast %41 : vector<1x4x16xf32> to vector<4x4x16xf32>
    %43 = arith.mulf %39, %42 : vector<4x4x16xf32>
    %cst_13 = arith.constant dense<0.000000e+00> : vector<4x16xf32>
    %44 = vector.multi_reduction <add>, %43, %cst_13 [1] : vector<4x4x16xf32> to vector<4x16xf32>
    %45 = arith.divf %44, %40 : vector<4x16xf32>
    %46 = tpu.concatenate %26, %45 in 0 : vector<4x16xf32>, vector<4x16xf32> -> vector<8x16xf32>
    %cst_14 = arith.constant dense<0.000000e+00> : vector<8x16xf32>
    %47 = tpu.matmul %46, %2, %cst_14 {dimension_numbers = #tpu.dot_dimension_numbers<[1], [0], [0], [1], [0, 0, 1, 1], [], []>} : vector<8x16xf32>, vector<16x16xf32>, vector<8x16xf32> -> vector<8x16xf32>
    %48 = arith.addf %0, %47 : vector<8x16xf32>
    %cst_15 = arith.constant dense<0.000000e+00> : vector<8xf32>
    %49 = vector.multi_reduction <add>, %48, %cst_15 [1] : vector<8x16xf32> to vector<8xf32>
    %50 = vector.shape_cast %49 : vector<8xf32> to vector<8x1xf32>
    %cst_16 = arith.constant 1.600000e+01 : f32
    %51 = vector.broadcast %cst_16 : f32 to vector<8x1xf32>
    %52 = arith.divf %50, %51 : vector<8x1xf32>
    %53 = vector.broadcast %52 : vector<8x1xf32> to vector<8x16xf32>
    %54 = arith.subf %48, %53 : vector<8x16xf32>
    %55 = arith.mulf %54, %54 : vector<8x16xf32>
    %cst_17 = arith.constant dense<0.000000e+00> : vector<8xf32>
    %56 = vector.multi_reduction <add>, %55, %cst_17 [1] : vector<8x16xf32> to vector<8xf32>
    %57 = vector.shape_cast %56 : vector<8xf32> to vector<8x1xf32>
    %cst_18 = arith.constant 1.600000e+01 : f32
    %58 = vector.broadcast %cst_18 : f32 to vector<8x1xf32>
    %59 = arith.divf %57, %58 : vector<8x1xf32>
    %cst_19 = arith.constant 9.99999974E-6 : f32
    %60 = vector.broadcast %cst_19 : f32 to vector<8x1xf32>
    %61 = arith.addf %59, %60 : vector<8x1xf32>
    %62 = math.rsqrt %61 : vector<8x1xf32>
    %63 = vector.broadcast %62 : vector<8x1xf32> to vector<8x16xf32>
    %64 = arith.mulf %54, %63 : vector<8x16xf32>
    %65 = vector.broadcast %3 : vector<1x16xf32> to vector<8x16xf32>
    %66 = arith.mulf %64, %65 : vector<8x16xf32>
    %cst_20 = arith.constant dense<0.000000e+00> : vector<8x32xf32>
    %67 = tpu.matmul %66, %4, %cst_20 {dimension_numbers = #tpu.dot_dimension_numbers<[1], [0], [0], [1], [0, 0, 1, 1], [], []>} : vector<8x16xf32>, vector<16x32xf32>, vector<8x32xf32> -> vector<8x32xf32>
    %cst_21 = arith.constant 0.000000e+00 : f32
    %68 = vector.broadcast %cst_21 : f32 to vector<8x32xf32>
    %69 = arith.maximumf %67, %68 : vector<8x32xf32>
    %cst_22 = arith.constant dense<0.000000e+00> : vector<8x16xf32>
    %70 = tpu.matmul %69, %5, %cst_22 {dimension_numbers = #tpu.dot_dimension_numbers<[1], [0], [0], [1], [0, 0, 1, 1], [], []>} : vector<8x32xf32>, vector<32x16xf32>, vector<8x16xf32> -> vector<8x16xf32>
    %71 = arith.addf %66, %70 : vector<8x16xf32>
    %cst_23 = arith.constant dense<0.000000e+00> : vector<8xf32>
    %72 = vector.multi_reduction <add>, %71, %cst_23 [1] : vector<8x16xf32> to vector<8xf32>
    %73 = vector.shape_cast %72 : vector<8xf32> to vector<8x1xf32>
    %cst_24 = arith.constant 1.600000e+01 : f32
    %74 = vector.broadcast %cst_24 : f32 to vector<8x1xf32>
    %75 = arith.divf %73, %74 : vector<8x1xf32>
    %76 = vector.broadcast %75 : vector<8x1xf32> to vector<8x16xf32>
    %77 = arith.subf %71, %76 : vector<8x16xf32>
    %78 = arith.mulf %77, %77 : vector<8x16xf32>
    %cst_25 = arith.constant dense<0.000000e+00> : vector<8xf32>
    %79 = vector.multi_reduction <add>, %78, %cst_25 [1] : vector<8x16xf32> to vector<8xf32>
    %80 = vector.shape_cast %79 : vector<8xf32> to vector<8x1xf32>
    %cst_26 = arith.constant 1.600000e+01 : f32
    %81 = vector.broadcast %cst_26 : f32 to vector<8x1xf32>
    %82 = arith.divf %80, %81 : vector<8x1xf32>
    %cst_27 = arith.constant 9.99999974E-6 : f32
    %83 = vector.broadcast %cst_27 : f32 to vector<8x1xf32>
    %84 = arith.addf %82, %83 : vector<8x1xf32>
    %85 = math.rsqrt %84 : vector<8x1xf32>
    %86 = vector.broadcast %85 : vector<8x1xf32> to vector<8x16xf32>
    %87 = arith.mulf %77, %86 : vector<8x16xf32>
    %88 = vector.broadcast %6 : vector<1x16xf32> to vector<8x16xf32>
    %89 = arith.mulf %87, %88 : vector<8x16xf32>
    %c96 = arith.constant 96 : index
    %c0_28 = arith.constant 0 : index
    %90 = vector.load %arg1[%c96, %c0_28] : memref<376x128xf32, #tpu.memory_space<vmem>>, vector<32x8xf32>
    %cst_29 = arith.constant dense<0.000000e+00> : vector<32x16xf32>
    %91 = tpu.matmul %90, %89, %cst_29 {dimension_numbers = #tpu.dot_dimension_numbers<[1], [0], [0], [1], [0, 0, 1, 1], [], []>} : vector<32x8xf32>, vector<8x16xf32>, vector<32x16xf32> -> vector<32x16xf32>
    %cst_30 = arith.constant 0.000000e+00 : f32
    %92 = vector.broadcast %cst_30 : f32 to vector<32x16xf32>
    %93 = arith.maximumf %91, %92 : vector<32x16xf32>
    %c128 = arith.constant 128 : index
    %c0_31 = arith.constant 0 : index
    %94 = vector.load %arg1[%c128, %c0_31] : memref<376x128xf32, #tpu.memory_space<vmem>>, vector<16x32xf32>
    %cst_32 = arith.constant dense<0.000000e+00> : vector<16x16xf32>
    %95 = tpu.matmul %94, %93, %cst_32 {dimension_numbers = #tpu.dot_dimension_numbers<[1], [0], [0], [1], [0, 0, 1, 1], [], []>} : vector<16x32xf32>, vector<32x16xf32>, vector<16x16xf32> -> vector<16x16xf32>
    %96 = vector.extract_strided_slice %95 {offsets = [0, 0], sizes = [8, 16], strides = [1, 1]} : vector<16x16xf32> to vector<8x16xf32>
    %cst_33 = arith.constant dense<0xFF800000> : vector<16xf32>
    %97 = vector.multi_reduction <maximumf>, %96, %cst_33 [0] : vector<8x16xf32> to vector<16xf32>
    %98 = vector.shape_cast %97 : vector<16xf32> to vector<1x16xf32>
    %99 = vector.broadcast %98 : vector<1x16xf32> to vector<8x16xf32>
    %100 = arith.subf %96, %99 : vector<8x16xf32>
    %101 = math.exp %100 : vector<8x16xf32>
    %cst_34 = arith.constant dense<0.000000e+00> : vector<16xf32>
    %102 = vector.multi_reduction <add>, %101, %cst_34 [0] : vector<8x16xf32> to vector<16xf32>
    %103 = vector.shape_cast %102 : vector<16xf32> to vector<1x16xf32>
    %104 = vector.broadcast %103 : vector<1x16xf32> to vector<8x16xf32>
    %105 = arith.divf %101, %104 : vector<8x16xf32>
    %106 = vector.extract_strided_slice %95 {offsets = [8, 0], sizes = [8, 16], strides = [1, 1]} : vector<16x16xf32> to vector<8x16xf32>
    %cst_35 = arith.constant dense<0xFF800000> : vector<16xf32>
    %107 = vector.multi_reduction <maximumf>, %106, %cst_35 [0] : vector<8x16xf32> to vector<16xf32>
    %108 = vector.shape_cast %107 : vector<16xf32> to vector<1x16xf32>
    %109 = vector.broadcast %108 : vector<1x16xf32> to vector<8x16xf32>
    %110 = arith.subf %106, %109 : vector<8x16xf32>
    %111 = math.exp %110 : vector<8x16xf32>
    %cst_36 = arith.constant dense<0.000000e+00> : vector<16xf32>
    %112 = vector.multi_reduction <add>, %111, %cst_36 [0] : vector<8x16xf32> to vector<16xf32>
    %113 = vector.shape_cast %112 : vector<16xf32> to vector<1x16xf32>
    %114 = vector.broadcast %113 : vector<1x16xf32> to vector<8x16xf32>
    %115 = arith.divf %111, %114 : vector<8x16xf32>
    %116 = tpu.concatenate %105, %115 in 0 : vector<8x16xf32>, vector<8x16xf32> -> vector<16x16xf32>
    %c144 = arith.constant 144 : index
    %c0_37 = arith.constant 0 : index
    %117 = vector.load %arg1[%c144, %c0_37] : memref<376x128xf32, #tpu.memory_space<vmem>>, vector<16x48xf32>
    %c160 = arith.constant 160 : index
    %c0_38 = arith.constant 0 : index
    %118 = vector.load %arg1[%c160, %c0_38] : memref<376x128xf32, #tpu.memory_space<vmem>>, vector<16x16xf32>
    %c176 = arith.constant 176 : index
    %c0_39 = arith.constant 0 : index
    %119 = vector.load %arg1[%c176, %c0_39] : memref<376x128xf32, #tpu.memory_space<vmem>>, vector<1x16xf32>
    %c184 = arith.constant 184 : index
    %c0_40 = arith.constant 0 : index
    %120 = vector.load %arg1[%c184, %c0_40] : memref<376x128xf32, #tpu.memory_space<vmem>>, vector<16x32xf32>
    %c200 = arith.constant 200 : index
    %c0_41 = arith.constant 0 : index
    %121 = vector.load %arg1[%c200, %c0_41] : memref<376x128xf32, #tpu.memory_space<vmem>>, vector<32x16xf32>
    %c232 = arith.constant 232 : index
    %c0_42 = arith.constant 0 : index
    %122 = vector.load %arg1[%c232, %c0_42] : memref<376x128xf32, #tpu.memory_space<vmem>>, vector<1x16xf32>
    %cst_43 = arith.constant dense<0.000000e+00> : vector<16x48xf32>
    %123 = tpu.matmul %116, %117, %cst_43 {dimension_numbers = #tpu.dot_dimension_numbers<[1], [0], [0], [1], [0, 0, 1, 1], [], []>} : vector<16x16xf32>, vector<16x48xf32>, vector<16x48xf32> -> vector<16x48xf32>
    %124 = vector.extract_strided_slice %123 {offsets = [0, 0], sizes = [8, 16], strides = [1, 1]} : vector<16x48xf32> to vector<8x16xf32>
    %125 = vector.extract_strided_slice %123 {offsets = [0, 16], sizes = [8, 16], strides = [1, 1]} : vector<16x48xf32> to vector<8x16xf32>
    %126 = vector.extract_strided_slice %123 {offsets = [0, 32], sizes = [8, 16], strides = [1, 1]} : vector<16x48xf32> to vector<8x16xf32>
    %127 = vector.shape_cast %124 : vector<8x16xf32> to vector<8x1x16xf32>
    %128 = vector.shape_cast %125 : vector<8x16xf32> to vector<1x8x16xf32>
    %129 = vector.broadcast %127 : vector<8x1x16xf32> to vector<8x8x16xf32>
    %130 = vector.broadcast %128 : vector<1x8x16xf32> to vector<8x8x16xf32>
    %131 = arith.mulf %129, %130 : vector<8x8x16xf32>
    %cst_44 = arith.constant dense<0xFF800000> : vector<8x16xf32>
    %132 = vector.multi_reduction <maximumf>, %131, %cst_44 [1] : vector<8x8x16xf32> to vector<8x16xf32>
    %133 = vector.shape_cast %132 : vector<8x16xf32> to vector<8x1x16xf32>
    %134 = vector.broadcast %133 : vector<8x1x16xf32> to vector<8x8x16xf32>
    %135 = arith.subf %131, %134 : vector<8x8x16xf32>
    %136 = math.exp %135 : vector<8x8x16xf32>
    %cst_45 = arith.constant dense<0.000000e+00> : vector<8x16xf32>
    %137 = vector.multi_reduction <add>, %136, %cst_45 [1] : vector<8x8x16xf32> to vector<8x16xf32>
    %138 = vector.shape_cast %126 : vector<8x16xf32> to vector<1x8x16xf32>
    %139 = vector.broadcast %138 : vector<1x8x16xf32> to vector<8x8x16xf32>
    %140 = arith.mulf %136, %139 : vector<8x8x16xf32>
    %cst_46 = arith.constant dense<0.000000e+00> : vector<8x16xf32>
    %141 = vector.multi_reduction <add>, %140, %cst_46 [1] : vector<8x8x16xf32> to vector<8x16xf32>
    %142 = arith.divf %141, %137 : vector<8x16xf32>
    %143 = vector.extract_strided_slice %123 {offsets = [8, 0], sizes = [8, 16], strides = [1, 1]} : vector<16x48xf32> to vector<8x16xf32>
    %144 = vector.extract_strided_slice %123 {offsets = [8, 16], sizes = [8, 16], strides = [1, 1]} : vector<16x48xf32> to vector<8x16xf32>
    %145 = vector.extract_strided_slice %123 {offsets = [8, 32], sizes = [8, 16], strides = [1, 1]} : vector<16x48xf32> to vector<8x16xf32>
    %146 = vector.shape_cast %143 : vector<8x16xf32> to vector<8x1x16xf32>
    %147 = vector.shape_cast %144 : vector<8x16xf32> to vector<1x8x16xf32>
    %148 = vector.broadcast %146 : vector<8x1x16xf32> to vector<8x8x16xf32>
    %149 = vector.broadcast %147 : vector<1x8x16xf32> to vector<8x8x16xf32>
    %150 = arith.mulf %148, %149 : vector<8x8x16xf32>
    %cst_47 = arith.constant dense<0xFF800000> : vector<8x16xf32>
    %151 = vector.multi_reduction <maximumf>, %150, %cst_47 [1] : vector<8x8x16xf32> to vector<8x16xf32>
    %152 = vector.shape_cast %151 : vector<8x16xf32> to vector<8x1x16xf32>
    %153 = vector.broadcast %152 : vector<8x1x16xf32> to vector<8x8x16xf32>
    %154 = arith.subf %150, %153 : vector<8x8x16xf32>
    %155 = math.exp %154 : vector<8x8x16xf32>
    %cst_48 = arith.constant dense<0.000000e+00> : vector<8x16xf32>
    %156 = vector.multi_reduction <add>, %155, %cst_48 [1] : vector<8x8x16xf32> to vector<8x16xf32>
    %157 = vector.shape_cast %145 : vector<8x16xf32> to vector<1x8x16xf32>
    %158 = vector.broadcast %157 : vector<1x8x16xf32> to vector<8x8x16xf32>
    %159 = arith.mulf %155, %158 : vector<8x8x16xf32>
    %cst_49 = arith.constant dense<0.000000e+00> : vector<8x16xf32>
    %160 = vector.multi_reduction <add>, %159, %cst_49 [1] : vector<8x8x16xf32> to vector<8x16xf32>
    %161 = arith.divf %160, %156 : vector<8x16xf32>
    %162 = tpu.concatenate %142, %161 in 0 : vector<8x16xf32>, vector<8x16xf32> -> vector<16x16xf32>
    %cst_50 = arith.constant dense<0.000000e+00> : vector<16x16xf32>
    %163 = tpu.matmul %162, %118, %cst_50 {dimension_numbers = #tpu.dot_dimension_numbers<[1], [0], [0], [1], [0, 0, 1, 1], [], []>} : vector<16x16xf32>, vector<16x16xf32>, vector<16x16xf32> -> vector<16x16xf32>
    %164 = arith.addf %116, %163 : vector<16x16xf32>
    %cst_51 = arith.constant dense<0.000000e+00> : vector<16xf32>
    %165 = vector.multi_reduction <add>, %164, %cst_51 [1] : vector<16x16xf32> to vector<16xf32>
    %166 = vector.shape_cast %165 : vector<16xf32> to vector<16x1xf32>
    %cst_52 = arith.constant 1.600000e+01 : f32
    %167 = vector.broadcast %cst_52 : f32 to vector<16x1xf32>
    %168 = arith.divf %166, %167 : vector<16x1xf32>
    %169 = vector.broadcast %168 : vector<16x1xf32> to vector<16x16xf32>
    %170 = arith.subf %164, %169 : vector<16x16xf32>
    %171 = arith.mulf %170, %170 : vector<16x16xf32>
    %cst_53 = arith.constant dense<0.000000e+00> : vector<16xf32>
    %172 = vector.multi_reduction <add>, %171, %cst_53 [1] : vector<16x16xf32> to vector<16xf32>
    %173 = vector.shape_cast %172 : vector<16xf32> to vector<16x1xf32>
    %cst_54 = arith.constant 1.600000e+01 : f32
    %174 = vector.broadcast %cst_54 : f32 to vector<16x1xf32>
    %175 = arith.divf %173, %174 : vector<16x1xf32>
    %cst_55 = arith.constant 9.99999974E-6 : f32
    %176 = vector.broadcast %cst_55 : f32 to vector<16x1xf32>
    %177 = arith.addf %175, %176 : vector<16x1xf32>
    %178 = math.rsqrt %177 : vector<16x1xf32>
    %179 = vector.broadcast %178 : vector<16x1xf32> to vector<16x16xf32>
    %180 = arith.mulf %170, %179 : vector<16x16xf32>
    %181 = vector.broadcast %119 : vector<1x16xf32> to vector<16x16xf32>
    %182 = arith.mulf %180, %181 : vector<16x16xf32>
    %cst_56 = arith.constant dense<0.000000e+00> : vector<16x32xf32>
    %183 = tpu.matmul %182, %120, %cst_56 {dimension_numbers = #tpu.dot_dimension_numbers<[1], [0], [0], [1], [0, 0, 1, 1], [], []>} : vector<16x16xf32>, vector<16x32xf32>, vector<16x32xf32> -> vector<16x32xf32>
    %cst_57 = arith.constant 0.000000e+00 : f32
    %184 = vector.broadcast %cst_57 : f32 to vector<16x32xf32>
    %185 = arith.maximumf %183, %184 : vector<16x32xf32>
    %cst_58 = arith.constant dense<0.000000e+00> : vector<16x16xf32>
    %186 = tpu.matmul %185, %121, %cst_58 {dimension_numbers = #tpu.dot_dimension_numbers<[1], [0], [0], [1], [0, 0, 1, 1], [], []>} : vector<16x32xf32>, vector<32x16xf32>, vector<16x16xf32> -> vector<16x16xf32>
    %187 = arith.addf %182, %186 : vector<16x16xf32>
    %cst_59 = arith.constant dense<0.000000e+00> : vector<16xf32>
    %188 = vector.multi_reduction <add>, %187, %cst_59 [1] : vector<16x16xf32> to vector<16xf32>
    %189 = vector.shape_cast %188 : vector<16xf32> to vector<16x1xf32>
    %cst_60 = arith.constant 1.600000e+01 : f32
    %190 = vector.broadcast %cst_60 : f32 to vector<16x1xf32>
    %191 = arith.divf %189, %190 : vector<16x1xf32>
    %192 = vector.broadcast %191 : vector<16x1xf32> to vector<16x16xf32>
    %193 = arith.subf %187, %192 : vector<16x16xf32>
    %194 = arith.mulf %193, %193 : vector<16x16xf32>
    %cst_61 = arith.constant dense<0.000000e+00> : vector<16xf32>
    %195 = vector.multi_reduction <add>, %194, %cst_61 [1] : vector<16x16xf32> to vector<16xf32>
    %196 = vector.shape_cast %195 : vector<16xf32> to vector<16x1xf32>
    %cst_62 = arith.constant 1.600000e+01 : f32
    %197 = vector.broadcast %cst_62 : f32 to vector<16x1xf32>
    %198 = arith.divf %196, %197 : vector<16x1xf32>
    %cst_63 = arith.constant 9.99999974E-6 : f32
    %199 = vector.broadcast %cst_63 : f32 to vector<16x1xf32>
    %200 = arith.addf %198, %199 : vector<16x1xf32>
    %201 = math.rsqrt %200 : vector<16x1xf32>
    %202 = vector.broadcast %201 : vector<16x1xf32> to vector<16x16xf32>
    %203 = arith.mulf %193, %202 : vector<16x16xf32>
    %204 = vector.broadcast %122 : vector<1x16xf32> to vector<16x16xf32>
    %205 = arith.mulf %203, %204 : vector<16x16xf32>
    %c240 = arith.constant 240 : index
    %c0_64 = arith.constant 0 : index
    %206 = vector.load %arg1[%c240, %c0_64] : memref<376x128xf32, #tpu.memory_space<vmem>>, vector<24x8xf32>
    %c264 = arith.constant 264 : index
    %c0_65 = arith.constant 0 : index
    %207 = vector.load %arg1[%c264, %c0_65] : memref<376x128xf32, #tpu.memory_space<vmem>>, vector<8x8xf32>
    %c272 = arith.constant 272 : index
    %c0_66 = arith.constant 0 : index
    %208 = vector.load %arg1[%c272, %c0_66] : memref<376x128xf32, #tpu.memory_space<vmem>>, vector<8x1xf32>
    %c280 = arith.constant 280 : index
    %c0_67 = arith.constant 0 : index
    %209 = vector.load %arg1[%c280, %c0_67] : memref<376x128xf32, #tpu.memory_space<vmem>>, vector<32x8xf32>
    %c312 = arith.constant 312 : index
    %c0_68 = arith.constant 0 : index
    %210 = vector.load %arg1[%c312, %c0_68] : memref<376x128xf32, #tpu.memory_space<vmem>>, vector<8x32xf32>
    %c320 = arith.constant 320 : index
    %c0_69 = arith.constant 0 : index
    %211 = vector.load %arg1[%c320, %c0_69] : memref<376x128xf32, #tpu.memory_space<vmem>>, vector<8x1xf32>
    %212 = vector.extract_strided_slice %205 {offsets = [0, 0], sizes = [8, 16], strides = [1, 1]} : vector<16x16xf32> to vector<8x16xf32>
    %cst_70 = arith.constant dense<0.000000e+00> : vector<24x16xf32>
    %213 = tpu.matmul %206, %212, %cst_70 {dimension_numbers = #tpu.dot_dimension_numbers<[1], [0], [0], [1], [0, 0, 1, 1], [], []>} : vector<24x8xf32>, vector<8x16xf32>, vector<24x16xf32> -> vector<24x16xf32>
    %214 = vector.extract_strided_slice %213 {offsets = [0, 0], sizes = [8, 16], strides = [1, 1]} : vector<24x16xf32> to vector<8x16xf32>
    %215 = vector.extract_strided_slice %213 {offsets = [8, 0], sizes = [8, 16], strides = [1, 1]} : vector<24x16xf32> to vector<8x16xf32>
    %216 = vector.extract_strided_slice %213 {offsets = [16, 0], sizes = [8, 16], strides = [1, 1]} : vector<24x16xf32> to vector<8x16xf32>
    %217 = vector.shape_cast %214 : vector<8x16xf32> to vector<8x16x1xf32>
    %218 = vector.shape_cast %215 : vector<8x16xf32> to vector<8x1x16xf32>
    %219 = vector.broadcast %217 : vector<8x16x1xf32> to vector<8x16x16xf32>
    %220 = vector.broadcast %218 : vector<8x1x16xf32> to vector<8x16x16xf32>
    %221 = arith.mulf %219, %220 : vector<8x16x16xf32>
    %cst_71 = arith.constant dense<0xFF800000> : vector<8x16xf32>
    %222 = vector.multi_reduction <maximumf>, %221, %cst_71 [2] : vector<8x16x16xf32> to vector<8x16xf32>
    %223 = vector.shape_cast %222 : vector<8x16xf32> to vector<8x16x1xf32>
    %224 = vector.broadcast %223 : vector<8x16x1xf32> to vector<8x16x16xf32>
    %225 = arith.subf %221, %224 : vector<8x16x16xf32>
    %226 = math.exp %225 : vector<8x16x16xf32>
    %cst_72 = arith.constant dense<0.000000e+00> : vector<8x16xf32>
    %227 = vector.multi_reduction <add>, %226, %cst_72 [2] : vector<8x16x16xf32> to vector<8x16xf32>
    %228 = vector.shape_cast %216 : vector<8x16xf32> to vector<8x1x16xf32>
    %229 = vector.broadcast %228 : vector<8x1x16xf32> to vector<8x16x16xf32>
    %230 = arith.mulf %226, %229 : vector<8x16x16xf32>
    %cst_73 = arith.constant dense<0.000000e+00> : vector<8x16xf32>
    %231 = vector.multi_reduction <add>, %230, %cst_73 [2] : vector<8x16x16xf32> to vector<8x16xf32>
    %232 = arith.divf %231, %227 : vector<8x16xf32>
    %cst_74 = arith.constant dense<0.000000e+00> : vector<8x16xf32>
    %233 = tpu.matmul %207, %232, %cst_74 {dimension_numbers = #tpu.dot_dimension_numbers<[1], [0], [0], [1], [0, 0, 1, 1], [], []>} : vector<8x8xf32>, vector<8x16xf32>, vector<8x16xf32> -> vector<8x16xf32>
    %234 = arith.addf %212, %233 : vector<8x16xf32>
    %cst_75 = arith.constant dense<0.000000e+00> : vector<16xf32>
    %235 = vector.multi_reduction <add>, %234, %cst_75 [0] : vector<8x16xf32> to vector<16xf32>
    %236 = vector.shape_cast %235 : vector<16xf32> to vector<1x16xf32>
    %cst_76 = arith.constant 8.000000e+00 : f32
    %237 = vector.broadcast %cst_76 : f32 to vector<1x16xf32>
    %238 = arith.divf %236, %237 : vector<1x16xf32>
    %239 = vector.broadcast %238 : vector<1x16xf32> to vector<8x16xf32>
    %240 = arith.subf %234, %239 : vector<8x16xf32>
    %241 = arith.mulf %240, %240 : vector<8x16xf32>
    %cst_77 = arith.constant dense<0.000000e+00> : vector<16xf32>
    %242 = vector.multi_reduction <add>, %241, %cst_77 [0] : vector<8x16xf32> to vector<16xf32>
    %243 = vector.shape_cast %242 : vector<16xf32> to vector<1x16xf32>
    %cst_78 = arith.constant 8.000000e+00 : f32
    %244 = vector.broadcast %cst_78 : f32 to vector<1x16xf32>
    %245 = arith.divf %243, %244 : vector<1x16xf32>
    %cst_79 = arith.constant 9.99999974E-6 : f32
    %246 = vector.broadcast %cst_79 : f32 to vector<1x16xf32>
    %247 = arith.addf %245, %246 : vector<1x16xf32>
    %248 = math.rsqrt %247 : vector<1x16xf32>
    %249 = vector.broadcast %248 : vector<1x16xf32> to vector<8x16xf32>
    %250 = arith.mulf %240, %249 : vector<8x16xf32>
    %251 = vector.broadcast %208 : vector<8x1xf32> to vector<8x16xf32>
    %252 = arith.mulf %250, %251 : vector<8x16xf32>
    %cst_80 = arith.constant dense<0.000000e+00> : vector<32x16xf32>
    %253 = tpu.matmul %209, %252, %cst_80 {dimension_numbers = #tpu.dot_dimension_numbers<[1], [0], [0], [1], [0, 0, 1, 1], [], []>} : vector<32x8xf32>, vector<8x16xf32>, vector<32x16xf32> -> vector<32x16xf32>
    %cst_81 = arith.constant 0.000000e+00 : f32
    %254 = vector.broadcast %cst_81 : f32 to vector<32x16xf32>
    %255 = arith.maximumf %253, %254 : vector<32x16xf32>
    %cst_82 = arith.constant dense<0.000000e+00> : vector<8x16xf32>
    %256 = tpu.matmul %210, %255, %cst_82 {dimension_numbers = #tpu.dot_dimension_numbers<[1], [0], [0], [1], [0, 0, 1, 1], [], []>} : vector<8x32xf32>, vector<32x16xf32>, vector<8x16xf32> -> vector<8x16xf32>
    %257 = arith.addf %252, %256 : vector<8x16xf32>
    %cst_83 = arith.constant dense<0.000000e+00> : vector<16xf32>
    %258 = vector.multi_reduction <add>, %257, %cst_83 [0] : vector<8x16xf32> to vector<16xf32>
    %259 = vector.shape_cast %258 : vector<16xf32> to vector<1x16xf32>
    %cst_84 = arith.constant 8.000000e+00 : f32
    %260 = vector.broadcast %cst_84 : f32 to vector<1x16xf32>
    %261 = arith.divf %259, %260 : vector<1x16xf32>
    %262 = vector.broadcast %261 : vector<1x16xf32> to vector<8x16xf32>
    %263 = arith.subf %257, %262 : vector<8x16xf32>
    %264 = arith.mulf %263, %263 : vector<8x16xf32>
    %cst_85 = arith.constant dense<0.000000e+00> : vector<16xf32>
    %265 = vector.multi_reduction <add>, %264, %cst_85 [0] : vector<8x16xf32> to vector<16xf32>
    %266 = vector.shape_cast %265 : vector<16xf32> to vector<1x16xf32>
    %cst_86 = arith.constant 8.000000e+00 : f32
    %267 = vector.broadcast %cst_86 : f32 to vector<1x16xf32>
    %268 = arith.divf %266, %267 : vector<1x16xf32>
    %cst_87 = arith.constant 9.99999974E-6 : f32
    %269 = vector.broadcast %cst_87 : f32 to vector<1x16xf32>
    %270 = arith.addf %268, %269 : vector<1x16xf32>
    %271 = math.rsqrt %270 : vector<1x16xf32>
    %272 = vector.broadcast %271 : vector<1x16xf32> to vector<8x16xf32>
    %273 = arith.mulf %263, %272 : vector<8x16xf32>
    %274 = vector.broadcast %211 : vector<8x1xf32> to vector<8x16xf32>
    %275 = arith.mulf %273, %274 : vector<8x16xf32>
    %276 = vector.extract_strided_slice %205 {offsets = [8, 0], sizes = [8, 16], strides = [1, 1]} : vector<16x16xf32> to vector<8x16xf32>
    %cst_88 = arith.constant dense<0.000000e+00> : vector<24x16xf32>
    %277 = tpu.matmul %206, %276, %cst_88 {dimension_numbers = #tpu.dot_dimension_numbers<[1], [0], [0], [1], [0, 0, 1, 1], [], []>} : vector<24x8xf32>, vector<8x16xf32>, vector<24x16xf32> -> vector<24x16xf32>
    %278 = vector.extract_strided_slice %277 {offsets = [0, 0], sizes = [8, 16], strides = [1, 1]} : vector<24x16xf32> to vector<8x16xf32>
    %279 = vector.extract_strided_slice %277 {offsets = [8, 0], sizes = [8, 16], strides = [1, 1]} : vector<24x16xf32> to vector<8x16xf32>
    %280 = vector.extract_strided_slice %277 {offsets = [16, 0], sizes = [8, 16], strides = [1, 1]} : vector<24x16xf32> to vector<8x16xf32>
    %281 = vector.shape_cast %278 : vector<8x16xf32> to vector<8x16x1xf32>
    %282 = vector.shape_cast %279 : vector<8x16xf32> to vector<8x1x16xf32>
    %283 = vector.broadcast %281 : vector<8x16x1xf32> to vector<8x16x16xf32>
    %284 = vector.broadcast %282 : vector<8x1x16xf32> to vector<8x16x16xf32>
    %285 = arith.mulf %283, %284 : vector<8x16x16xf32>
    %cst_89 = arith.constant dense<0xFF800000> : vector<8x16xf32>
    %286 = vector.multi_reduction <maximumf>, %285, %cst_89 [2] : vector<8x16x16xf32> to vector<8x16xf32>
    %287 = vector.shape_cast %286 : vector<8x16xf32> to vector<8x16x1xf32>
    %288 = vector.broadcast %287 : vector<8x16x1xf32> to vector<8x16x16xf32>
    %289 = arith.subf %285, %288 : vector<8x16x16xf32>
    %290 = math.exp %289 : vector<8x16x16xf32>
    %cst_90 = arith.constant dense<0.000000e+00> : vector<8x16xf32>
    %291 = vector.multi_reduction <add>, %290, %cst_90 [2] : vector<8x16x16xf32> to vector<8x16xf32>
    %292 = vector.shape_cast %280 : vector<8x16xf32> to vector<8x1x16xf32>
    %293 = vector.broadcast %292 : vector<8x1x16xf32> to vector<8x16x16xf32>
    %294 = arith.mulf %290, %293 : vector<8x16x16xf32>
    %cst_91 = arith.constant dense<0.000000e+00> : vector<8x16xf32>
    %295 = vector.multi_reduction <add>, %294, %cst_91 [2] : vector<8x16x16xf32> to vector<8x16xf32>
    %296 = arith.divf %295, %291 : vector<8x16xf32>
    %cst_92 = arith.constant dense<0.000000e+00> : vector<8x16xf32>
    %297 = tpu.matmul %207, %296, %cst_92 {dimension_numbers = #tpu.dot_dimension_numbers<[1], [0], [0], [1], [0, 0, 1, 1], [], []>} : vector<8x8xf32>, vector<8x16xf32>, vector<8x16xf32> -> vector<8x16xf32>
    %298 = arith.addf %276, %297 : vector<8x16xf32>
    %cst_93 = arith.constant dense<0.000000e+00> : vector<16xf32>
    %299 = vector.multi_reduction <add>, %298, %cst_93 [0] : vector<8x16xf32> to vector<16xf32>
    %300 = vector.shape_cast %299 : vector<16xf32> to vector<1x16xf32>
    %cst_94 = arith.constant 8.000000e+00 : f32
    %301 = vector.broadcast %cst_94 : f32 to vector<1x16xf32>
    %302 = arith.divf %300, %301 : vector<1x16xf32>
    %303 = vector.broadcast %302 : vector<1x16xf32> to vector<8x16xf32>
    %304 = arith.subf %298, %303 : vector<8x16xf32>
    %305 = arith.mulf %304, %304 : vector<8x16xf32>
    %cst_95 = arith.constant dense<0.000000e+00> : vector<16xf32>
    %306 = vector.multi_reduction <add>, %305, %cst_95 [0] : vector<8x16xf32> to vector<16xf32>
    %307 = vector.shape_cast %306 : vector<16xf32> to vector<1x16xf32>
    %cst_96 = arith.constant 8.000000e+00 : f32
    %308 = vector.broadcast %cst_96 : f32 to vector<1x16xf32>
    %309 = arith.divf %307, %308 : vector<1x16xf32>
    %cst_97 = arith.constant 9.99999974E-6 : f32
    %310 = vector.broadcast %cst_97 : f32 to vector<1x16xf32>
    %311 = arith.addf %309, %310 : vector<1x16xf32>
    %312 = math.rsqrt %311 : vector<1x16xf32>
    %313 = vector.broadcast %312 : vector<1x16xf32> to vector<8x16xf32>
    %314 = arith.mulf %304, %313 : vector<8x16xf32>
    %315 = vector.broadcast %208 : vector<8x1xf32> to vector<8x16xf32>
    %316 = arith.mulf %314, %315 : vector<8x16xf32>
    %cst_98 = arith.constant dense<0.000000e+00> : vector<32x16xf32>
    %317 = tpu.matmul %209, %316, %cst_98 {dimension_numbers = #tpu.dot_dimension_numbers<[1], [0], [0], [1], [0, 0, 1, 1], [], []>} : vector<32x8xf32>, vector<8x16xf32>, vector<32x16xf32> -> vector<32x16xf32>
    %cst_99 = arith.constant 0.000000e+00 : f32
    %318 = vector.broadcast %cst_99 : f32 to vector<32x16xf32>
    %319 = arith.maximumf %317, %318 : vector<32x16xf32>
    %cst_100 = arith.constant dense<0.000000e+00> : vector<8x16xf32>
    %320 = tpu.matmul %210, %319, %cst_100 {dimension_numbers = #tpu.dot_dimension_numbers<[1], [0], [0], [1], [0, 0, 1, 1], [], []>} : vector<8x32xf32>, vector<32x16xf32>, vector<8x16xf32> -> vector<8x16xf32>
    %321 = arith.addf %316, %320 : vector<8x16xf32>
    %cst_101 = arith.constant dense<0.000000e+00> : vector<16xf32>
    %322 = vector.multi_reduction <add>, %321, %cst_101 [0] : vector<8x16xf32> to vector<16xf32>
    %323 = vector.shape_cast %322 : vector<16xf32> to vector<1x16xf32>
    %cst_102 = arith.constant 8.000000e+00 : f32
    %324 = vector.broadcast %cst_102 : f32 to vector<1x16xf32>
    %325 = arith.divf %323, %324 : vector<1x16xf32>
    %326 = vector.broadcast %325 : vector<1x16xf32> to vector<8x16xf32>
    %327 = arith.subf %321, %326 : vector<8x16xf32>
    %328 = arith.mulf %327, %327 : vector<8x16xf32>
    %cst_103 = arith.constant dense<0.000000e+00> : vector<16xf32>
    %329 = vector.multi_reduction <add>, %328, %cst_103 [0] : vector<8x16xf32> to vector<16xf32>
    %330 = vector.shape_cast %329 : vector<16xf32> to vector<1x16xf32>
    %cst_104 = arith.constant 8.000000e+00 : f32
    %331 = vector.broadcast %cst_104 : f32 to vector<1x16xf32>
    %332 = arith.divf %330, %331 : vector<1x16xf32>
    %cst_105 = arith.constant 9.99999974E-6 : f32
    %333 = vector.broadcast %cst_105 : f32 to vector<1x16xf32>
    %334 = arith.addf %332, %333 : vector<1x16xf32>
    %335 = math.rsqrt %334 : vector<1x16xf32>
    %336 = vector.broadcast %335 : vector<1x16xf32> to vector<8x16xf32>
    %337 = arith.mulf %327, %336 : vector<8x16xf32>
    %338 = vector.broadcast %211 : vector<8x1xf32> to vector<8x16xf32>
    %339 = arith.mulf %337, %338 : vector<8x16xf32>
    %340 = tpu.concatenate %275, %339 in 0 : vector<8x16xf32>, vector<8x16xf32> -> vector<16x16xf32>
    %c328 = arith.constant 328 : index
    %c0_106 = arith.constant 0 : index
    %341 = vector.load %arg1[%c328, %c0_106] : memref<376x128xf32, #tpu.memory_space<vmem>>, vector<16x32xf32>
    %cst_107 = arith.constant dense<0.000000e+00> : vector<16x32xf32>
    %342 = tpu.matmul %340, %341, %cst_107 {dimension_numbers = #tpu.dot_dimension_numbers<[1], [0], [0], [1], [0, 0, 1, 1], [], []>} : vector<16x16xf32>, vector<16x32xf32>, vector<16x32xf32> -> vector<16x32xf32>
    %cst_108 = arith.constant 0.000000e+00 : f32
    %343 = vector.broadcast %cst_108 : f32 to vector<16x32xf32>
    %344 = arith.maximumf %342, %343 : vector<16x32xf32>
    %c344 = arith.constant 344 : index
    %c0_109 = arith.constant 0 : index
    %345 = vector.load %arg1[%c344, %c0_109] : memref<376x128xf32, #tpu.memory_space<vmem>>, vector<32x24xf32>
    %cst_110 = arith.constant dense<0.000000e+00> : vector<16x24xf32>
    %346 = tpu.matmul %344, %345, %cst_110 {dimension_numbers = #tpu.dot_dimension_numbers<[1], [0], [0], [1], [0, 0, 1, 1], [], []>} : vector<16x32xf32>, vector<32x24xf32>, vector<16x24xf32> -> vector<16x24xf32>
    %c0_111 = arith.constant 0 : index
    %c0_112 = arith.constant 0 : index
    %347 = vector.load %arg2[%c0_111, %c0_112] : memref<16x24xf32, #tpu.memory_space<vmem>>, vector<16x24xf32>
    tpu.vector_store %arg2[%c0_111, %c0_112], %346 {strides = array<i32>} : memref<16x24xf32, #tpu.memory_space<vmem>>, vector<16x24xf32>,
    %c0_113 = arith.constant 0 : index
    %c0_114 = arith.constant 0 : index
    %348 = vector.load %arg3[%c0_113, %c0_114] : memref<16x16xf32, #tpu.memory_space<vmem>>, vector<16x16xf32>
    tpu.vector_store %arg3[%c0_113, %c0_114], %95 {strides = array<i32>} : memref<16x16xf32, #tpu.memory_space<vmem>>, vector<16x16xf32>,
    return
  }
}

</mosaic_0001>

<bundles_post_ra>
// kernel: tpu_custom_call.1
= control target key start
LH: loop header
LB: loop body
LE: loop exit
PB: predicated region body
PF: predicated region fallthrough
CT: control target
= control target key end

     0   :  { %9 = vsyncpa [#allocation3], 0  ;;  %s6165_s0 = inlined_call_operand.hbm [shape: f32[8,16], index: 0, kind: input, shape index: {}]   ;;  %s6166_s1 = inlined_call_operand.hbm [shape: f32[376,128], index: 1, kind: input, shape index: {}]   ;;  %s6167_s2 = inlined_call_operand.hbm [shape: f32[16,24], index: 2, kind: output, shape index: {0}]   ;;  %s6168_s3 = inlined_call_operand.hbm [shape: f32[16,16], index: 3, kind: output, shape index: {1}]  }
   0x1   :  { %10 = vsyncpa [#allocation6], 0 }
   0x2   :  { %11 = vsyncpa [#allocation4], 0 }
   0x3   :  { %12 = vsyncpa [#allocation9], 0  ;;  %s4985_s12 = smov [#allocation2]   ;;  %s4986_s14 = smov [#allocation5]  }
   0x4   :  { %s19_s13 = sshll.u32 %s4985_s12, 4  ;;  %s28_s15 = sshll.u32 %s4986_s14, 4  ;;  %s20_s13 = int_to_ptr.vmem [resolvable:$true] %s19_s13  ;;  %s5018_s15 = int_to_ptr.vmem [resolvable:$true] %s28_s15 }
   0x5   :  { %s4889_s18 = scalar_lea.hbm %s6165_s0, 128 }
   0x6   :  { %p4890_p0 = scmp.ne.s32.totalorder %s6165_s0, %s4889_s18  ;;  %p4893_p1 = scmp.lt.u32.totalorder %s4889_s18, %s6165_s0 }
   0x8   :  { %p4895_p2 = pnand %p4893_p1, %p4890_p0 }
   0xa   :  { %4898 = shalt.err (!%p4895_p2)
}
   0xb   :  { %s4899_s23 = scalar_lea.vmem %s20_s13, 128  ;;  %p4904_p4 = scmp.lt.s32.totalorder %s20_s13, %s20_s13 }
   0xc   :  { %p4900_p3 = scmp.ne.s32.totalorder %s20_s13, %s4899_s23  ;;  %p4905_p5 = scmp.lt.s32.totalorder %s4899_s23, %s4899_s23 }
   0xe   :  { %p4906_p6 = por %p4905_p5, %p4904_p4 }
  0x10   :  { %p4907_p7 = pnand %p4906_p6, %p4900_p3 }
  0x12   :  { %4910 = shalt.err (!%p4907_p7)
}
  0x13   :  { %22 = dma.hbm_to_vmem [thread:$0]  %s6165_s0, 128, %s20_s13, [#allocation3]  }
  0x14   :  { %s4911_s28 = scalar_lea.hbm %s6166_s1, 6016 }
  0x15   :  { %p4912_p8 = scmp.ne.s32.totalorder %s6166_s1, %s4911_s28  ;;  %p4915_p9 = scmp.lt.u32.totalorder %s4911_s28, %s6166_s1 }
  0x17   :  { %p4917_p10 = pnand %p4915_p9, %p4912_p8 }
  0x19   :  { %4920 = shalt.err (!%p4917_p10)
}
  0x1a   :  { %s4921_s6 = scalar_lea.vmem %s5018_s15, 6016  ;;  %p4926_p12 = scmp.lt.s32.totalorder %s5018_s15, %s5018_s15 }
  0x1b   :  { %p4922_p11 = scmp.ne.s32.totalorder %s5018_s15, %s4921_s6  ;;  %p4927_p13 = scmp.lt.s32.totalorder %s4921_s6, %s4921_s6 }
  0x1d   :  { %p4928_p0 = por %p4927_p13, %p4926_p12 }
  0x1f   :  { %p4929_p1 = pnand %p4928_p0, %p4922_p11 }
  0x21   :  { %4932 = shalt.err (!%p4929_p1)
}
  0x22   :  { %s4987_s0 = smov 128   ;;  %s4988_s7 = smov 8  }
  0x23   :  { %34 = dma.hbm_to_vmem [thread:$0]  %s6166_s1, 6016, %s5018_s15, [#allocation6], %s4987_s0, %s4987_s0, %s4988_s7  }
  0x24   :  { %4977 = dma.done.wait [#allocation3], 128  }
  0x25   :  { %4978 = vsyncadd [#allocation3], 4294967168 }
  0x26   :  { %4979 = dma.done.wait [#allocation6], 6016  }
  0x27   :  { %4980 = vsyncadd [#allocation6], 4294961280  ;;  %v6170_v0 = vmov 0.0|0.0   ;;  %vm4990_vm0 = vmmov 0   ;;  %v6172_v1 = vmov 0.0   ;;  %v42_v2 = vld [vmem:[#allocation5] sm:$0xff]  ;;  %v6169_v14 = vlaneseq }
  0x28   :  { %4554 = vmatprep.subr.bf16.mxu1 %v6170_v0  ;;  %4387 = vmatprep.mubr.msk.f32.mxu1 %vm4990_vm0, %v6172_v1  ;;  %v43_v3 = vld [vmem:[#allocation5 + $0x8] sm:$0xff]  ;;  %v5058_v5 = vld [vmem:[#allocation2] sm:$0xff]  ;;  %vm54_vm1 = vcmask 130048   ;;  %s4992_s1 = smov 96   ;;  %s4993_s10 = smov 112   ;;  %v44_v9 = vld [vmem:[#allocation5 + $0x10] sm:$0xff] }
  0x29   :  { %4560 = vmatprep.subr.bf16.mxu0 %v6170_v0  ;;  %4401 = vmatprep.mubr.msk.f32.mxu0 %vm4990_vm0, %v6172_v1  ;;  %v4555_v4 = vpack.c.bf16 %v43_v3, %v42_v2  ;;  %v45_v10 = vld [vmem:[#allocation5 + $0x18] sm:$0xff]  ;;  %v4994_v12 = vmov 1966171168   ;;  %v5071_v16 = vshrl.u32 %v6169_v14, 7  ;;  %vm180_vm2 = vcmask 125952   ;;  %s4996_s11 = smov [#allocation8]  }
  0x2a   :  { %v4558_v11 = vpack.c.bf16 %v45_v10, %v44_v9  ;;  %v130_v13 = vunpack.c.l.s4 %v4994_v12  ;;  %vm460_vm3 = vcmask 1041409   ;;  %vm462_vm4 = vcmask 1042434   ;;  %s4237_s12 = sshll.u32 %s4996_s11, 4  ;;  %s4238_s12 = int_to_ptr.vmem [resolvable:$true] %s4237_s12 }
  0x2b   :  { %4556 = vmatpush3.bf16.msra.mxu1 %v4555_v4  ;;  %v5083_v27 = vsub.s32 0, %v5071_v16  ;;  %vm471_vm5 = vcmask 1045509   ;;  %vm473_vm6 = vcmask 1046534   ;;  %vm464_vm7 = vcmask 1043459   ;;  %s4933_s13 = scalar_lea.vmem %s4238_s12, 256  ;;  %p4938_p3 = scmp.lt.s32.totalorder %s4238_s12, %s4238_s12 }
  0x2c   :  { %4557 = vmatprep.subr.bf16.mxu1 %v6170_v0  ;;  %v131_v15 = vunpack.c.0.s8 %v130_v13  ;;  %vm475_vm8 = vcmask 1047559   ;;  %vm478_vm9 = vcmask 1043456   ;;  %vm647_vm10 = vcmask 261120   ;;  %p4934_p2 = scmp.ne.s32.totalorder %s4238_s12, %s4933_s13  ;;  %p4939_p4 = scmp.lt.s32.totalorder %s4933_s13, %s4933_s13 }
  0x2d   :  { %vm744_vm11 = vcmask 64512   ;;  %vm1711_vm12 = vcmask 1044484   ;;  %vm2693_vm13 = vcmask 130112  }
  0x2e   :  { %4388 = vmatmul.mubr.msk.f32.vlgmr.msra.gmra.mrb[0].mxu1 %vm54_vm1, %v5058_v5  ;;  %v5074_v17 = vsub.s32 %v131_v15, %v5071_v16  ;;  %p4940_p5 = por %p4939_p4, %p4938_p3 }
  0x2f   :  { %4394 = vmatprep.mubr.msk.f32.mxu1 %vm4990_vm0, %v6172_v1  ;;  %4559 = vmatpush3.bf16.msra.mxu1 %v4558_v11 }
  0x30   :  { %4563 = vmatprep.subr.bf16.mxu1 %v6170_v0  ;;  %p4941_p6 = pnand %p4940_p5, %p4934_p2 }
 0x101   :  { %v124_v6 = vpop.f32.mrb[0].mxu1 }
 0x102   :  { %249 = vrot.lane.b32.xlu1 %v124_v6, %s4992_s1  ;;  %173 = vrot.lane.b32.xlu0 %v124_v6, %s4993_s10  ;;  %v4389_v7 = vpop.f32.mrb[1].mxu1  ;;  %v337_v8 = vrot.slane %v124_v6, 4  ;;  %v292_v18 = vcombine.high %v124_v6, %v124_v6  ;;  %v135_v19 = vrot.slane %v124_v6, %v5074_v17 }
 0x104   :  { %v299_v20 = vrot.slane %v292_v18, %v5074_v17  ;;  %v136_v21 = vcombine.high %v135_v19, %v135_v19  ;;  %v143_v23 = vrot.slane %v135_v19, %v5074_v17 }
 0x106   :  { %413 = vrot.lane.b32.xlu1 %v337_v8, %s4992_s1  ;;  %338 = vrot.lane.b32.xlu0 %v337_v8, %s4993_s10  ;;  %v300_v22 = vcombine.high %v299_v20, %v299_v20  ;;  %v150_v24 = vrot.slane %v136_v21, %v5074_v17  ;;  %v307_v25 = vrot.slane %v299_v20, %v5074_v17 }
 0x107   :  { %v151_v28 = vcombine.high %v143_v23, %v143_v23  ;;  %v156_v32 = vrot.slane %v143_v23, %v5083_v27 }
 0x108   :  { %v314_v26 = vrot.slane %v300_v22, %v5074_v17  ;;  %v152_v29 = vcombine.high %v150_v24, %v150_v24  ;;  %v315_v30 = vcombine.high %v307_v25, %v307_v25  ;;  %v160_v33 = vrot.slane %v150_v24, %v5083_v27 }
 0x109   :  { %v164_v34 = vrot.slane %v151_v28, %v5083_v27  ;;  %v320_v41 = vrot.slane %v307_v25, %v5083_v27 }
 0x10a   :  { %v316_v31 = vcombine.high %v314_v26, %v314_v26  ;;  %v168_v35 = vrot.slane %v152_v29, %v5083_v27  ;;  %v324_v42 = vrot.slane %v314_v26, %v5083_v27  ;;  %v328_v43 = vrot.slane %v315_v30, %v5083_v27 }
 0x10c   :  { %v332_v44 = vrot.slane %v316_v31, %v5083_v27 }
 0x174   :  { %v174_v36 = vpop.permute.xlu0 %173 }
 0x175   :  { %v5089_v37 = vmul.f32 %v174_v36, %v156_v32  ;;  %v5091_v38 = vmul.f32 %v174_v36, %v160_v33  ;;  %v5093_v39 = vmul.f32 %v174_v36, %v164_v34  ;;  %v5095_v40 = vmul.f32 %v174_v36, %v168_v35 }
 0x177   :  { %v181_v45 = vsel %vm180_vm2, %v5089_v37, -inf  ;;  %v188_v46 = vsel %vm180_vm2, %v5091_v38, -inf  ;;  %v195_v47 = vsel %vm180_vm2, %v5093_v39, -inf  ;;  %v202_v48 = vsel %vm180_vm2, %v5095_v40, -inf }
 0x178   :  { %v182_v49 = vrot.slane %v181_v45, 4  ;;  %v189_v50 = vrot.slane %v188_v46, 4  ;;  %v196_v51 = vrot.slane %v195_v47, 4  ;;  %v203_v52 = vrot.slane %v202_v48, 4  ;;  %v339_v53 = vpop.permute.xlu0 %338 }
 0x179   :  { %v5109_v54 = vmul.f32 %v339_v53, %v320_v41  ;;  %v5111_v55 = vmul.f32 %v339_v53, %v324_v42  ;;  %v5113_v56 = vmul.f32 %v339_v53, %v328_v43  ;;  %v5115_v57 = vmul.f32 %v339_v53, %v332_v44 }
 0x17a   :  { %v183_v58 = vmax.f32 %v181_v45, %v182_v49  ;;  %v190_v59 = vmax.f32 %v188_v46, %v189_v50  ;;  %v197_v60 = vmax.f32 %v195_v47, %v196_v51  ;;  %v204_v61 = vmax.f32 %v202_v48, %v203_v52 }
 0x17b   :  { %v345_v62 = vsel %vm180_vm2, %v5109_v54, -inf  ;;  %v352_v63 = vsel %vm180_vm2, %v5111_v55, -inf  ;;  %v359_v2 = vsel %vm180_vm2, %v5113_v56, -inf  ;;  %v366_v3 = vsel %vm180_vm2, %v5115_v57, -inf }
 0x17c   :  { %v184_v4 = vrot.slane %v183_v58, 2  ;;  %v191_v6 = vrot.slane %v190_v59, 2  ;;  %v198_v7 = vrot.slane %v197_v60, 2  ;;  %v205_v8 = vrot.slane %v204_v61, 2 }
 0x17d   :  { %v346_v9 = vrot.slane %v345_v62, 4  ;;  %v353_v10 = vrot.slane %v352_v63, 4  ;;  %v360_v11 = vrot.slane %v359_v2, 4  ;;  %v367_v12 = vrot.slane %v366_v3, 4 }
 0x17e   :  { %v185_v13 = vmax.f32 %v183_v58, %v184_v4  ;;  %v192_v15 = vmax.f32 %v190_v59, %v191_v6  ;;  %v199_v18 = vmax.f32 %v197_v60, %v198_v7  ;;  %v206_v19 = vmax.f32 %v204_v61, %v205_v8 }
 0x17f   :  { %v347_v20 = vmax.f32 %v345_v62, %v346_v9  ;;  %v354_v21 = vmax.f32 %v352_v63, %v353_v10  ;;  %v361_v22 = vmax.f32 %v359_v2, %v360_v11  ;;  %v368_v23 = vmax.f32 %v366_v3, %v367_v12  ;;  %v250_v10 = vpop.permute.xlu1 %249 }
 0x180   :  { %v186_v24 = vrot.slane %v185_v13, 1  ;;  %v193_v25 = vrot.slane %v192_v15, 1  ;;  %v200_v26 = vrot.slane %v199_v18, 1  ;;  %v207_v28 = vrot.slane %v206_v19, 1 }
 0x181   :  { %v348_v29 = vrot.slane %v347_v20, 2  ;;  %v355_v30 = vrot.slane %v354_v21, 2  ;;  %v362_v31 = vrot.slane %v361_v22, 2  ;;  %v369_v32 = vrot.slane %v368_v23, 2 }
 0x182   :  { %v187_v33 = vmax.f32 %v185_v13, %v186_v24  ;;  %v194_v34 = vmax.f32 %v192_v15, %v193_v25  ;;  %v201_v35 = vmax.f32 %v199_v18, %v200_v26  ;;  %v208_v36 = vmax.f32 %v206_v19, %v207_v28 }
 0x183   :  { %v349_v41 = vmax.f32 %v347_v20, %v348_v29  ;;  %v356_v42 = vmax.f32 %v354_v21, %v355_v30  ;;  %v363_v43 = vmax.f32 %v361_v22, %v362_v31  ;;  %v370_v44 = vmax.f32 %v368_v23, %v369_v32 }
 0x184   :  { %v209_v45 = vsub.f32 %v5089_v37, %v187_v33  ;;  %v210_v46 = vsub.f32 %v5091_v38, %v194_v34  ;;  %v211_v47 = vsub.f32 %v5093_v39, %v201_v35  ;;  %v212_v48 = vsub.f32 %v5095_v40, %v208_v36 }
 0x185   :  { %v350_v49 = vrot.slane %v349_v41, 1  ;;  %v357_v50 = vrot.slane %v356_v42, 1  ;;  %v364_v51 = vrot.slane %v363_v43, 1  ;;  %v371_v52 = vrot.slane %v370_v44, 1 }
 0x186   :  { %v213_v53 = vmul.f32 1.442695, %v209_v45  ;;  %v215_v58 = vmul.f32 1.442695, %v210_v46  ;;  %v217_v59 = vmul.f32 1.442695, %v211_v47 }
 0x187   :  { %v219_v60 = vmul.f32 1.442695, %v212_v48  ;;  %v351_v61 = vmax.f32 %v349_v41, %v350_v49  ;;  %v358_v62 = vmax.f32 %v356_v42, %v357_v50  ;;  %v365_v63 = vmax.f32 %v363_v43, %v364_v51 }
 0x188   :  { %4636 = vpow2.f32 %v213_v53  ;;  %v372_v2 = vmax.f32 %v370_v44, %v371_v52 }
 0x189   :  { %4638 = vpow2.f32 %v215_v58  ;;  %v373_v37 = vsub.f32 %v5109_v54, %v351_v61  ;;  %v374_v38 = vsub.f32 %v5111_v55, %v358_v62  ;;  %v375_v39 = vsub.f32 %v5113_v56, %v365_v63 }
 0x18a   :  { %4640 = vpow2.f32 %v217_v59  ;;  %v376_v40 = vsub.f32 %v5115_v57, %v372_v2 }
 0x18b   :  { %4642 = vpow2.f32 %v219_v60  ;;  %v377_v3 = vmul.f32 1.442695, %v373_v37  ;;  %v379_v4 = vmul.f32 1.442695, %v374_v38  ;;  %v381_v6 = vmul.f32 1.442695, %v375_v39 }
 0x18c   :  { %v383_v7 = vmul.f32 1.442695, %v376_v40  ;;  %v414_v40 = vpop.permute.xlu1 %413 }
 0x18d   :  { %4644 = vpow2.f32 %v377_v3 }
 0x18e   :  { %4646 = vpow2.f32 %v379_v4 }
 0x18f   :  { %4648 = vpow2.f32 %v381_v6 }
 0x190   :  { %4650 = vpow2.f32 %v383_v7 }
 0x192   :  { %v4637_v8 = vpop.eup %4636 }
 0x193   :  { %v4639_v9 = vpop.eup %4638  ;;  %v221_v54 = vsel %vm180_vm2, %v4637_v8, 0.0  ;;  %v252_v12 = vmul.f32 %v4637_v8, %v250_v10 }
 0x194   :  { %v4641_v55 = vpop.eup %4640  ;;  %v222_v11 = vrot.slane %v221_v54, 4  ;;  %v228_v56 = vsel %vm180_vm2, %v4639_v9, 0.0  ;;  %v253_v24 = vmul.f32 %v4639_v9, %v250_v10 }
 0x195   :  { %v4643_v57 = vpop.eup %4642  ;;  %v229_v13 = vrot.slane %v228_v56, 4  ;;  %v235_v15 = vsel %vm180_vm2, %v4641_v55, 0.0  ;;  %v254_v25 = vmul.f32 %v4641_v55, %v250_v10  ;;  %v256_v31 = vsel %vm180_vm2, %v252_v12, 0.0 }
 0x196   :  { %v223_v18 = vadd.f32 %v222_v11, %v221_v54  ;;  %v236_v19 = vrot.slane %v235_v15, 4  ;;  %v242_v20 = vsel %vm180_vm2, %v4643_v57, 0.0  ;;  %v257_v61 = vrot.slane %v256_v31, 4 }
 0x197   :  { %v4645_v21 = vpop.eup %4644  ;;  %v230_v22 = vadd.f32 %v229_v13, %v228_v56  ;;  %v243_v23 = vrot.slane %v242_v20, 4  ;;  %v255_v2 = vmul.f32 %v4643_v57, %v250_v10  ;;  %v263_v37 = vsel %vm180_vm2, %v253_v24, 0.0 }
 0x198   :  { %v4647_v26 = vpop.eup %4646  ;;  %v224_v28 = vrot.slane %v223_v18, 2  ;;  %v237_v29 = vadd.f32 %v236_v19, %v235_v15  ;;  %v385_v30 = vsel %vm180_vm2, %v4645_v21, 0.0  ;;  %v416_v9 = vmul.f32 %v4645_v21, %v414_v40 }
 0x199   :  { %v4649_v32 = vpop.eup %4648  ;;  %v231_v33 = vrot.slane %v230_v22, 2  ;;  %v244_v34 = vadd.f32 %v243_v23, %v242_v20  ;;  %v386_v35 = vrot.slane %v385_v30, 4  ;;  %v392_v36 = vsel %vm180_vm2, %v4647_v26, 0.0 }
 0x19a   :  { %v4651_v41 = vpop.eup %4650  ;;  %v225_v42 = vadd.f32 %v224_v28, %v223_v18  ;;  %v238_v43 = vrot.slane %v237_v29, 2  ;;  %v393_v44 = vrot.slane %v392_v36, 4  ;;  %v399_v45 = vsel %vm180_vm2, %v4649_v32, 0.0 }
 0x19b   :  { %v232_v46 = vadd.f32 %v231_v33, %v230_v22  ;;  %v245_v47 = vrot.slane %v244_v34, 2  ;;  %v387_v48 = vadd.f32 %v386_v35, %v385_v30  ;;  %v400_v49 = vrot.slane %v399_v45, 4 }
 0x19c   :  { %v226_v50 = vrot.slane %v225_v42, 1  ;;  %v239_v51 = vadd.f32 %v238_v43, %v237_v29  ;;  %v394_v52 = vadd.f32 %v393_v44, %v392_v36  ;;  %v406_v53 = vsel %vm180_vm2, %v4651_v41, 0.0 }
 0x19d   :  { %v233_v58 = vrot.slane %v232_v46, 1  ;;  %v388_v59 = vrot.slane %v387_v48, 2  ;;  %v401_v60 = vadd.f32 %v400_v49, %v399_v45  ;;  %v407_v63 = vrot.slane %v406_v53, 4 }
 0x19e   :  { %v395_v62 = vrot.slane %v394_v52, 2  ;;  %v240_v38 = vrot.slane %v239_v51, 1  ;;  %v246_v39 = vadd.f32 %v245_v47, %v244_v34  ;;  %v227_v6 = vadd.f32 %v226_v50, %v225_v42 }
 0x19f   :  { %v389_v3 = vadd.f32 %v388_v59, %v387_v48  ;;  %v402_v4 = vrot.slane %v401_v60, 2  ;;  %v408_v8 = vadd.f32 %v407_v63, %v406_v53  ;;  %v234_v54 = vadd.f32 %v233_v58, %v232_v46 }
 0x1a0   :  { %v396_v7 = vadd.f32 %v395_v62, %v394_v52  ;;  %v417_v11 = vmul.f32 %v4647_v26, %v414_v40  ;;  %v258_v56 = vadd.f32 %v257_v61, %v256_v31  ;;  %v418_v13 = vmul.f32 %v4649_v32, %v414_v40 }
 0x1a1   :  { %v403_v55 = vadd.f32 %v402_v4, %v401_v60  ;;  %v409_v12 = vrot.slane %v408_v8, 2  ;;  %v264_v15 = vrot.slane %v263_v37, 4  ;;  %v270_v10 = vsel %vm180_vm2, %v254_v25, 0.0 }
 0x1a2   :  { %v390_v57 = vrot.slane %v389_v3, 1  ;;  %v241_v18 = vadd.f32 %v240_v38, %v239_v51  ;;  %v247_v19 = vrot.slane %v246_v39, 1  ;;  %v259_v20 = vrot.slane %v258_v56, 2 }
 0x1a3   :  { %v397_v22 = vrot.slane %v396_v7, 1  ;;  %v410_v23 = vadd.f32 %v409_v12, %v408_v8  ;;  %v265_v24 = vadd.f32 %v264_v15, %v263_v37  ;;  %v271_v28 = vrot.slane %v270_v10, 4 }
 0x1a4   :  { %v404_v29 = vrot.slane %v403_v55, 1  ;;  %v260_v30 = vadd.f32 %v259_v20, %v258_v56  ;;  %v277_v21 = vsel %vm180_vm2, %v255_v2, 0.0  ;;  %4652 = vrcp.f32 %v227_v6 }
 0x1a5   :  { %v266_v26 = vrot.slane %v265_v24, 2  ;;  %v272_v31 = vadd.f32 %v271_v28, %v270_v10  ;;  %v278_v33 = vrot.slane %v277_v21, 4  ;;  %4654 = vrcp.f32 %v234_v54 }
 0x1a6   :  { %v391_v32 = vadd.f32 %v390_v57, %v389_v3  ;;  %v248_v34 = vadd.f32 %v247_v19, %v246_v39  ;;  %v411_v25 = vrot.slane %v410_v23, 1  ;;  %v419_v35 = vmul.f32 %v4651_v41, %v414_v40 }
 0x1a7   :  { %v267_v36 = vadd.f32 %v266_v26, %v265_v24  ;;  %v273_v42 = vrot.slane %v272_v31, 2  ;;  %v279_v43 = vadd.f32 %v278_v33, %v277_v21  ;;  %4656 = vrcp.f32 %v241_v18 }
 0x1a8   :  { %v398_v44 = vadd.f32 %v397_v22, %v396_v7  ;;  %v405_v45 = vadd.f32 %v404_v29, %v403_v55  ;;  %v420_v46 = vsel %vm180_vm2, %v416_v9, 0.0  ;;  %v427_v47 = vsel %vm180_vm2, %v417_v11, 0.0 }
 0x1a9   :  { %v261_v48 = vrot.slane %v260_v30, 1  ;;  %v274_v49 = vadd.f32 %v273_v42, %v272_v31  ;;  %v412_v50 = vadd.f32 %v411_v25, %v410_v23  ;;  %v421_v51 = vrot.slane %v420_v46, 4 }
 0x1aa   :  { %v428_v52 = vrot.slane %v427_v47, 4  ;;  %v434_v53 = vsel %vm180_vm2, %v418_v13, 0.0  ;;  %v441_v58 = vsel %vm180_vm2, %v419_v35, 0.0  ;;  %4658 = vrcp.f32 %v391_v32 }
 0x1ab   :  { %v268_v41 = vrot.slane %v267_v36, 1  ;;  %v280_v59 = vrot.slane %v279_v43, 2  ;;  %4660 = vrcp.f32 %v248_v34  ;;  %v422_v60 = vadd.f32 %v421_v51, %v420_v46 }
 0x1ac   :  { %v429_v61 = vadd.f32 %v428_v52, %v427_v47  ;;  %v435_v62 = vrot.slane %v434_v53, 4  ;;  %v442_v63 = vrot.slane %v441_v58, 4  ;;  %4662 = vrcp.f32 %v398_v44 }
 0x1ad   :  { %v275_v2 = vrot.slane %v274_v49, 1  ;;  %v423_v37 = vrot.slane %v422_v60, 2  ;;  %4664 = vrcp.f32 %v405_v45  ;;  %v262_v6 = vadd.f32 %v261_v48, %v260_v30 }
 0x1ae   :  { %v4653_v38 = vpop.eup %4652  ;;  %v430_v39 = vrot.slane %v429_v61, 2  ;;  %v436_v40 = vadd.f32 %v435_v62, %v434_v53  ;;  %v443_v3 = vadd.f32 %v442_v63, %v441_v58  ;;  %4666 = vrcp.f32 %v412_v50 }
 0x1af   :  { %v4655_v4 = vpop.eup %4654  ;;  %v269_v7 = vadd.f32 %v268_v41, %v267_v36  ;;  %v281_v8 = vadd.f32 %v280_v59, %v279_v43  ;;  %v424_v9 = vadd.f32 %v423_v37, %v422_v60  ;;  %v285_v12 = vmul.f32 %v4653_v38, %v262_v6  ;;  %v48_v37 = vld [vmem:[#allocation5 + $0x30] sm:$0xff] }
 0x1b0   :  { %v431_v54 = vadd.f32 %v430_v39, %v429_v61  ;;  %v437_v55 = vrot.slane %v436_v40, 2  ;;  %v444_v11 = vrot.slane %v443_v3, 2  ;;  %v276_v10 = vadd.f32 %v275_v2, %v274_v49  ;;  %v47_v2 = vld [vmem:[#allocation5 + $0x28] sm:$0xff]  ;;  %v49_v39 = vld [vmem:[#allocation5 + $0x38] sm:$0xff] }
 0x1b1   :  { %v4657_v56 = vpop.eup %4656  ;;  %v287_v13 = vmul.f32 %v4655_v4, %v269_v7  ;;  %v425_v15 = vrot.slane %v424_v9, 1  ;;  %v282_v20 = vrot.slane %v281_v8, 1  ;;  %v4561_v38 = vpack.c.bf16 %v48_v37, %v47_v2 }
 0x1b2   :  { %v432_v57 = vrot.slane %v431_v54, 1  ;;  %v438_v18 = vadd.f32 %v437_v55, %v436_v40  ;;  %v445_v19 = vadd.f32 %v444_v11, %v443_v3  ;;  %v289_v24 = vmul.f32 %v4657_v56, %v276_v10  ;;  %v50_v40 = vld [vmem:[#allocation5 + $0x40] sm:$0xff]  ;;  %v51_v55 = vld [vmem:[#allocation5 + $0x48] sm:$0xff]  ;;  %v52_v11 = vld [vmem:[#allocation5 + $0x50] sm:$0xff] }
 0x1b3   :  { %v426_v22 = vadd.f32 %v425_v15, %v424_v9  ;;  %v461_v31 = vsel %vm460_vm3, %v287_v13, %v285_v12  ;;  %v283_v25 = vadd.f32 %v282_v20, %v281_v8  ;;  %4562 = vmatpush3.bf16.msra.mxu0 %v4561_v38  ;;  %v4564_v3 = vpack.c.bf16 %v50_v40, %v49_v39  ;;  %v4256_v8 = vld [vmem:[#allocation5 + $0x20] ss:$0 sm:$0xff] }
 0x1b4   :  { %v4659_v23 = vpop.eup %4658  ;;  %v439_v28 = vrot.slane %v438_v18, 1  ;;  %v446_v29 = vrot.slane %v445_v19, 1  ;;  %v433_v21 = vadd.f32 %v432_v57, %v431_v54  ;;  %v463_v44 = vsel %vm462_vm4, %v289_v24, %v461_v31 }
 0x1b5   :  { %v4661_v30 = vpop.eup %4660  ;;  %v449_v26 = vmul.f32 %v4659_v23, %v426_v22  ;;  %v4567_v56 = vpack.c.bf16 %v52_v11, %v51_v55 }
 0x1b6   :  { %v4663_v33 = vpop.eup %4662  ;;  %v440_v32 = vadd.f32 %v439_v28, %v438_v18  ;;  %v447_v35 = vadd.f32 %v446_v29, %v445_v19  ;;  %v291_v45 = vmul.f32 %v4661_v30, %v283_v25  ;;  %v740_v29 = vld [vmem:[#allocation5 + $0x60] sm:$0xff]  ;;  %v741_v25 = vld [vmem:[#allocation5 + $0x68] sm:$0xff] }
 0x1b7   :  { %v4665_v34 = vpop.eup %4664  ;;  %v451_v36 = vmul.f32 %v4663_v33, %v433_v21  ;;  %v4259_v33 = vld [vmem:[#allocation5 + $0x58] ss:$0 sm:$0xff] }
 0x1b8   :  { %v4667_v42 = vpop.eup %4666  ;;  %v453_v43 = vmul.f32 %v4665_v34, %v440_v32  ;;  %v465_v49 = vsel %vm464_vm7, %v291_v45, %v463_v44 }
 0x1b9   :  { %v455_v46 = vmul.f32 %v4667_v42, %v447_v35  ;;  %v472_v47 = vsel %vm471_vm5, %v451_v36, %v449_v26  ;;  %v742_v35 = vld [vmem:[#allocation5 + $0x70] sm:$0xff]  ;;  %v743_v36 = vld [vmem:[#allocation5 + $0x78] sm:$0xff]  ;;  %v846_v42 = vld [vmem:[#allocation5 + $0x80] sm:$0xff] }
 0x1ba   :  { %v474_v48 = vsel %vm473_vm6, %v453_v43, %v472_v47 }
 0x1bb   :  { %v476_v50 = vsel %vm475_vm8, %v455_v46, %v474_v48 }
 0x1bc   :  { %v479_v51 = vsel %vm478_vm9, %v465_v49, %v476_v50 }
 0x1bd   :  { %4395 = vmatmul.mubr.msk.f32.vlgmr.msra.gmra.mrb[2].mxu1 %vm54_vm1, %v479_v51 }
 0x1be   :  { %4412 = vmatprep.mubr.msk.f32.mxu1 %vm4990_vm0, %v6172_v1  ;;  %4565 = vmatpush3.bf16.msra.mxu1 %v4564_v3 }
 0x1bf   :  { %4566 = vmatprep.subr.bf16.mxu1 %v6170_v0 }
 0x1c2   :  { %4568 = vmatpush3.bf16.msra.mxu1 %v4567_v56 }
 0x290   :  { %v549_v52 = vpop.f32.mrb[2].mxu1 }
 0x291   :  { %v553_v53 = vadd.f32 %v549_v52, %v5058_v5  ;;  %v4396_v58 = vpop.f32.mrb[3].mxu1 }
 0x292   :  { %v967_v58 = vld [vmem:[#allocation5 + $0x90] sm:$0xff] }
 0x293   :  { %v554_v41 = vsel %vm54_vm1, %v553_v53, 0.0 }
 0x294   :  { %555 = vadd.xlane.f32.xlu0 %v554_v41  ;;  %v968_v41 = vld [vmem:[#allocation5 + $0x98] sm:$0xff] }
 0x321   :  { %v556_v59 = vpop.xlane.xlu0 %555 }
 0x322   :  { %v558_v60 = vmul.f32 0.0625, %v556_v59  ;;  %v4577_v59 = vpack.c.bf16 %v968_v41, %v967_v58 }
 0x324   :  { %v559_v61 = vsub.f32 %v553_v53, %v558_v60  ;;  %v847_v53 = vld [vmem:[#allocation5 + $0x88] sm:$0xff]  ;;  %4578 = vmatprep.subr.bf16.mxu1 %v4577_v59 }
 0x326   :  { %v560_v62 = vmul.f32 %v559_v61, %v559_v61 }
 0x328   :  { %v561_v63 = vsel %vm54_vm1, %v560_v62, 0.0 }
 0x329   :  { %562 = vadd.xlane.f32.xlu1 %v561_v63 }
 0x3b6   :  { %v563_v5 = vpop.xlane.xlu1 %562 }
 0x3b7   :  { %v564_v4 = vmul.f32 0.0625, %v563_v5 }
 0x3b9   :  { %v565_v6 = vadd.f32 1e-05, %v564_v4 }
 0x3bb   :  { %4668 = vrsqrt.f32 %v565_v6 }
 0x3c5   :  { %v4669_v7 = vpop.eup %4668 }
 0x3c6   :  { %v567_v9 = vmul.f32 %v4669_v7, %v559_v61 }
 0x3c8   :  { %v572_v54 = vmul.f32 %v4256_v8, %v567_v9 }
 0x3ca   :  { %4402 = vmatmul.mubr.msk.f32.vlgmr.msra.gmra.mrb[0].mxu0 %vm54_vm1, %v572_v54 }
 0x3cb   :  { %4417 = vmatprep.mubr.msk.f32.mxu0 %vm744_vm11, %v740_v29 }
 0x49d   :  { %v642_v12 = vpop.f32.mrb[0].mxu0 }
 0x49e   :  { %v646_v13 = vmax.f32 %v642_v12, 0.0  ;;  %v4403_v15 = vpop.f32.mrb[1].mxu0 }
 0x4a0   :  { %4413 = vmatmul.mubr.msk.f32.vlgmr.msra.gmra.mrb[4].mxu1 %vm647_vm10, %v646_v13 }
 0x4a1   :  { %4580 = vmatpush3.bf16.msra.mxu1 %v4577_v59 }
 0x573   :  { %v717_v10 = vpop.f32.mrb[4].mxu1 }
 0x574   :  { %v721_v57 = vadd.f32 %v717_v10, %v572_v54  ;;  %v4414_v18 = vpop.f32.mrb[5].mxu1 }
 0x576   :  { %v722_v19 = vsel %vm54_vm1, %v721_v57, 0.0 }
 0x577   :  { %723 = vadd.xlane.f32.xlu0 %v722_v19 }
 0x604   :  { %v724_v20 = vpop.xlane.xlu0 %723 }
 0x605   :  { %v725_v22 = vmul.f32 0.0625, %v724_v20 }
 0x607   :  { %v726_v23 = vsub.f32 %v721_v57, %v725_v22 }
 0x609   :  { %v727_v24 = vmul.f32 %v726_v23, %v726_v23 }
 0x60b   :  { %v728_v28 = vsel %vm54_vm1, %v727_v24, 0.0 }
 0x60c   :  { %729 = vadd.xlane.f32.xlu0 %v728_v28 }
 0x699   :  { %v730_v30 = vpop.xlane.xlu0 %729 }
 0x69a   :  { %v731_v21 = vmul.f32 0.0625, %v730_v30 }
 0x69c   :  { %v732_v26 = vadd.f32 1e-05, %v731_v21 }
 0x69e   :  { %4670 = vrsqrt.f32 %v732_v26 }
 0x6a8   :  { %v4671_v31 = vpop.eup %4670 }
 0x6a9   :  { %v734_v32 = vmul.f32 %v4671_v31, %v726_v23 }
 0x6ab   :  { %v739_v34 = vmul.f32 %v4259_v33, %v734_v32 }
 0x6ad   :  { %4415 = vmatprep.subr.mxu0 %v739_v34 }
 0x6ae   :  { %4416 = vmatpush3.msra.mxu0 %v739_v34 }
 0x6af   :  { %4418 = vmatmul.mubr.msk.f32.vlgmr.msra.gmra.mrb[2].mxu0 %vm744_vm11, %v741_v25 }
 0x6b0   :  { %4420 = vmatprep.mubr.msk.f32.mxu0 %vm744_vm11, %v742_v35 }
 0x6b3   :  { %4421 = vmatmul.mubr.msk.f32.gmra.mrb[4].mxu0 %vm744_vm11, %v743_v36  ;;  %v969_v36 = vld [vmem:[#allocation5 + $0xa0] sm:$0xff] }
 0x6b4   :  { %4431 = vmatprep.mubr.msk.f32.mxu0 %vm647_vm10, %v846_v42  ;;  %v970_v42 = vld [vmem:[#allocation5 + $0xa8] sm:$0xff] }
 0x782   :  { %v4419_v43 = vpop.f32.mrb[2].mxu0 }
 0x783   :  { %v843_v44 = vmax.f32 %v4419_v43, 0.0  ;;  %v823_v45 = vpop.f32.mrb[3].mxu0  ;;  %v4581_v43 = vpack.c.bf16 %v970_v42, %v969_v36 }
 0x784   :  { %v842_v46 = vmax.f32 %v823_v45, 0.0 }
 0x785   :  { %4582 = vmatprep.subr.bf16.mxu1 %v4581_v43 }
 0x786   :  { %v4569_v47 = vpack.c.bf16 %v843_v44, %v842_v46  ;;  %v4422_v48 = vpop.f32.mrb[4].mxu0 }
 0x787   :  { %v845_v49 = vmax.f32 %v4422_v48, 0.0  ;;  %v833_v50 = vpop.f32.mrb[5].mxu0 }
 0x788   :  { %v844_v51 = vmax.f32 %v833_v50, 0.0  ;;  %4570 = vmatprep.subr.bf16.mxu0 %v4569_v47 }
 0x789   :  { %4572 = vmatpush3.bf16.msra.mxu0 %v4569_v47 }
 0x78a   :  { %v4573_v52 = vpack.c.bf16 %v845_v49, %v844_v51 }
 0x78c   :  { %4574 = vmatprep.subr.bf16.mxu0 %v4573_v52 }
 0x78d   :  { %4576 = vmatpush3.bf16.msra.mxu0 %v4573_v52 }
 0x790   :  { %4432 = vmatmul.mubr.msk.f32.vlgmr.msra.gmra.mrb[6].mxu0 %vm647_vm10, %v847_v53 }
 0x863   :  { %v4433_v60 = vpop.f32.mrb[6].mxu0 }
 0x864   :  { %v948_v61 = vsel %vm54_vm1, %v4433_v60, -inf  ;;  %4219 = vst.msk [vmem:[#allocation8 + $0x8] sm:$0xff] %vm54_vm1, %v4433_v60  ;;  %v920_v62 = vpop.f32.mrb[7].mxu0 }
 0x865   :  { %v949_v63 = vrot.slane %v948_v61, 4  ;;  %v929_v2 = vsel %vm54_vm1, %v920_v62, -inf  ;;  %4218 = vst.msk [vmem:[#allocation8] sm:$0xff] %vm54_vm1, %v920_v62 }
 0x866   :  { %v930_v37 = vrot.slane %v929_v2, 4 }
 0x867   :  { %v950_v38 = vmax.f32 %v948_v61, %v949_v63 }
 0x868   :  { %v931_v39 = vmax.f32 %v929_v2, %v930_v37 }
 0x869   :  { %v951_v40 = vrot.slane %v950_v38, 2 }
 0x86a   :  { %v932_v3 = vrot.slane %v931_v39, 2 }
 0x86b   :  { %v952_v5 = vmax.f32 %v950_v38, %v951_v40 }
 0x86c   :  { %v933_v4 = vmax.f32 %v931_v39, %v932_v3 }
 0x86d   :  { %v953_v6 = vrot.slane %v952_v5, 1 }
 0x86e   :  { %v934_v7 = vrot.slane %v933_v4, 1 }
 0x86f   :  { %v954_v8 = vmax.f32 %v952_v5, %v953_v6 }
 0x870   :  { %v935_v9 = vmax.f32 %v933_v4, %v934_v7 }
 0x871   :  { %v955_v54 = vsub.f32 %v4433_v60, %v954_v8 }
 0x872   :  { %v936_v55 = vsub.f32 %v920_v62, %v935_v9 }
 0x873   :  { %v956_v11 = vmul.f32 1.442695, %v955_v54 }
 0x874   :  { %v937_v56 = vmul.f32 1.442695, %v936_v55 }
 0x875   :  { %4672 = vpow2.f32 %v956_v11 }
 0x876   :  { %4674 = vpow2.f32 %v937_v56 }
 0x87f   :  { %v4673_v12 = vpop.eup %4672 }
 0x880   :  { %v4675_v13 = vpop.eup %4674  ;;  %v958_v15 = vsel %vm54_vm1, %v4673_v12, 0.0 }
 0x881   :  { %v959_v10 = vrot.slane %v958_v15, 4  ;;  %v939_v57 = vsel %vm54_vm1, %v4675_v13, 0.0 }
 0x882   :  { %v940_v18 = vrot.slane %v939_v57, 4 }
 0x883   :  { %v960_v19 = vadd.f32 %v959_v10, %v958_v15 }
 0x884   :  { %v941_v20 = vadd.f32 %v940_v18, %v939_v57 }
 0x885   :  { %v961_v22 = vrot.slane %v960_v19, 2 }
 0x886   :  { %v942_v23 = vrot.slane %v941_v20, 2 }
 0x887   :  { %v962_v24 = vadd.f32 %v961_v22, %v960_v19 }
 0x888   :  { %v943_v28 = vadd.f32 %v942_v23, %v941_v20 }
 0x889   :  { %v963_v29 = vrot.slane %v962_v24, 1 }
 0x88a   :  { %v944_v30 = vrot.slane %v943_v28, 1 }
 0x88b   :  { %v964_v21 = vadd.f32 %v963_v29, %v962_v24 }
 0x88c   :  { %v945_v26 = vadd.f32 %v944_v30, %v943_v28 }
 0x88d   :  { %4676 = vrcp.f32 %v964_v21 }
 0x88e   :  { %4678 = vrcp.f32 %v945_v26 }
 0x897   :  { %v4677_v31 = vpop.eup %4676 }
 0x898   :  { %v4679_v33 = vpop.eup %4678  ;;  %v5180_v34 = vmul.f32 %v4677_v31, %v4673_v12 }
 0x899   :  { %v5178_v32 = vmul.f32 %v4679_v33, %v4675_v13 }
 0x89b   :  { %4438 = vmatprep.mubr.msk.f32.mxu1 %vm54_vm1, %v5178_v32 }
 0x89c   :  { %4439 = vmatmul.mubr.msk.f32.vlgmr.msra.gmra.mrb[6].mxu1 %vm54_vm1, %v5180_v34 }
 0x89d   :  { %4584 = vmatpush3.bf16.msra.mxu1 %v4581_v43 }
 0x96f   :  { %v4440_v25 = vpop.f32.mrb[6].mxu1 }
 0x970   :  { %1470 = vrot.lane.b32.xlu0 %v4440_v25, %s4993_s10  ;;  %v1051_v35 = vpop.f32.mrb[7].mxu1  ;;  %v1381_v44 = vcombine.high %v4440_v25, %v4440_v25  ;;  %v1388_v45 = vrot.slane %v4440_v25, %v5074_v17 }
 0x971   :  { %1150 = vrot.lane.b32.xlu1 %v1051_v35, %s4993_s10  ;;  %v1061_v46 = vcombine.high %v1051_v35, %v1051_v35  ;;  %v1068_v49 = vrot.slane %v1051_v35, %v5074_v17 }
 0x972   :  { %v1395_v47 = vrot.slane %v1381_v44, %v5074_v17  ;;  %v1396_v48 = vcombine.high %v1388_v45, %v1388_v45  ;;  %v1404_v52 = vrot.slane %v1388_v45, %v5074_v17 }
 0x973   :  { %v1075_v50 = vrot.slane %v1061_v46, %v5074_v17  ;;  %v1076_v41 = vcombine.high %v1068_v49, %v1068_v49  ;;  %v5199_v61 = vrot.slane %v1068_v49, %v5074_v17 }
 0x974   :  { %v1397_v51 = vcombine.high %v1395_v47, %v1395_v47  ;;  %v1411_v53 = vrot.slane %v1395_v47, %v5074_v17  ;;  %v1418_v58 = vrot.slane %v1396_v48, %v5074_v17  ;;  %v1426_v62 = vcombine.high %v1404_v52, %v1404_v52 }
 0x975   :  { %1297 = vrot.lane.b32.xlu1 %v1051_v35, %s4992_s1  ;;  %v1077_v59 = vcombine.high %v1075_v50, %v1075_v50  ;;  %v5202_v37 = vrot.slane %v1075_v50, %v5074_v17  ;;  %v5205_v38 = vrot.slane %v1076_v41, %v5074_v17  ;;  %v1106_v3 = vcombine.high %v5199_v61, %v5199_v61 }
 0x976   :  { %v1425_v60 = vrot.slane %v1397_v51, %v5074_v17  ;;  %v1427_v63 = vcombine.high %v1411_v53, %v1411_v53  ;;  %v1428_v2 = vcombine.high %v1418_v58, %v1418_v58  ;;  %v1433_v5 = vrot.slane %v1404_v52, %v5083_v27 }
 0x977   :  { %v5208_v39 = vrot.slane %v1077_v59, %v5074_v17  ;;  %v1437_v4 = vrot.slane %v1418_v58, %v5083_v27  ;;  %v1441_v6 = vrot.slane %v1426_v62, %v5083_v27  ;;  %v1449_v8 = vrot.slane %v1411_v53, %v5083_v27 }
 0x978   :  { %v1429_v40 = vcombine.high %v1425_v60, %v1425_v60  ;;  %v1445_v7 = vrot.slane %v1428_v2, %v5083_v27  ;;  %v1453_v9 = vrot.slane %v1425_v60, %v5083_v27  ;;  %v1457_v54 = vrot.slane %v1427_v63, %v5083_v27 }
 0x979   :  { %1617 = vrot.lane.b32.xlu1 %v4440_v25, %s4992_s1  ;;  %v1107_v55 = vcombine.high %v5202_v37, %v5202_v37  ;;  %v1108_v11 = vcombine.high %v5205_v38, %v5205_v38  ;;  %v1109_v56 = vcombine.high %v5208_v39, %v5208_v39  ;;  %v1113_v12 = vrot.slane %v5199_v61, %v5083_v27 }
 0x97a   :  { %v1461_v13 = vrot.slane %v1429_v40, %v5083_v27  ;;  %v1117_v15 = vrot.slane %v5205_v38, %v5083_v27  ;;  %v5231_v10 = vrot.slane %v1106_v3, %v5083_v27  ;;  %v1129_v57 = vrot.slane %v5202_v37, %v5083_v27 }
 0x97b   :  { %v1141_v61 = vrot.slane %v1109_v56, %v5083_v27 }
 0x9e2   :  { %v1471_v18 = vpop.permute.xlu0 %1470 }
 0x9e3   :  { %v5235_v19 = vmul.f32 %v1471_v18, %v1433_v5  ;;  %v5237_v20 = vmul.f32 %v1471_v18, %v1437_v4  ;;  %v5239_v22 = vmul.f32 %v1471_v18, %v1441_v6  ;;  %v5241_v23 = vmul.f32 %v1471_v18, %v1445_v7 }
 0x9e4   :  { %v5243_v24 = vmul.f32 %v1471_v18, %v1449_v8  ;;  %v5245_v28 = vmul.f32 %v1471_v18, %v1453_v9  ;;  %v5247_v29 = vmul.f32 %v1471_v18, %v1457_v54  ;;  %v5249_v30 = vmul.f32 %v1471_v18, %v1461_v13 }
 0x9e5   :  { %v1481_v21 = vsel %vm54_vm1, %v5235_v19, -inf  ;;  %v1488_v26 = vsel %vm54_vm1, %v5237_v20, -inf  ;;  %v1495_v31 = vsel %vm54_vm1, %v5239_v22, -inf  ;;  %v1502_v33 = vsel %vm54_vm1, %v5241_v23, -inf }
 0x9e6   :  { %v1482_v25 = vrot.slane %v1481_v21, 4  ;;  %v1489_v35 = vrot.slane %v1488_v26, 4  ;;  %v1496_v36 = vrot.slane %v1495_v31, 4  ;;  %v1503_v42 = vrot.slane %v1502_v33, 4 }
 0x9e7   :  { %v1509_v43 = vsel %vm54_vm1, %v5243_v24, -inf  ;;  %v1516_v44 = vsel %vm54_vm1, %v5245_v28, -inf  ;;  %v1523_v45 = vsel %vm54_vm1, %v5247_v29, -inf  ;;  %v1530_v46 = vsel %vm54_vm1, %v5249_v30, -inf }
 0x9e8   :  { %v1483_v47 = vmax.f32 %v1481_v21, %v1482_v25  ;;  %v1490_v48 = vmax.f32 %v1488_v26, %v1489_v35  ;;  %v1497_v49 = vmax.f32 %v1495_v31, %v1496_v36  ;;  %v1504_v50 = vmax.f32 %v1502_v33, %v1503_v42 }
 0x9e9   :  { %v1510_v51 = vrot.slane %v1509_v43, 4  ;;  %v1517_v52 = vrot.slane %v1516_v44, 4  ;;  %v1524_v53 = vrot.slane %v1523_v45, 4  ;;  %v1531_v58 = vrot.slane %v1530_v46, 4 }
 0x9ea   :  { %v1484_v41 = vrot.slane %v1483_v47, 2  ;;  %v1491_v59 = vrot.slane %v1490_v48, 2  ;;  %v1498_v60 = vrot.slane %v1497_v49, 2  ;;  %v1505_v62 = vrot.slane %v1504_v50, 2 }
 0x9eb   :  { %v1511_v63 = vmax.f32 %v1509_v43, %v1510_v51  ;;  %v1518_v2 = vmax.f32 %v1516_v44, %v1517_v52  ;;  %v1525_v40 = vmax.f32 %v1523_v45, %v1524_v53  ;;  %v1532_v3 = vmax.f32 %v1530_v46, %v1531_v58 }
 0x9ec   :  { %v1485_v5 = vmax.f32 %v1483_v47, %v1484_v41  ;;  %v1492_v4 = vmax.f32 %v1490_v48, %v1491_v59  ;;  %v1499_v6 = vmax.f32 %v1497_v49, %v1498_v60  ;;  %v1506_v7 = vmax.f32 %v1504_v50, %v1505_v62  ;;  %v1151_v62 = vpop.permute.xlu1 %1150 }
 0x9ed   :  { %v1512_v8 = vrot.slane %v1511_v63, 2  ;;  %v1519_v9 = vrot.slane %v1518_v2, 2  ;;  %v1526_v54 = vrot.slane %v1525_v40, 2  ;;  %v1533_v13 = vrot.slane %v1532_v3, 2 }
 0x9ee   :  { %v1486_v18 = vrot.slane %v1485_v5, 1  ;;  %v1493_v21 = vrot.slane %v1492_v4, 1  ;;  %v1500_v26 = vrot.slane %v1499_v6, 1  ;;  %v1507_v31 = vrot.slane %v1506_v7, 1 }
 0x9ef   :  { %v1513_v33 = vmax.f32 %v1511_v63, %v1512_v8  ;;  %v1520_v25 = vmax.f32 %v1518_v2, %v1519_v9  ;;  %v1527_v35 = vmax.f32 %v1525_v40, %v1526_v54  ;;  %v1534_v36 = vmax.f32 %v1532_v3, %v1533_v13 }
 0x9f0   :  { %v1487_v42 = vmax.f32 %v1485_v5, %v1486_v18  ;;  %v1494_v43 = vmax.f32 %v1492_v4, %v1493_v21  ;;  %v1501_v44 = vmax.f32 %v1499_v6, %v1500_v26  ;;  %v1508_v45 = vmax.f32 %v1506_v7, %v1507_v31 }
 0x9f1   :  { %v1514_v46 = vrot.slane %v1513_v33, 1  ;;  %v1521_v47 = vrot.slane %v1520_v25, 1  ;;  %v1528_v48 = vrot.slane %v1527_v35, 1  ;;  %v1535_v49 = vrot.slane %v1534_v36, 1 }
 0x9f2   :  { %v1125_v50 = vrot.slane %v1108_v11, %v5083_v27  ;;  %v1537_v51 = vsub.f32 %v5235_v19, %v1487_v42  ;;  %v1538_v52 = vsub.f32 %v5237_v20, %v1494_v43  ;;  %v1539_v53 = vsub.f32 %v5239_v22, %v1501_v44 }
 0x9f3   :  { %v1515_v58 = vmax.f32 %v1513_v33, %v1514_v46  ;;  %v1522_v41 = vmax.f32 %v1520_v25, %v1521_v47  ;;  %v1529_v59 = vmax.f32 %v1527_v35, %v1528_v48  ;;  %v1540_v60 = vsub.f32 %v5241_v23, %v1508_v45 }
 0x9f4   :  { %v1133_v63 = vrot.slane %v5208_v39, %v5083_v27  ;;  %v5277_v2 = vmax.f32 %v1534_v36, %v1535_v49  ;;  %v1545_v40 = vmul.f32 1.442695, %v1537_v51  ;;  %v1547_v3 = vmul.f32 1.442695, %v1538_v52 }
 0x9f5   :  { %v1541_v11 = vsub.f32 %v5243_v24, %v1515_v58  ;;  %v1542_v19 = vsub.f32 %v5245_v28, %v1522_v41  ;;  %v1543_v20 = vsub.f32 %v5247_v29, %v1529_v59  ;;  %v1549_v22 = vmul.f32 1.442695, %v1539_v53 }
 0x9f6   :  { %4680 = vpow2.f32 %v1545_v40  ;;  %v5285_v23 = vmul.f32 %v1151_v62, %v1113_v12  ;;  %v5290_v5 = vmul.f32 %v1151_v62, %v1117_v15  ;;  %v5293_v4 = vmul.f32 %v1151_v62, %v5231_v10  ;;  %v5340_v40 = vpop.permute.xlu1 %1297 }
 0x9f7   :  { %v1137_v24 = vrot.slane %v1107_v55, %v5083_v27  ;;  %4682 = vpow2.f32 %v1547_v3  ;;  %v1551_v12 = vmul.f32 1.442695, %v1540_v60  ;;  %v1544_v38 = vsub.f32 %v5249_v30, %v5277_v2 }
 0x9f8   :  { %v1553_v15 = vmul.f32 1.442695, %v1541_v11  ;;  %v5305_v28 = vmul.f32 %v1151_v62, %v1125_v50  ;;  %v5310_v10 = vmul.f32 %v1151_v62, %v1129_v57  ;;  %4684 = vpow2.f32 %v1549_v22 }
 0x9f9   :  { %v1555_v55 = vmul.f32 1.442695, %v1542_v19  ;;  %v5312_v29 = vmul.f32 1.442695, %v1543_v20  ;;  %v5314_v6 = vmul.f32 %v1151_v62, %v1133_v63  ;;  %v5316_v39 = vmul.f32 %v1151_v62, %v1137_v24 }
 0x9fa   :  { %v1161_v56 = vsel %vm54_vm1, %v5285_v23, -inf  ;;  %v1168_v7 = vsel %vm54_vm1, %v5290_v5, -inf  ;;  %v1175_v8 = vsel %vm54_vm1, %v5293_v4, -inf  ;;  %4686 = vpow2.f32 %v1551_v12 }
 0x9fb   :  { %v1162_v37 = vrot.slane %v1161_v56, 4  ;;  %v1169_v57 = vrot.slane %v1168_v7, 4  ;;  %v1176_v9 = vrot.slane %v1175_v8, 4  ;;  %v5324_v54 = vmul.f32 %v1151_v62, %v1141_v61 }
 0x9fc   :  { %v1182_v13 = vsel %vm54_vm1, %v5305_v28, -inf  ;;  %v1189_v18 = vsel %vm54_vm1, %v5310_v10, -inf  ;;  %v1196_v21 = vsel %vm54_vm1, %v5314_v6, -inf  ;;  %4688 = vpow2.f32 %v1553_v15 }
 0x9fd   :  { %v1163_v26 = vmax.f32 %v1161_v56, %v1162_v37  ;;  %v1170_v31 = vmax.f32 %v1168_v7, %v1169_v57  ;;  %v1177_v33 = vmax.f32 %v1175_v8, %v1176_v9  ;;  %v1183_v25 = vrot.slane %v1182_v13, 4 }
 0x9fe   :  { %v1190_v35 = vrot.slane %v1189_v18, 4  ;;  %v1197_v36 = vrot.slane %v1196_v21, 4  ;;  %v1203_v42 = vsel %vm54_vm1, %v5316_v39, -inf  ;;  %4690 = vpow2.f32 %v1555_v55 }
 0x9ff   :  { %v1164_v43 = vrot.slane %v1163_v26, 2  ;;  %v1171_v44 = vrot.slane %v1170_v31, 2  ;;  %v1178_v45 = vrot.slane %v1177_v33, 2  ;;  %v1184_v47 = vmax.f32 %v1182_v13, %v1183_v25 }
 0xa00   :  { %v4681_v46 = vpop.eup %4680  ;;  %v1191_v48 = vmax.f32 %v1189_v18, %v1190_v35  ;;  %v1198_v49 = vmax.f32 %v1196_v21, %v1197_v36  ;;  %v1204_v50 = vrot.slane %v1203_v42, 4  ;;  %v1210_v63 = vsel %vm54_vm1, %v5324_v54, -inf }
 0xa01   :  { %v4683_v51 = vpop.eup %4682  ;;  %v5335_v52 = vsel %vm54_vm1, %v4681_v46, 0.0  ;;  %v1165_v53 = vmax.f32 %v1163_v26, %v1164_v43  ;;  %v1172_v58 = vmax.f32 %v1170_v31, %v1171_v44  ;;  %v1179_v41 = vmax.f32 %v1177_v33, %v1178_v45  ;;  %v5354_v44 = vpop.permute.xlu1 %1617 }
 0xa02   :  { %v1562_v59 = vrot.slane %v5335_v52, 4  ;;  %v1185_v60 = vrot.slane %v1184_v47, 2  ;;  %v1192_v62 = vrot.slane %v1191_v48, 2  ;;  %v5342_v3 = vpop.eup %4684  ;;  %v5345_v11 = vsel %vm54_vm1, %v4683_v51, 0.0 }
 0xa03   :  { %v1166_v19 = vrot.slane %v1165_v53, 1  ;;  %v1173_v20 = vrot.slane %v1172_v58, 1  ;;  %v1180_v22 = vrot.slane %v1179_v41, 1  ;;  %v1199_v12 = vrot.slane %v1198_v49, 2 }
 0xa04   :  { %v1186_v24 = vmax.f32 %v1184_v47, %v1185_v60  ;;  %v1193_v61 = vmax.f32 %v1191_v48, %v1192_v62  ;;  %v1205_v15 = vmax.f32 %v1203_v42, %v1204_v50  ;;  %v5347_v55 = vpop.eup %4686  ;;  %v1211_v37 = vrot.slane %v1210_v63, 4 }
 0xa05   :  { %v1167_v56 = vmax.f32 %v1165_v53, %v1166_v19  ;;  %v1174_v7 = vmax.f32 %v1172_v58, %v1173_v20  ;;  %v1181_v8 = vmax.f32 %v1179_v41, %v1180_v22  ;;  %v1200_v13 = vmax.f32 %v1198_v49, %v1199_v12 }
 0xa06   :  { %v1187_v57 = vrot.slane %v1186_v24, 1  ;;  %v1194_v9 = vrot.slane %v1193_v61, 1  ;;  %v1206_v18 = vrot.slane %v1205_v15, 2  ;;  %v5349_v21 = vpop.eup %4688  ;;  %v1212_v26 = vmax.f32 %v1210_v63, %v1211_v37 }
 0xa07   :  { %v1217_v31 = vsub.f32 %v5285_v23, %v1167_v56  ;;  %v1218_v33 = vsub.f32 %v5290_v5, %v1174_v7  ;;  %v1219_v25 = vsub.f32 %v5293_v4, %v1181_v8  ;;  %v1201_v42 = vrot.slane %v1200_v13, 1 }
 0xa08   :  { %v1188_v35 = vmax.f32 %v1186_v24, %v1187_v57  ;;  %v1195_v36 = vmax.f32 %v1193_v61, %v1194_v9  ;;  %v1207_v43 = vmax.f32 %v1205_v15, %v1206_v18  ;;  %v5356_v45 = vpop.eup %4690  ;;  %v1213_v47 = vrot.slane %v1212_v26, 2 }
 0xa09   :  { %v1225_v48 = vmul.f32 1.442695, %v1217_v31  ;;  %v1227_v49 = vmul.f32 1.442695, %v1218_v33  ;;  %v1620_v50 = vmul.f32 %v4681_v46, %v5354_v44  ;;  %v1202_v53 = vmax.f32 %v1200_v13, %v1201_v42 }
 0xa0a   :  { %v1208_v58 = vrot.slane %v1207_v43, 1  ;;  %v1220_v23 = vsub.f32 %v5305_v28, %v1188_v35  ;;  %v1221_v5 = vsub.f32 %v5310_v10, %v1195_v36  ;;  %v1214_v4 = vmax.f32 %v1212_v26, %v1213_v47 }
 0xa0b   :  { %4692 = vpow2.f32 %v1225_v48  ;;  %v1229_v41 = vmul.f32 1.442695, %v1219_v25  ;;  %v1621_v60 = vmul.f32 %v4683_v51, %v5354_v44  ;;  %v1222_v63 = vsub.f32 %v5314_v6, %v1202_v53 }
 0xa0c   :  { %v1209_v62 = vmax.f32 %v1207_v43, %v1208_v58  ;;  %4694 = vpow2.f32 %v1227_v49  ;;  %v1231_v19 = vmul.f32 1.442695, %v1220_v23  ;;  %v1569_v20 = vrot.slane %v5345_v11, 4 }
 0xa0d   :  { %v1215_v22 = vrot.slane %v1214_v4, 1  ;;  %4696 = vpow2.f32 %v1229_v41  ;;  %v1233_v46 = vmul.f32 1.442695, %v1221_v5  ;;  %v1235_v28 = vmul.f32 1.442695, %v1222_v63 }
 0xa0e   :  { %v1223_v24 = vsub.f32 %v5316_v39, %v1209_v62  ;;  %4698 = vpow2.f32 %v1231_v19  ;;  %v1622_v10 = vmul.f32 %v5342_v3, %v5354_v44  ;;  %v1559_v51 = vmul.f32 1.442695, %v1544_v38 }
 0xa0f   :  { %v1216_v61 = vmax.f32 %v1214_v4, %v1215_v22  ;;  %4700 = vpow2.f32 %v1233_v46  ;;  %v1628_v6 = vsel %vm54_vm1, %v1620_v50, 0.0  ;;  %v1635_v56 = vsel %vm54_vm1, %v1621_v60, 0.0 }
 0xa10   :  { %4702 = vpow2.f32 %v1235_v28  ;;  %v1237_v12 = vmul.f32 1.442695, %v1223_v24  ;;  %v1629_v15 = vrot.slane %v1628_v6, 4  ;;  %v1636_v7 = vrot.slane %v1635_v56, 4 }
 0xa11   :  { %4704 = vpow2.f32 %v5312_v29  ;;  %v1224_v39 = vsub.f32 %v5324_v54, %v1216_v61  ;;  %v1563_v8 = vadd.f32 %v1562_v59, %v5335_v52  ;;  %v5380_v2 = vsel %vm54_vm1, %v1622_v10, 0.0 }
 0xa12   :  { %4706 = vpow2.f32 %v1237_v12  ;;  %v5377_v30 = vadd.f32 %v1629_v15, %v1628_v6  ;;  %v1570_v38 = vadd.f32 %v1569_v20, %v5345_v11  ;;  %v5383_v57 = vadd.f32 %v1636_v7, %v1635_v56 }
 0xa13   :  { %v1239_v37 = vmul.f32 1.442695, %v1224_v39  ;;  %v1564_v9 = vrot.slane %v1563_v8, 2  ;;  %v1575_v29 = vsel %vm54_vm1, %v5342_v3, 0.0  ;;  %4708 = vpow2.f32 %v1559_v51 }
 0xa14   :  { %v1571_v54 = vrot.slane %v1570_v38, 2  ;;  %v5389_v52 = vsel %vm54_vm1, %v5347_v55, 0.0  ;;  %v5393_v13 = vmul.f32 %v5347_v55, %v5354_v44  ;;  %v1576_v18 = vrot.slane %v1575_v29, 4 }
 0xa15   :  { %v4693_v59 = vpop.eup %4692  ;;  %4710 = vpow2.f32 %v1239_v37  ;;  %v5395_v11 = vadd.f32 %v1564_v9, %v1563_v8  ;;  %v5399_v31 = vmul.f32 %v5349_v21, %v5354_v44  ;;  %v1631_v3 = vrot.slane %v5377_v30, 2 }
 0xa16   :  { %v4695_v26 = vpop.eup %4694  ;;  %v1241_v25 = vsel %vm54_vm1, %v4693_v59, 0.0  ;;  %v1583_v43 = vrot.slane %v5389_v52, 4  ;;  %v1300_v48 = vmul.f32 %v4693_v59, %v5340_v40  ;;  %v5409_v53 = vadd.f32 %v1571_v54, %v1570_v38 }
 0xa17   :  { %v4697_v35 = vpop.eup %4696  ;;  %v1242_v42 = vrot.slane %v1241_v25, 4  ;;  %v1248_v55 = vsel %vm54_vm1, %v4695_v26, 0.0  ;;  %v1301_v23 = vmul.f32 %v4695_v26, %v5340_v40  ;;  %v1566_v4 = vrot.slane %v5395_v11, 1 }
 0xa18   :  { %v4699_v47 = vpop.eup %4698  ;;  %v1249_v49 = vrot.slane %v1248_v55, 4  ;;  %v1255_v50 = vsel %vm54_vm1, %v4697_v35, 0.0  ;;  %v5413_v41 = vadd.f32 %v1576_v18, %v1575_v29  ;;  %v1302_v62 = vmul.f32 %v4697_v35, %v5340_v40 }
 0xa19   :  { %v4701_v58 = vpop.eup %4700  ;;  %v1243_v5 = vadd.f32 %v1242_v42, %v1241_v25  ;;  %v1256_v19 = vrot.slane %v1255_v50, 4  ;;  %v1262_v20 = vsel %vm54_vm1, %v4699_v47, 0.0  ;;  %v1308_v56 = vsel %vm54_vm1, %v1300_v48, 0.0 }
 0xa1a   :  { %v4703_v60 = vpop.eup %4702  ;;  %v1250_v63 = vadd.f32 %v1249_v49, %v1248_v55  ;;  %v1263_v24 = vrot.slane %v1262_v20, 4  ;;  %v1269_v28 = vsel %vm54_vm1, %v4701_v58, 0.0  ;;  %v1315_v18 = vsel %vm54_vm1, %v1301_v23, 0.0 }
 0xa1b   :  { %v5417_v22 = vpop.eup %4704  ;;  %v1244_v46 = vrot.slane %v1243_v5, 2  ;;  %v1276_v10 = vsel %vm54_vm1, %v4703_v60, 0.0  ;;  %v1257_v6 = vadd.f32 %v1256_v19, %v1255_v50  ;;  %v1270_v12 = vrot.slane %v1269_v28, 4 }
 0xa1c   :  { %v4707_v51 = vpop.eup %4706  ;;  %v1251_v61 = vrot.slane %v1250_v63, 2  ;;  %v1277_v15 = vrot.slane %v1276_v10, 4  ;;  %v1264_v7 = vadd.f32 %v1263_v24, %v1262_v20  ;;  %v1309_v50 = vrot.slane %v1308_v56, 4 }
 0xa1d   :  { %v1245_v39 = vadd.f32 %v1244_v46, %v1243_v5  ;;  %v1283_v8 = vsel %vm54_vm1, %v4707_v51, 0.0  ;;  %v5423_v38 = vpop.eup %4708  ;;  %v1258_v9 = vrot.slane %v1257_v6, 2  ;;  %v1271_v29 = vadd.f32 %v1270_v12, %v1269_v28 }
 0xa1e   :  { %v1252_v37 = vadd.f32 %v1251_v61, %v1250_v63  ;;  %v1278_v54 = vadd.f32 %v1277_v15, %v1276_v10  ;;  %v1265_v25 = vrot.slane %v1264_v7, 2  ;;  %v1284_v35 = vrot.slane %v1283_v8, 4 }
 0xa1f   :  { %v4711_v59 = vpop.eup %4710  ;;  %v1246_v26 = vrot.slane %v1245_v39, 1  ;;  %v1259_v55 = vadd.f32 %v1258_v9, %v1257_v6  ;;  %v1272_v49 = vrot.slane %v1271_v29, 2  ;;  %v1316_v46 = vrot.slane %v1315_v18, 4 }
 0xa20   :  { %v1253_v42 = vrot.slane %v1252_v37, 1  ;;  %v1279_v48 = vrot.slane %v1278_v54, 2  ;;  %v1266_v5 = vadd.f32 %v1265_v25, %v1264_v7  ;;  %v1285_v19 = vadd.f32 %v1284_v35, %v1283_v8 }
 0xa21   :  { %v1290_v20 = vsel %vm54_vm1, %v4711_v59, 0.0  ;;  %v1260_v63 = vrot.slane %v1259_v55, 1  ;;  %v1273_v24 = vadd.f32 %v1272_v49, %v1271_v29  ;;  %v1303_v10 = vmul.f32 %v4699_v47, %v5340_v40 }
 0xa22   :  { %v1280_v28 = vadd.f32 %v1279_v48, %v1278_v54  ;;  %v1286_v61 = vrot.slane %v1285_v19, 2  ;;  %v1291_v23 = vrot.slane %v1290_v20, 4  ;;  %v1304_v12 = vmul.f32 %v4701_v58, %v5340_v40 }
 0xa23   :  { %v1247_v15 = vadd.f32 %v1246_v26, %v1245_v39  ;;  %v1254_v14 = vadd.f32 %v1253_v42, %v1252_v37  ;;  %v1267_v6 = vrot.slane %v1266_v5, 1  ;;  %v1305_v9 = vmul.f32 %v4703_v60, %v5340_v40 }
 0xa24   :  { %v1261_v0 = vadd.f32 %v1260_v63, %v1259_v55  ;;  %v1292_v7 = vadd.f32 %v1291_v23, %v1290_v20  ;;  %v1306_v8 = vmul.f32 %v4707_v51, %v5340_v40  ;;  %v1310_v25 = vadd.f32 %v1309_v50, %v1308_v56 }
 0xa25   :  { %v1274_v35 = vrot.slane %v1273_v24, 1  ;;  %v1281_v1 = vrot.slane %v1280_v28, 1  ;;  %v1317_v29 = vadd.f32 %v1316_v46, %v1315_v18  ;;  %v1322_v54 = vsel %vm54_vm1, %v1302_v62, 0.0 }
 0xa26   :  { %v1287_v47 = vadd.f32 %v1286_v61, %v1285_v19  ;;  %v1293_v49 = vrot.slane %v1292_v7, 2  ;;  %v1311_v48 = vrot.slane %v1310_v25, 2  ;;  %v1323_v36 = vrot.slane %v1322_v54, 4 }
 0xa27   :  { %v1318_v58 = vrot.slane %v1317_v29, 2  ;;  %v1329_v39 = vsel %vm54_vm1, %v1303_v10, 0.0  ;;  %v1336_v37 = vsel %vm54_vm1, %v1304_v12, 0.0  ;;  %v1343_v60 = vsel %vm54_vm1, %v1305_v9, 0.0 }
 0xa28   :  { %v1294_v26 = vadd.f32 %v1293_v49, %v1292_v7  ;;  %v1307_v51 = vmul.f32 %v4711_v59, %v5340_v40  ;;  %v1312_v56 = vadd.f32 %v1311_v48, %v1310_v25  ;;  %v1324_v42 = vadd.f32 %v1323_v36, %v1322_v54 }
 0xa29   :  { %v1319_v55 = vadd.f32 %v1318_v58, %v1317_v29  ;;  %v1330_v18 = vrot.slane %v1329_v39, 4  ;;  %v1337_v50 = vrot.slane %v1336_v37, 4  ;;  %v1344_v62 = vrot.slane %v1343_v60, 4 }
 0xa2a   :  { %v1268_v19 = vadd.f32 %v1267_v6, %v1266_v5  ;;  %v1275_v20 = vadd.f32 %v1274_v35, %v1273_v24  ;;  %v1325_v46 = vrot.slane %v1324_v42, 2  ;;  %v1350_v63 = vsel %vm54_vm1, %v1306_v8, 0.0 }
 0xa2b   :  { %v1288_v61 = vrot.slane %v1287_v47, 1  ;;  %v1331_v10 = vadd.f32 %v1330_v18, %v1329_v39  ;;  %v1338_v23 = vadd.f32 %v1337_v50, %v1336_v37  ;;  %v1345_v12 = vadd.f32 %v1344_v62, %v1343_v60 }
 0xa2c   :  { %v1295_v33 = vrot.slane %v1294_v26, 1  ;;  %v1313_v9 = vrot.slane %v1312_v56, 1  ;;  %v1326_v7 = vadd.f32 %v1325_v46, %v1324_v42  ;;  %v1351_v49 = vrot.slane %v1350_v63, 4 }
 0xa2d   :  { %v1320_v40 = vrot.slane %v1319_v55, 1  ;;  %v1332_v59 = vrot.slane %v1331_v10, 2  ;;  %v1339_v36 = vrot.slane %v1338_v23, 2  ;;  %v1346_v25 = vrot.slane %v1345_v12, 2 }
 0xa2e   :  { %v1282_v29 = vadd.f32 %v1281_v1, %v1280_v28  ;;  %v1352_v54 = vadd.f32 %v1351_v49, %v1350_v63  ;;  %v1357_v5 = vsel %vm54_vm1, %v1307_v51, 0.0  ;;  %4712 = vrcp.f32 %v1247_v15 }
 0xa2f   :  { %v1327_v24 = vrot.slane %v1326_v7, 1  ;;  %v1333_v6 = vadd.f32 %v1332_v59, %v1331_v10  ;;  %v1340_v8 = vadd.f32 %v1339_v36, %v1338_v23  ;;  %v1358_v35 = vrot.slane %v1357_v5, 4 }
 0xa30   :  { %v1289_v48 = vadd.f32 %v1288_v61, %v1287_v47  ;;  %v1347_v58 = vadd.f32 %v1346_v25, %v1345_v12  ;;  %v1353_v39 = vrot.slane %v1352_v54, 2  ;;  %4714 = vrcp.f32 %v1254_v14 }
 0xa31   :  { %v1296_v37 = vadd.f32 %v1295_v33, %v1294_v26  ;;  %v1314_v60 = vadd.f32 %v1313_v9, %v1312_v56  ;;  %v1321_v42 = vadd.f32 %v1320_v40, %v1319_v55  ;;  %v1359_v18 = vadd.f32 %v1358_v35, %v1357_v5 }
 0xa32   :  { %v1334_v50 = vrot.slane %v1333_v6, 1  ;;  %v1341_v62 = vrot.slane %v1340_v8, 1  ;;  %4716 = vrcp.f32 %v1261_v0  ;;  %v1578_v1 = vrot.slane %v5413_v41, 2 }
 0xa33   :  { %v1328_v28 = vadd.f32 %v1327_v24, %v1326_v7  ;;  %v1354_v51 = vadd.f32 %v1353_v39, %v1352_v54  ;;  %v1360_v15 = vrot.slane %v1359_v18, 2  ;;  %v5442_v46 = vadd.f32 %v1566_v4, %v5395_v11 }
 0xa34   :  { %v1348_v47 = vrot.slane %v1347_v58, 1  ;;  %4718 = vrcp.f32 %v1268_v19  ;;  %v1573_v14 = vrot.slane %v5409_v53, 1  ;;  %v1579_v33 = vadd.f32 %v1578_v1, %v5413_v41 }
 0xa35   :  { %v1361_v26 = vadd.f32 %v1360_v15, %v1359_v18  ;;  %4720 = vrcp.f32 %v1275_v20  ;;  %v1584_v0 = vadd.f32 %v1583_v43, %v5389_v52  ;;  %v1589_v56 = vsel %vm54_vm1, %v5349_v21, 0.0 }
 0xa36   :  { %v1335_v55 = vadd.f32 %v1334_v50, %v1333_v6  ;;  %v1342_v63 = vadd.f32 %v1341_v62, %v1340_v8  ;;  %4722 = vrcp.f32 %v1282_v29  ;;  %v1590_v11 = vrot.slane %v1589_v56, 4 }
 0xa37   :  { %v1355_v4 = vrot.slane %v1354_v51, 1  ;;  %4724 = vrcp.f32 %v1289_v48  ;;  %v1585_v19 = vrot.slane %v1584_v0, 2  ;;  %v1596_v41 = vsel %vm54_vm1, %v5356_v45, 0.0 }
 0xa38   :  { %v4713_v61 = vpop.eup %4712  ;;  %4726 = vrcp.f32 %v1296_v37  ;;  %v1580_v20 = vrot.slane %v1579_v33, 1  ;;  %v1591_v10 = vadd.f32 %v1590_v11, %v1589_v56  ;;  %v1597_v23 = vrot.slane %v1596_v41, 4 }
 0xa39   :  { %v1362_v52 = vrot.slane %v1361_v26, 1  ;;  %v1365_v43 = vmul.f32 %v4713_v61, %v1314_v60  ;;  %v1586_v12 = vadd.f32 %v1585_v19, %v1584_v0  ;;  %v1603_v21 = vsel %vm54_vm1, %v5417_v22, 0.0 }
 0xa3a   :  { %v4715_v9 = vpop.eup %4714  ;;  %v1592_v7 = vrot.slane %v1591_v10, 2  ;;  %v1598_v49 = vadd.f32 %v1597_v23, %v1596_v41  ;;  %v1604_v40 = vrot.slane %v1603_v21, 4  ;;  %v1610_v59 = vsel %vm54_vm1, %v5423_v38, 0.0 }
 0xa3b   :  { %v1349_v36 = vadd.f32 %v1348_v47, %v1347_v58  ;;  %v1367_v25 = vmul.f32 %v4715_v9, %v1321_v42  ;;  %v5458_v29 = vadd.f32 %v1573_v14, %v5409_v53  ;;  %v1611_v54 = vrot.slane %v1610_v59, 4 }
 0xa3c   :  { %v4717_v5 = vpop.eup %4716  ;;  %v1356_v24 = vadd.f32 %v1355_v4, %v1354_v51  ;;  %v1593_v6 = vadd.f32 %v1592_v7, %v1591_v10  ;;  %v1599_v8 = vrot.slane %v1598_v49, 2  ;;  %v1605_v35 = vadd.f32 %v1604_v40, %v1603_v21 }
 0xa3d   :  { %v1369_v48 = vmul.f32 %v4717_v5, %v1328_v28  ;;  %v1708_v39 = vsel %vm460_vm3, %v1367_v25, %v1365_v43  ;;  %v1581_v37 = vadd.f32 %v1580_v20, %v1579_v33  ;;  %v1612_v60 = vadd.f32 %v1611_v54, %v1610_v59 }
 0xa3e   :  { %v4719_v18 = vpop.eup %4718  ;;  %v1363_v50 = vadd.f32 %v1362_v52, %v1361_v26  ;;  %v1587_v62 = vrot.slane %v1586_v12, 1  ;;  %v1600_v1 = vadd.f32 %v1599_v8, %v1598_v49  ;;  %v1606_v58 = vrot.slane %v1605_v35, 2 }
 0xa3f   :  { %v4721_v42 = vpop.eup %4720  ;;  %v1371_v15 = vmul.f32 %v4719_v18, %v1335_v55  ;;  %v1709_v53 = vsel %vm462_vm4, %v1369_v48, %v1708_v39  ;;  %v1613_v47 = vrot.slane %v1612_v60, 2  ;;  %v1625_v51 = vmul.f32 %v5356_v45, %v5354_v44 }
 0xa40   :  { %v4723_v14 = vpop.eup %4722  ;;  %v1373_v0 = vmul.f32 %v4721_v42, %v1342_v63  ;;  %v1594_v28 = vrot.slane %v1593_v6, 1  ;;  %v1607_v56 = vadd.f32 %v1606_v58, %v1605_v35  ;;  %v1626_v33 = vmul.f32 %v5417_v22, %v5354_v44 }
 0xa41   :  { %v4725_v11 = vpop.eup %4724  ;;  %v1375_v26 = vmul.f32 %v4723_v14, %v1349_v36  ;;  %v1710_v4 = vsel %vm464_vm7, %v1371_v15, %v1709_v53  ;;  %v1601_v19 = vrot.slane %v1600_v1, 1  ;;  %v1614_v41 = vadd.f32 %v1613_v47, %v1612_v60 }
 0xa42   :  { %v4727_v55 = vpop.eup %4726  ;;  %v1377_v61 = vmul.f32 %v4725_v11, %v1356_v24  ;;  %v1712_v20 = vsel %vm1711_vm12, %v1373_v0, %v1710_v4  ;;  %v1588_v10 = vadd.f32 %v1587_v62, %v1586_v12  ;;  %v1608_v23 = vrot.slane %v1607_v56, 1 }
 0xa43   :  { %v1379_v45 = vmul.f32 %v4727_v55, %v1363_v50  ;;  %v1713_v63 = vsel %vm471_vm5, %v1375_v26, %v1712_v20  ;;  %v1627_v52 = vmul.f32 %v5423_v38, %v5354_v44  ;;  %v1632_v22 = vadd.f32 %v1631_v3, %v5377_v30 }
 0xa44   :  { %v1714_v43 = vsel %vm473_vm6, %v1377_v61, %v1713_v63  ;;  %v1595_v21 = vadd.f32 %v1594_v28, %v1593_v6  ;;  %v1615_v9 = vrot.slane %v1614_v41, 1  ;;  %v6174_v7 = vrot.slane %v5380_v2, 4 }
 0xa45   :  { %v1715_v12 = vsel %vm475_vm8, %v1379_v45, %v1714_v43  ;;  %v1602_v40 = vadd.f32 %v1601_v19, %v1600_v1  ;;  %v1649_v59 = vsel %vm54_vm1, %v5393_v13, 0.0  ;;  %v1656_v44 = vsel %vm54_vm1, %v5399_v31, 0.0 }
 0xa46   :  { %v1644_v49 = vadd.f32 %v6174_v7, %v5380_v2  ;;  %4445 = vmatprep.mubr.msk.f32.mxu1 %vm54_vm1, %v1715_v12  ;;  %v1609_v30 = vadd.f32 %v1608_v23, %v1607_v56  ;;  %v1650_v38 = vrot.slane %v1649_v59, 4  ;;  %v1657_v36 = vrot.slane %v1656_v44, 4 }
 0xa47   :  { %v1663_v25 = vsel %vm54_vm1, %v1625_v51, 0.0  ;;  %v1670_v54 = vsel %vm54_vm1, %v1626_v33, 0.0  ;;  %v1677_v2 = vsel %vm54_vm1, %v1627_v52, 0.0  ;;  %4728 = vrcp.f32 %v5442_v46 }
 0xa48   :  { %v1645_v3 = vrot.slane %v1644_v49, 2  ;;  %v1616_v5 = vadd.f32 %v1615_v9, %v1614_v41  ;;  %v6175_v13 = vrot.slane %v5383_v57, 2  ;;  %v1651_v31 = vadd.f32 %v1650_v38, %v1649_v59 }
 0xa49   :  { %v1658_v6 = vadd.f32 %v1657_v36, %v1656_v44  ;;  %v1664_v8 = vrot.slane %v1663_v25, 4  ;;  %v1671_v35 = vrot.slane %v1670_v54, 4  ;;  %v1678_v48 = vrot.slane %v1677_v2, 4 }
 0xa4a   :  { %v1639_v24 = vadd.f32 %v6175_v13, %v5383_v57  ;;  %4730 = vrcp.f32 %v5458_v29  ;;  %v1646_v39 = vadd.f32 %v1645_v3, %v1644_v49  ;;  %v1652_v60 = vrot.slane %v1651_v31, 2 }
 0xa4b   :  { %v1659_v18 = vrot.slane %v1658_v6, 2  ;;  %4732 = vrcp.f32 %v1581_v37  ;;  %v1665_v50 = vadd.f32 %v1664_v8, %v1663_v25  ;;  %v1672_v62 = vadd.f32 %v1671_v35, %v1670_v54 }
 0xa4c   :  { %v1679_v1 = vadd.f32 %v1678_v48, %v1677_v2  ;;  %4734 = vrcp.f32 %v1588_v10  ;;  %v1633_v46 = vrot.slane %v1632_v22, 1  ;;  %v1653_v58 = vadd.f32 %v1652_v60, %v1651_v31 }
 0xa4d   :  { %v1660_v42 = vadd.f32 %v1659_v18, %v1658_v6  ;;  %4736 = vrcp.f32 %v1595_v21  ;;  %v1666_v57 = vrot.slane %v1665_v50, 2  ;;  %v1673_v15 = vrot.slane %v1672_v62, 2 }
 0xa4e   :  { %v1680_v53 = vrot.slane %v1679_v1, 2  ;;  %4738 = vrcp.f32 %v1602_v40  ;;  %v1640_v47 = vrot.slane %v1639_v24, 1  ;;  %v1647_v51 = vrot.slane %v1646_v39, 1 }
 0xa4f   :  { %4740 = vrcp.f32 %v1609_v30  ;;  %v1667_v29 = vadd.f32 %v1666_v57, %v1665_v50  ;;  %v1674_v14 = vadd.f32 %v1673_v15, %v1672_v62  ;;  %v1634_v0 = vadd.f32 %v1633_v46, %v1632_v22  ;;  %v973_v57 = vld [vmem:[#allocation5 + $0xc0] sm:$0xff] }
 0xa50   :  { %4742 = vrcp.f32 %v1616_v5  ;;  %v1654_v37 = vrot.slane %v1653_v58, 1  ;;  %v1681_v28 = vadd.f32 %v1680_v53, %v1679_v1  ;;  %v1661_v33 = vrot.slane %v1660_v42, 1 }
 0xa51   :  { %v4729_v56 = vpop.eup %4728  ;;  %v1641_v11 = vadd.f32 %v1640_v47, %v1639_v24  ;;  %v1668_v26 = vrot.slane %v1667_v29, 1  ;;  %v1648_v41 = vadd.f32 %v1647_v51, %v1646_v39  ;;  %v1675_v55 = vrot.slane %v1674_v14, 1  ;;  %v974_v47 = vld [vmem:[#allocation5 + $0xc8] sm:$0xff]  ;;  %v975_v51 = vld [vmem:[#allocation5 + $0xd0] sm:$0xff] }
 0xa52   :  { %v1685_v4 = vmul.f32 %v4729_v56, %v1634_v0  ;;  %v1655_v20 = vadd.f32 %v1654_v37, %v1653_v58  ;;  %v1682_v10 = vrot.slane %v1681_v28, 1  ;;  %v1662_v63 = vadd.f32 %v1661_v33, %v1660_v42 }
 0xa53   :  { %v1669_v21 = vadd.f32 %v1668_v26, %v1667_v29  ;;  %v1676_v49 = vadd.f32 %v1675_v55, %v1674_v14  ;;  %v6176_v53 = vmov 0.0   ;;  %v4589_v29 = vpack.c.bf16 %v975_v51, %v974_v47  ;;  %v4270_v26 = vld [vmem:[#allocation5 + $0xb0] ss:$0 sm:$0xff] }
 0xa54   :  { %v4731_v19 = vpop.eup %4730  ;;  %v1683_v44 = vadd.f32 %v1682_v10, %v1681_v28  ;;  %v977_v10 = vld [vmem:[#allocation5 + $0xe0] sm:$0xff]  ;;  %v2221_v47 = vsub.s32 7, %v5071_v16 }
 0xa55   :  { %v4733_v61 = vpop.eup %4732  ;;  %v1687_v23 = vmul.f32 %v4731_v19, %v1641_v11  ;;  %4590 = vmatprep.subr.bf16.mxu1 %v4589_v29 }
 0xa56   :  { %v4735_v45 = vpop.eup %4734  ;;  %v1689_v52 = vmul.f32 %v4733_v61, %v1648_v41 }
 0xa57   :  { %v4737_v43 = vpop.eup %4736  ;;  %v1691_v22 = vmul.f32 %v4735_v45, %v1655_v20  ;;  %v1724_v9 = vsel %vm460_vm3, %v1687_v23, %v1685_v4  ;;  %v976_v20 = vld [vmem:[#allocation5 + $0xd8] sm:$0xff] }
 0xa58   :  { %v4739_v7 = vpop.eup %4738  ;;  %v1693_v12 = vmul.f32 %v4737_v43, %v1662_v63  ;;  %v1725_v40 = vsel %vm462_vm4, %v1689_v52, %v1724_v9  ;;  %v4593_v23 = vpack.c.bf16 %v977_v10, %v976_v20 }
 0xa59   :  { %v4741_v59 = vpop.eup %4740  ;;  %v1695_v30 = vmul.f32 %v4739_v7, %v1669_v21  ;;  %v1726_v3 = vsel %vm464_vm7, %v1691_v22, %v1725_v40 }
 0xa5a   :  { %v4743_v38 = vpop.eup %4742  ;;  %v1697_v36 = vmul.f32 %v4741_v59, %v1676_v49  ;;  %v1727_v25 = vsel %vm1711_vm12, %v1693_v12, %v1726_v3 }
 0xa5b   :  { %v1699_v54 = vmul.f32 %v4743_v38, %v1683_v44  ;;  %v1728_v2 = vsel %vm471_vm5, %v1695_v30, %v1727_v25  ;;  %v5523_v25 = vld [vmem:[#allocation5 + $0xe8] ss:$0 sm:$0xff] }
 0xa5c   :  { %v1729_v5 = vsel %vm473_vm6, %v1697_v36, %v1728_v2 }
 0xa5d   :  { %v1730_v13 = vsel %vm475_vm8, %v1699_v54, %v1729_v5  ;;  %v2042_v5 = vld [vmem:[#allocation5 + $0xf0] sm:$0xff] }
 0xa5e   :  { %4446 = vmatmul.mubr.msk.f32.vlgmr.msra.gmra.mrb[8].mxu1 %vm54_vm1, %v1730_v13  ;;  %v6177_v13 = vmov 0.0|0.0  }
 0xa5f   :  { %4592 = vmatpush3.bf16.msra.mxu1 %v4589_v29 }
 0xa60   :  { %4594 = vmatprep.subr.bf16.mxu1 %v4593_v23 }
 0xa63   :  { %4596 = vmatpush3.bf16.msra.mxu1 %v4593_v23 }
 0xa64   :  { %4477 = vmatprep.subr.mxu1 %v6176_v53 }
 0xb31   :  { %v4447_v24 = vpop.f32.mrb[8].mxu1 }
 0xb32   :  { %v1811_v31 = vadd.f32 %v4447_v24, %v5180_v34  ;;  %v1801_v6 = vpop.f32.mrb[9].mxu1  ;;  %v5533_v24 = vld [vmem:[#allocation5 + $0xf8] sm:$0xff] }
 0xb33   :  { %v1810_v8 = vadd.f32 %v1801_v6, %v5178_v32  ;;  %v972_v32 = vld [vmem:[#allocation5 + $0xb8] sm:$0xff] }
 0xb34   :  { %v1815_v35 = vsel %vm54_vm1, %v1811_v31, 0.0  ;;  %v4585_v15 = vpack.c.bf16 %v973_v57, %v972_v32  ;;  %v2210_v57 = vsub.s32 6, %v5071_v16 }
 0xb35   :  { %1816 = vadd.xlane.f32.xlu1 %v1815_v35  ;;  %v1812_v48 = vsel %vm54_vm1, %v1810_v8, 0.0 }
 0xb36   :  { %1813 = vadd.xlane.f32.xlu0 %v1812_v48  ;;  %4586 = vmatprep.subr.bf16.mxu0 %v4585_v15  ;;  %v2166_v48 = vsub.s32 2, %v5071_v16 }
 0xb37   :  { %4588 = vmatpush3.bf16.msra.mxu0 %v4585_v15 }
 0xb38   :  { %4466 = vmatprep.subr.mxu0 %v6176_v53 }
 0xbc2   :  { %v1817_v39 = vpop.xlane.xlu1 %1816 }
 0xbc3   :  { %v1819_v60 = vmul.f32 0.0625, %v1817_v39  ;;  %v1814_v18 = vpop.xlane.xlu0 %1813  ;;  %v2155_v39 = vsub.s32 1, %v5071_v16 }
 0xbc4   :  { %v1818_v50 = vmul.f32 0.0625, %v1814_v18 }
 0xbc5   :  { %v1821_v62 = vsub.f32 %v1811_v31, %v1819_v60  ;;  %v5539_v31 = vld [vmem:[#allocation5 + $0x100] sm:$0xff] }
 0xbc6   :  { %v1820_v1 = vsub.f32 %v1810_v8, %v1818_v50 }
 0xbc7   :  { %v1823_v42 = vmul.f32 %v1821_v62, %v1821_v62 }
 0xbc8   :  { %v1822_v46 = vmul.f32 %v1820_v1, %v1820_v1 }
 0xbc9   :  { %v1827_v34 = vsel %vm54_vm1, %v1823_v42, 0.0 }
 0xbca   :  { %v1824_v58 = vsel %vm54_vm1, %v1822_v46, 0.0 }
 0xbcb   :  { %1825 = vadd.xlane.f32.xlu0 %v1824_v58  ;;  %v2188_v58 = vsub.s32 4, %v5071_v16 }
 0xbcf   :  { %1828 = vadd.xlane.f32.xlu0 %v1827_v34  ;;  %v2199_v34 = vsub.s32 5, %v5071_v16 }
 0xc58   :  { %v1826_v14 = vpop.xlane.xlu0 %1825 }
 0xc59   :  { %v1830_v0 = vmul.f32 0.0625, %v1826_v14 }
 0xc5b   :  { %v1832_v37 = vadd.f32 1e-05, %v1830_v0 }
 0xc5c   :  { %v1829_v28 = vpop.xlane.xlu0 %1828 }
 0xc5d   :  { %4744 = vrsqrt.f32 %v1832_v37  ;;  %v1831_v56 = vmul.f32 0.0625, %v1829_v28 }
 0xc5f   :  { %v1833_v33 = vadd.f32 1e-05, %v1831_v56 }
 0xc61   :  { %4746 = vrsqrt.f32 %v1833_v33 }
 0xc67   :  { %v4745_v11 = vpop.eup %4744 }
 0xc68   :  { %v1836_v4 = vmul.f32 %v4745_v11, %v1820_v1 }
 0xc6a   :  { %v1842_v19 = vmul.f32 %v4270_v26, %v1836_v4 }
 0xc6b   :  { %v4747_v41 = vpop.eup %4746 }
 0xc6c   :  { %v1837_v55 = vmul.f32 %v4747_v41, %v1821_v62  ;;  %4452 = vmatprep.mubr.msk.f32.mxu0 %vm54_vm1, %v1842_v19  ;;  %v2177_v62 = vsub.s32 3, %v5071_v16 }
 0xc6e   :  { %v5508_v61 = vmul.f32 %v4270_v26, %v1837_v55 }
 0xc70   :  { %4453 = vmatmul.mubr.msk.f32.vlgmr.msra.gmra.mrb[8].mxu0 %vm54_vm1, %v5508_v61 }
 0xc71   :  { %4468 = vmatprep.mubr.msk.f32.mxu0 %vm4990_vm0, %v6176_v53 }
 0xd43   :  { %v4454_v45 = vpop.f32.mrb[8].mxu0 }
 0xd44   :  { %v1916_v63 = vpop.f32.mrb[9].mxu0  ;;  %v1926_v43 = vmax.f32 %v4454_v45, 0.0 }
 0xd45   :  { %v1925_v52 = vmax.f32 %v1916_v63, 0.0 }
 0xd47   :  { %4463 = vmatprep.mubr.msk.f32.mxu1 %vm647_vm10, %v1925_v52 }
 0xd48   :  { %4464 = vmatmul.mubr.msk.f32.vlgmr.msra.gmra.mrb[10].mxu1 %vm647_vm10, %v1926_v43 }
 0xd49   :  { %4479 = vmatprep.mubr.msk.f32.mxu1 %vm4990_vm0, %v6176_v53 }
 0xe1b   :  { %v5519_v21 = vpop.f32.mrb[10].mxu1 }
 0xe1c   :  { %v1999_v22 = vpop.f32.mrb[11].mxu1 }
 0xe1d   :  { %v2008_v9 = vadd.f32 %v1999_v22, %v1842_v19 }
 0xe1f   :  { %v2010_v7 = vsel %vm54_vm1, %v2008_v9, 0.0 }
 0xe20   :  { %2011 = vadd.xlane.f32.xlu1 %v2010_v7 }
 0xead   :  { %v2012_v49 = vpop.xlane.xlu1 %2011 }
 0xeae   :  { %v2016_v12 = vmul.f32 0.0625, %v2012_v49 }
 0xeb0   :  { %v2018_v40 = vsub.f32 %v2008_v9, %v2016_v12 }
 0xeb2   :  { %v2020_v59 = vmul.f32 %v2018_v40, %v2018_v40 }
 0xeb4   :  { %v2022_v44 = vsel %vm54_vm1, %v2020_v59, 0.0 }
 0xeb5   :  { %2023 = vadd.xlane.f32.xlu0 %v2022_v44 }
 0xf42   :  { %v2024_v30 = vpop.xlane.xlu0 %2023 }
 0xf43   :  { %v2028_v3 = vmul.f32 0.0625, %v2024_v30 }
 0xf45   :  { %v2030_v38 = vadd.f32 1e-05, %v2028_v3 }
 0xf47   :  { %4748 = vrsqrt.f32 %v2030_v38 }
 0xf51   :  { %v4749_v36 = vpop.eup %4748 }
 0xf52   :  { %v2034_v54 = vmul.f32 %v4749_v36, %v2018_v40 }
 0xf54   :  { %v5526_v2 = vmul.f32 %v5523_v25, %v2034_v54 }
 0xf56   :  { %4467 = vmatpush3.msra.mxu0 %v5526_v2 }
 0xf57   :  { %4469 = vmatmul.mubr.msk.f32.vlgmr.msra.gmra.mrb[10].mxu0 %vm744_vm11, %v2042_v5  ;;  %4597 = vmatprep.subr.bf16.mxu0 %v6177_v13 }
 0xf58   :  { %4471 = vmatprep.mubr.msk.f32.mxu0 %vm4990_vm0, %v6176_v53 }
 0xf5b   :  { %4472 = vmatmul.mubr.msk.f32.gmra.mrb[12].mxu0 %vm744_vm11, %v5533_v24 }
 0xf5c   :  { %4474 = vmatprep.mubr.msk.f32.mxu0 %vm4990_vm0, %v6176_v53 }
 0xf5f   :  { %4475 = vmatmul.mubr.msk.f32.gmra.mrb[14].mxu0 %vm744_vm11, %v5539_v31 }
 0xf60   :  { %4498 = vmatprep.mubr.msk.f32.mxu0 %vm4990_vm0, %v6176_v53 }
0x102a   :  { %v2128_v6 = vpop.f32.mrb[10].mxu0 }
0x102b   :  { %v4470_v8 = vpop.f32.mrb[11].mxu0  ;;  %v2145_v35 = vrot.slane %v2128_v6, %v5083_v27  ;;  %v2167_v18 = vrot.slane %v2128_v6, %v2166_v48  ;;  %v2156_v50 = vrot.slane %v2128_v6, %v2155_v39  ;;  %v2178_v46 = vrot.slane %v2128_v6, %v2177_v62 }
0x102c   :  { %v2189_v42 = vrot.slane %v2128_v6, %v2188_v58  ;;  %v2200_v32 = vrot.slane %v2128_v6, %v2199_v34  ;;  %v2211_v15 = vrot.slane %v2128_v6, %v2210_v57  ;;  %v2222_v51 = vrot.slane %v2128_v6, %v2221_v47 }
0x102d   :  { %2151 = vbcast.lane.b32.xlu0 %v2145_v35, 264  ;;  %2147 = vbcast.lane.b32.xlu1 %v2145_v35, 256 }
0x102e   :  { %v2133_v60 = vpop.f32.mrb[12].mxu0 }
0x102f   :  { %v4473_v1 = vpop.f32.mrb[13].mxu0  ;;  %v2238_v29 = vrot.slane %v2133_v60, %v5074_v17  ;;  %v2231_v28 = vcombine.high %v2133_v60, %v2133_v60 }
0x1031   :  { %2169 = vbcast.lane.b32.xlu0 %v2167_v18, 256  ;;  %2158 = vbcast.lane.b32.xlu1 %v2156_v50, 256  ;;  %v2254_v14 = vrot.slane %v2238_v29, %v5074_v17  ;;  %v2246_v0 = vcombine.high %v2238_v29, %v2238_v29  ;;  %v2245_v41 = vrot.slane %v2231_v28, %v5074_v17 }
0x1033   :  { %v2283_v37 = vrot.slane %v2254_v14, %v5083_v27  ;;  %v2276_v56 = vcombine.high %v2254_v14, %v2254_v14  ;;  %v2268_v33 = vrot.slane %v2246_v0, %v5074_v17  ;;  %v2247_v9 = vcombine.high %v2245_v41, %v2245_v41 }
0x1034   :  { %v2261_v40 = vrot.slane %v2245_v41, %v5074_v17 }
0x1035   :  { %2180 = vbcast.lane.b32.xlu0 %v2178_v46, 256  ;;  %2162 = vbcast.lane.b32.xlu1 %v2156_v50, 264  ;;  %v2291_v55 = vrot.slane %v2276_v56, %v5083_v27  ;;  %v2287_v20 = vrot.slane %v2268_v33, %v5083_v27  ;;  %v2278_v45 = vcombine.high %v2268_v33, %v2268_v33 }
0x1036   :  { %v2299_v38 = vrot.slane %v2261_v40, %v5083_v27  ;;  %v2275_v5 = vrot.slane %v2247_v9, %v5074_v17 }
0x1037   :  { %v2295_v7 = vrot.slane %v2278_v45, %v5083_v27 }
0x1039   :  { %2191 = vbcast.lane.b32.xlu0 %v2189_v42, 256  ;;  %2173 = vbcast.lane.b32.xlu1 %v2167_v18, 264  ;;  %v2303_v18 = vrot.slane %v2275_v5, %v5083_v27 }
0x103d   :  { %2202 = vbcast.lane.b32.xlu0 %v2200_v32, 256  ;;  %2184 = vbcast.lane.b32.xlu1 %v2178_v46, 264  ;;  %v2277_v46 = vcombine.high %v2261_v40, %v2261_v40 }
0x103f   :  { %v2307_v29 = vrot.slane %v2277_v46, %v5083_v27 }
0x1041   :  { %2213 = vbcast.lane.b32.xlu0 %v2211_v15, 256  ;;  %2195 = vbcast.lane.b32.xlu1 %v2189_v42, 264 }
0x1045   :  { %2224 = vbcast.lane.b32.xlu0 %v2222_v51, 256  ;;  %2206 = vbcast.lane.b32.xlu1 %v2200_v32, 264 }
0x1049   :  { %2217 = vbcast.lane.b32.xlu1 %v2211_v15, 264 }
0x104d   :  { %2228 = vbcast.lane.b32.xlu1 %v2222_v51, 264 }
0x109f   :  { %v2152_v11 = vpop.permute.xlu0 %2151  ;;  %v2148_v26 = vpop.permute.xlu1 %2147 }
0x10a0   :  { %v5571_v4 = vmul.f32 %v2283_v37, %v2152_v11  ;;  %v5573_v19 = vmul.f32 %v2283_v37, %v2148_v26  ;;  %v2279_v37 = vcombine.high %v2275_v5, %v2275_v5 }
0x10a2   :  { %v2339_v10 = vsel %vm54_vm1, %v5571_v4, -inf  ;;  %v2336_v23 = vsel %vm54_vm1, %v5573_v19, -inf  ;;  %v2311_v26 = vrot.slane %v2279_v37, %v5083_v27 }
0x10a3   :  { %v2170_v63 = vpop.permute.xlu0 %2169  ;;  %v2159_v52 = vpop.permute.xlu1 %2158  ;;  %2340 = vmax.xlane.f32.xlu1 %v2339_v10  ;;  %2337 = vmax.xlane.f32.xlu0 %v2336_v23 }
0x10a4   :  { %v5582_v43 = vmul.f32 %v2291_v55, %v2170_v63  ;;  %v5584_v22 = vmul.f32 %v2287_v20, %v2159_v52 }
0x10a6   :  { %v2348_v49 = vsel %vm54_vm1, %v5582_v43, -inf  ;;  %v2342_v12 = vsel %vm54_vm1, %v5584_v22, -inf }
0x10a7   :  { %v2181_v59 = vpop.permute.xlu0 %2180  ;;  %v2163_v44 = vpop.permute.xlu1 %2162  ;;  %2349 = vmax.xlane.f32.xlu1 %v2348_v49  ;;  %2343 = vmax.xlane.f32.xlu0 %v2342_v12 }
0x10a8   :  { %v5592_v30 = vmul.f32 %v2295_v7, %v2181_v59  ;;  %v5594_v3 = vmul.f32 %v2287_v20, %v2163_v44  ;;  %v5641_v12 = vpop.f32.mrb[14].mxu0 }
0x10a9   :  { %v4476_v59 = vpop.f32.mrb[15].mxu0 }
0x10aa   :  { %v2345_v36 = vsel %vm54_vm1, %v5594_v3, -inf  ;;  %v2354_v54 = vsel %vm54_vm1, %v5592_v30, -inf }
0x10ab   :  { %v2192_v6 = vpop.permute.xlu0 %2191  ;;  %v2174_v8 = vpop.permute.xlu1 %2173  ;;  %2346 = vmax.xlane.f32.xlu0 %v2345_v36  ;;  %2355 = vmax.xlane.f32.xlu1 %v2354_v54 }
0x10ac   :  { %v5602_v35 = vmul.f32 %v2299_v38, %v2192_v6  ;;  %v5604_v60 = vmul.f32 %v2291_v55, %v2174_v8 }
0x10ae   :  { %v2351_v50 = vsel %vm54_vm1, %v5604_v60, -inf  ;;  %v2360_v1 = vsel %vm54_vm1, %v5602_v35, -inf }
0x10af   :  { %v2203_v42 = vpop.permute.xlu0 %2202  ;;  %v2185_v32 = vpop.permute.xlu1 %2184  ;;  %2352 = vmax.xlane.f32.xlu0 %v2351_v50  ;;  %2361 = vmax.xlane.f32.xlu1 %v2360_v1 }
0x10b0   :  { %v5611_v15 = vmul.f32 %v2303_v18, %v2203_v42  ;;  %v5613_v51 = vmul.f32 %v2295_v7, %v2185_v32 }
0x10b2   :  { %v2357_v14 = vsel %vm54_vm1, %v5613_v51, -inf  ;;  %v2366_v0 = vsel %vm54_vm1, %v5611_v15, -inf }
0x10b3   :  { %v2214_v28 = vpop.permute.xlu0 %2213  ;;  %v2196_v56 = vpop.permute.xlu1 %2195  ;;  %2358 = vmax.xlane.f32.xlu0 %v2357_v14  ;;  %2367 = vmax.xlane.f32.xlu1 %v2366_v0 }
0x10b4   :  { %v5620_v33 = vmul.f32 %v2307_v29, %v2214_v28  ;;  %v5622_v11 = vmul.f32 %v2299_v38, %v2196_v56 }
0x10b6   :  { %v2363_v41 = vsel %vm54_vm1, %v5622_v11, -inf  ;;  %v2372_v55 = vsel %vm54_vm1, %v5620_v33, -inf }
0x10b7   :  { %v2225_v20 = vpop.permute.xlu0 %2224  ;;  %v2207_v10 = vpop.permute.xlu1 %2206  ;;  %2364 = vmax.xlane.f32.xlu0 %v2363_v41  ;;  %2373 = vmax.xlane.f32.xlu1 %v2372_v55 }
0x10b8   :  { %v5629_v23 = vmul.f32 %v2311_v26, %v2225_v20  ;;  %v5631_v45 = vmul.f32 %v2303_v18, %v2207_v10 }
0x10ba   :  { %v2369_v63 = vsel %vm54_vm1, %v5631_v45, -inf  ;;  %v2378_v52 = vsel %vm54_vm1, %v5629_v23, -inf }
0x10bb   :  { %v2218_v9 = vpop.permute.xlu1 %2217  ;;  %2370 = vmax.xlane.f32.xlu0 %v2369_v63  ;;  %2379 = vmax.xlane.f32.xlu1 %v2378_v52 }
0x10bc   :  { %v5637_v7 = vmul.f32 %v2307_v29, %v2218_v9 }
0x10be   :  { %v2375_v49 = vsel %vm54_vm1, %v5637_v7, -inf }
0x10bf   :  { %v2229_v40 = vpop.permute.xlu1 %2228  ;;  %2376 = vmax.xlane.f32.xlu0 %v2375_v49 }
0x10c0   :  { %v5643_v44 = vmul.f32 %v2311_v26, %v2229_v40 }
0x10c2   :  { %v2381_v38 = vsel %vm54_vm1, %v5643_v44, -inf }
0x10c3   :  { %2382 = vmax.xlane.f32.xlu0 %v2381_v38 }
0x1130   :  { %v2341_v36 = vpop.xlane.xlu1 %2340  ;;  %v2338_v54 = vpop.xlane.xlu0 %2337 }
0x1131   :  { %v2385_v5 = vsub.f32 %v5571_v4, %v2341_v36  ;;  %v2384_v6 = vsub.f32 %v5573_v19, %v2338_v54 }
0x1133   :  { %v2402_v8 = vmul.f32 1.442695, %v2385_v5  ;;  %v2400_v18 = vmul.f32 1.442695, %v2384_v6 }
0x1134   :  { %v2350_v50 = vpop.xlane.xlu1 %2349  ;;  %v2344_v1 = vpop.xlane.xlu0 %2343 }
0x1135   :  { %4750 = vpow2.f32 %v2402_v8  ;;  %v2388_v46 = vsub.f32 %v5582_v43, %v2350_v50  ;;  %v2386_v42 = vsub.f32 %v5584_v22, %v2344_v1 }
0x1136   :  { %4752 = vpow2.f32 %v2400_v18 }
0x1137   :  { %v2404_v32 = vmul.f32 1.442695, %v2386_v42  ;;  %v2408_v29 = vmul.f32 1.442695, %v2388_v46 }
0x1138   :  { %v2347_v14 = vpop.xlane.xlu0 %2346  ;;  %v2356_v0 = vpop.xlane.xlu1 %2355 }
0x1139   :  { %v2387_v37 = vsub.f32 %v5594_v3, %v2347_v14  ;;  %v2390_v4 = vsub.f32 %v5592_v30, %v2356_v0  ;;  %4754 = vpow2.f32 %v2404_v32 }
0x113a   :  { %4756 = vpow2.f32 %v2408_v29 }
0x113b   :  { %v2406_v19 = vmul.f32 1.442695, %v2387_v37  ;;  %v2412_v28 = vmul.f32 1.442695, %v2390_v4 }
0x113c   :  { %v2353_v56 = vpop.xlane.xlu0 %2352  ;;  %v2362_v26 = vpop.xlane.xlu1 %2361 }
0x113d   :  { %4758 = vpow2.f32 %v2406_v19  ;;  %v2389_v43 = vsub.f32 %v5604_v60, %v2353_v56  ;;  %v2392_v22 = vsub.f32 %v5602_v35, %v2362_v26 }
0x113e   :  { %4760 = vpow2.f32 %v2412_v28 }
0x113f   :  { %v5655_v41 = vpop.eup %4750  ;;  %v2410_v55 = vmul.f32 1.442695, %v2389_v43  ;;  %v2416_v3 = vmul.f32 1.442695, %v2392_v22  ;;  %v2488_v43 = vrot.slane %v5641_v12, %v5074_v17 }
0x1140   :  { %v5657_v20 = vpop.eup %4752  ;;  %v2359_v10 = vpop.xlane.xlu0 %2358  ;;  %v2435_v63 = vsel %vm54_vm1, %v5655_v41, 0.0 }
0x1141   :  { %v2368_v30 = vpop.xlane.xlu1 %2367  ;;  %4762 = vpow2.f32 %v2410_v55  ;;  %v2391_v52 = vsub.f32 %v5613_v51, %v2359_v10  ;;  %2436 = vadd.xlane.f32.xlu0 %v2435_v63  ;;  %v2432_v35 = vsel %vm54_vm1, %v5657_v20, 0.0  ;;  %v2496_v63 = vcombine.high %v2488_v43, %v2488_v43 }
0x1142   :  { %v2394_v9 = vsub.f32 %v5611_v15, %v2368_v30  ;;  %2433 = vadd.xlane.f32.xlu1 %v2432_v35  ;;  %4764 = vpow2.f32 %v2416_v3 }
0x1143   :  { %v2414_v60 = vmul.f32 1.442695, %v2391_v52  ;;  %v5665_v49 = vpop.eup %4754  ;;  %v2504_v52 = vrot.slane %v2488_v43, %v5074_v17 }
0x1144   :  { %v2420_v40 = vmul.f32 1.442695, %v2394_v9  ;;  %v2365_v59 = vpop.xlane.xlu0 %2364  ;;  %v2438_v15 = vsel %vm54_vm1, %v5665_v49, 0.0  ;;  %v5671_v51 = vpop.eup %4756 }
0x1145   :  { %v2374_v38 = vpop.xlane.xlu1 %2373  ;;  %4766 = vpow2.f32 %v2414_v60  ;;  %v2393_v36 = vsub.f32 %v5622_v11, %v2365_v59  ;;  %v2444_v46 = vsel %vm54_vm1, %v5671_v51, 0.0 }
0x1146   :  { %v2396_v54 = vsub.f32 %v5620_v33, %v2374_v38  ;;  %2439 = vadd.xlane.f32.xlu1 %v2438_v15  ;;  %4768 = vpow2.f32 %v2420_v40  ;;  %v2518_v40 = vrot.slane %v2496_v63, %v5074_v17  ;;  %v2533_v38 = vrot.slane %v2504_v52, %v5083_v27 }
0x1147   :  { %v5673_v5 = vpop.eup %4758  ;;  %v2418_v6 = vmul.f32 1.442695, %v2393_v36  ;;  %v2481_v15 = vcombine.high %v5641_v12, %v5641_v12 }
0x1148   :  { %v2424_v8 = vmul.f32 1.442695, %v2396_v54  ;;  %v2371_v18 = vpop.xlane.xlu0 %2370  ;;  %v2441_v1 = vsel %vm54_vm1, %v5673_v5, 0.0  ;;  %v5681_v42 = vpop.eup %4760 }
0x1149   :  { %v2380_v50 = vpop.xlane.xlu1 %2379  ;;  %4770 = vpow2.f32 %v2418_v6  ;;  %v2395_v11 = vsub.f32 %v5631_v45, %v2371_v18  ;;  %2442 = vadd.xlane.f32.xlu0 %v2441_v1  ;;  %v2537_v1 = vrot.slane %v2518_v40, %v5083_v27 }
0x114a   :  { %v2398_v33 = vsub.f32 %v5629_v23, %v2380_v50  ;;  %2445 = vadd.xlane.f32.xlu1 %v2444_v46  ;;  %4772 = vpow2.f32 %v2424_v8  ;;  %v2450_v23 = vsel %vm54_vm1, %v5681_v42, 0.0  ;;  %v2526_v8 = vcombine.high %v2504_v52, %v2504_v52 }
0x114b   :  { %v5683_v32 = vpop.eup %4762  ;;  %v2422_v29 = vmul.f32 1.442695, %v2395_v11  ;;  %v2570_v50 = vmul.f32 %v5657_v20, %v2533_v38 }
0x114c   :  { %v2428_v14 = vmul.f32 1.442695, %v2398_v33  ;;  %v2377_v0 = vpop.xlane.xlu0 %2376  ;;  %v2447_v37 = vsel %vm54_vm1, %v5683_v32, 0.0  ;;  %v5690_v4 = vpop.eup %4764  ;;  %v2495_v33 = vrot.slane %v2481_v15, %v5074_v17 }
0x114d   :  { %4774 = vpow2.f32 %v2422_v29  ;;  %v2397_v45 = vsub.f32 %v5637_v7, %v2377_v0  ;;  %2448 = vadd.xlane.f32.xlu0 %v2447_v37  ;;  %v2456_v22 = vsel %vm54_vm1, %v5690_v4, 0.0  ;;  %v2571_v29 = vmul.f32 %v5655_v41, %v2533_v38 }
0x114e   :  { %2451 = vadd.xlane.f32.xlu1 %v2450_v23  ;;  %4776 = vpow2.f32 %v2428_v14  ;;  %v2586_v12 = vsel %vm54_vm1, %v2570_v50, 0.0  ;;  %v2572_v14 = vmul.f32 %v5665_v49, %v2537_v1  ;;  %v2541_v0 = vrot.slane %v2526_v8, %v5083_v27 }
0x114f   :  { %v5692_v19 = vpop.eup %4766  ;;  %v2426_v28 = vmul.f32 1.442695, %v2397_v45  ;;  %v2528_v37 = vcombine.high %v2518_v40, %v2518_v40  ;;  %v2497_v20 = vcombine.high %v2495_v33, %v2495_v33  ;;  %v2589_v45 = vsel %vm54_vm1, %v2571_v29, 0.0 }
0x1150   :  { %v2383_v56 = vpop.xlane.xlu0 %2382  ;;  %v2453_v26 = vsel %vm54_vm1, %v5692_v19, 0.0  ;;  %v5701_v55 = vpop.eup %4768  ;;  %v2573_v23 = vmul.f32 %v5673_v5, %v2537_v1  ;;  %v2574_v41 = vmul.f32 %v5671_v51, %v2541_v0  ;;  %v2575_v43 = vmul.f32 %v5683_v32, %v2541_v0 }
0x1151   :  { %4778 = vpow2.f32 %v2426_v28  ;;  %v2399_v7 = vsub.f32 %v5643_v44, %v2383_v56  ;;  %2454 = vadd.xlane.f32.xlu0 %v2453_v26  ;;  %v2462_v44 = vsel %vm54_vm1, %v5701_v55, 0.0  ;;  %v2511_v28 = vrot.slane %v2495_v33, %v5074_v17 }
0x1152   :  { %2457 = vadd.xlane.f32.xlu1 %v2456_v22  ;;  %v2592_v56 = vsel %vm54_vm1, %v2572_v14, 0.0  ;;  %v2545_v26 = vrot.slane %v2528_v37, %v5083_v27  ;;  %v2595_v49 = vsel %vm54_vm1, %v2573_v23, 0.0 }
0x1153   :  { %v5703_v3 = vpop.eup %4770  ;;  %v2430_v10 = vmul.f32 1.442695, %v2399_v7  ;;  %v2598_v7 = vsel %vm54_vm1, %v2574_v41, 0.0  ;;  %v2549_v5 = vrot.slane %v2511_v28, %v5083_v27 }
0x1154   :  { %v2459_v30 = vsel %vm54_vm1, %v5703_v3, 0.0  ;;  %v5710_v9 = vpop.eup %4772  ;;  %v2576_v22 = vmul.f32 %v5681_v42, %v2545_v26  ;;  %v2577_v51 = vmul.f32 %v5692_v19, %v2545_v26 }
0x1155   :  { %4780 = vpow2.f32 %v2430_v10  ;;  %2460 = vadd.xlane.f32.xlu0 %v2459_v30  ;;  %v2468_v59 = vsel %vm54_vm1, %v5710_v9, 0.0  ;;  %v2525_v10 = vrot.slane %v2497_v20, %v5074_v17  ;;  %v2601_v30 = vsel %vm54_vm1, %v2575_v43, 0.0 }
0x1156   :  { %2463 = vadd.xlane.f32.xlu1 %v2462_v44  ;;  %v2604_v63 = vsel %vm54_vm1, %v2576_v22, 0.0  ;;  %v2578_v52 = vmul.f32 %v5690_v4, %v2549_v5  ;;  %v2527_v44 = vcombine.high %v2511_v28, %v2511_v28  ;;  %v2607_v42 = vsel %vm54_vm1, %v2577_v51, 0.0 }
0x1157   :  { %v4775_v35 = vpop.eup %4774  ;;  %v2553_v32 = vrot.slane %v2525_v10, %v5083_v27  ;;  %v2529_v38 = vcombine.high %v2525_v10, %v2525_v10 }
0x1158   :  { %v2465_v60 = vsel %vm54_vm1, %v4775_v35, 0.0  ;;  %v5717_v36 = vpop.eup %4776  ;;  %v2610_v40 = vsel %vm54_vm1, %v2578_v52, 0.0  ;;  %v2557_v19 = vrot.slane %v2527_v44, %v5083_v27 }
0x1159   :  { %2466 = vadd.xlane.f32.xlu0 %v2465_v60  ;;  %v2474_v18 = vsel %vm54_vm1, %v5717_v36, 0.0  ;;  %v2579_v60 = vmul.f32 %v5703_v3, %v2549_v5  ;;  %v2581_v4 = vmul.f32 %v4775_v35, %v2553_v32 }
0x115a   :  { %2469 = vadd.xlane.f32.xlu1 %v2468_v59  ;;  %v2580_v59 = vmul.f32 %v5701_v55, %v2553_v32  ;;  %v2582_v8 = vmul.f32 %v5710_v9, %v2557_v19  ;;  %v5765_v9 = vadd.f32 %v5519_v21, %v5508_v61 }
0x115b   :  { %v4779_v54 = vpop.eup %4778  ;;  %v2613_v15 = vsel %vm54_vm1, %v2579_v60, 0.0  ;;  %v2619_v3 = vsel %vm54_vm1, %v2581_v4, 0.0 }
0x115c   :  { %v2471_v6 = vsel %vm54_vm1, %v4779_v54, 0.0  ;;  %v2583_v50 = vmul.f32 %v4779_v54, %v2557_v19  ;;  %v2622_v55 = vsel %vm54_vm1, %v2582_v8, 0.0  ;;  %v2013_v54 = vsel %vm54_vm1, %v5765_v9, 0.0 }
0x115d   :  { %2472 = vadd.xlane.f32.xlu0 %v2471_v6  ;;  %v2616_v6 = vsel %vm54_vm1, %v2580_v59, 0.0 }
0x115e   :  { %2475 = vadd.xlane.f32.xlu1 %v2474_v18  ;;  %v2561_v18 = vrot.slane %v2529_v38, %v5083_v27  ;;  %v2625_v33 = vsel %vm54_vm1, %v2583_v50, 0.0 }
0x115f   :  { %v4781_v11 = vpop.eup %4780 }
0x1160   :  { %v2477_v46 = vsel %vm54_vm1, %v4781_v11, 0.0  ;;  %v2584_v1 = vmul.f32 %v5717_v36, %v2561_v18  ;;  %v2585_v35 = vmul.f32 %v4781_v11, %v2561_v18  ;;  %v2046_v36 = vld [vmem:[#allocation5 + $0x110] sm:$0xff] }
0x1161   :  { %2478 = vadd.xlane.f32.xlu0 %v2477_v46 }
0x1162   :  { %2587 = vadd.xlane.f32.xlu1 %v2586_v12  ;;  %v2628_v46 = vsel %vm54_vm1, %v2584_v1, 0.0  ;;  %v2631_v29 = vsel %vm54_vm1, %v2585_v35, 0.0  ;;  %v4995_v12 = vmov 0  }
0x1163   :  { %4634 = vset.pattern.permute.xlu1 %v4995_v12  ;;  %4635 = vset.pattern.permute.xlu0 %v4995_v12 }
0x1165   :  { %2590 = vadd.xlane.f32.xlu0 %v2589_v45 }
0x1166   :  { %2593 = vadd.xlane.f32.xlu1 %v2592_v56 }
0x1169   :  { %2596 = vadd.xlane.f32.xlu0 %v2595_v49 }
0x116a   :  { %2599 = vadd.xlane.f32.xlu1 %v2598_v7 }
0x116d   :  { %2602 = vadd.xlane.f32.xlu0 %v2601_v30 }
0x116e   :  { %2605 = vadd.xlane.f32.xlu1 %v2604_v63 }
0x1171   :  { %2608 = vadd.xlane.f32.xlu0 %v2607_v42  ;;  %v6178_v42 = vlaneseq }
0x1172   :  { %2611 = vadd.xlane.f32.xlu1 %v2610_v40 }
0x1173   :  { %v2683_v60 = vand.u32 127, %v6178_v42 }
0x1175   :  { %2614 = vadd.xlane.f32.xlu0 %v2613_v15  ;;  %v2688_v15 = vadd.s32 4294967288, %v2683_v60  ;;  %v5775_v12 = vsub.s32 %v2683_v60, %v5071_v16 }
0x1176   :  { %2617 = vadd.xlane.f32.xlu1 %v2616_v6 }
0x1177   :  { %v5772_v1 = vsub.s32 %v2688_v15, %v5071_v16 }
0x1179   :  { %2620 = vadd.xlane.f32.xlu0 %v2619_v3 }
0x117a   :  { %2623 = vadd.xlane.f32.xlu1 %v2622_v55 }
0x117d   :  { %2626 = vadd.xlane.f32.xlu0 %v2625_v33 }
0x117e   :  { %2629 = vadd.xlane.f32.xlu1 %v2628_v46 }
0x1181   :  { %2632 = vadd.xlane.f32.xlu0 %v2631_v29 }
0x1185   :  { %2014 = vadd.xlane.f32.xlu0 %v2013_v54 }
0x118f   :  { %2864 = vperm.xlu1 %4634, %v2046_v36  }
0x11ce   :  { %v2437_v14 = vpop.xlane.xlu0 %2436 }
0x11cf   :  { %v2434_v11 = vpop.xlane.xlu1 %2433  ;;  %4782 = vrcp.f32 %v2437_v14 }
0x11d0   :  { %4784 = vrcp.f32 %v2434_v11 }
0x11d3   :  { %v2440_v0 = vpop.xlane.xlu1 %2439 }
0x11d4   :  { %4786 = vrcp.f32 %v2440_v0 }
0x11d6   :  { %v2443_v37 = vpop.xlane.xlu0 %2442 }
0x11d7   :  { %v2446_v20 = vpop.xlane.xlu1 %2445  ;;  %4788 = vrcp.f32 %v2443_v37 }
0x11d8   :  { %4790 = vrcp.f32 %v2446_v20 }
0x11d9   :  { %v4783_v32 = vpop.eup %4782 }
0x11da   :  { %v2449_v45 = vpop.xlane.xlu0 %2448  ;;  %v4785_v44 = vpop.eup %4784 }
0x11db   :  { %v2452_v61 = vpop.xlane.xlu1 %2451  ;;  %4792 = vrcp.f32 %v2449_v45 }
0x11dc   :  { %4794 = vrcp.f32 %v2452_v61 }
0x11de   :  { %v2455_v21 = vpop.xlane.xlu0 %2454  ;;  %v4787_v59 = vpop.eup %4786 }
0x11df   :  { %v2458_v23 = vpop.xlane.xlu1 %2457  ;;  %4796 = vrcp.f32 %v2455_v21 }
0x11e1   :  { %v4789_v38 = vpop.eup %4788 }
0x11e2   :  { %v2461_v28 = vpop.xlane.xlu0 %2460  ;;  %v4791_v4 = vpop.eup %4790 }
0x11e3   :  { %v2464_v56 = vpop.xlane.xlu1 %2463  ;;  %4798 = vrcp.f32 %v2461_v28 }
0x11e5   :  { %v4793_v6 = vpop.eup %4792 }
0x11e6   :  { %v2467_v41 = vpop.xlane.xlu0 %2466  ;;  %v4795_v18 = vpop.eup %4794 }
0x11e7   :  { %v2470_v26 = vpop.xlane.xlu1 %2469  ;;  %4800 = vrcp.f32 %v2467_v41 }
0x11e8   :  { %4802 = vrcp.f32 %v2458_v23 }
0x11e9   :  { %4804 = vrcp.f32 %v2464_v56  ;;  %v4797_v55 = vpop.eup %4796 }
0x11ea   :  { %v2473_v49 = vpop.xlane.xlu0 %2472  ;;  %4806 = vrcp.f32 %v2470_v26 }
0x11eb   :  { %v2476_v43 = vpop.xlane.xlu1 %2475  ;;  %4808 = vrcp.f32 %v2473_v49 }
0x11ec   :  { %4810 = vrcp.f32 %v2476_v43 }
0x11ed   :  { %v4799_v46 = vpop.eup %4798 }
0x11ee   :  { %v2479_v7 = vpop.xlane.xlu0 %2478 }
0x11ef   :  { %v2588_v22 = vpop.xlane.xlu1 %2587  ;;  %4812 = vrcp.f32 %v2479_v7 }
0x11f0   :  { %v2635_v11 = vmul.f32 %v4785_v44, %v2588_v22 }
0x11f1   :  { %v4801_v36 = vpop.eup %4800 }
0x11f2   :  { %v2591_v5 = vpop.xlane.xlu0 %2590  ;;  %v4803_v20 = vpop.eup %4802 }
0x11f3   :  { %v2594_v10 = vpop.xlane.xlu1 %2593  ;;  %v2637_v33 = vmul.f32 %v4783_v32, %v2591_v5  ;;  %v4805_v28 = vpop.eup %4804 }
0x11f4   :  { %v2639_v29 = vmul.f32 %v4787_v59, %v2594_v10  ;;  %v4807_v49 = vpop.eup %4806  ;;  %v2687_v10 = vrot.slane %v2635_v11, %v5775_v12 }
0x11f5   :  { %v2692_v56 = vrot.slane %v2637_v33, %v5772_v1  ;;  %v4809_v5 = vpop.eup %4808 }
0x11f6   :  { %v2597_v30 = vpop.xlane.xlu0 %2596  ;;  %v2698_v43 = vrot.slane %v2639_v29, %v5775_v12  ;;  %v4811_v59 = vpop.eup %4810 }
0x11f7   :  { %v2600_v51 = vpop.xlane.xlu1 %2599  ;;  %v2641_v3 = vmul.f32 %v4789_v38, %v2597_v30 }
0x11f8   :  { %v2643_v14 = vmul.f32 %v4791_v4, %v2600_v51 }
0x11f9   :  { %v2702_v45 = vrot.slane %v2641_v3, %v5772_v1  ;;  %v4813_v3 = vpop.eup %4812 }
0x11fa   :  { %v2603_v63 = vpop.xlane.xlu0 %2602  ;;  %v2707_v30 = vrot.slane %v2643_v14, %v5775_v12 }
0x11fb   :  { %v2606_v52 = vpop.xlane.xlu1 %2605  ;;  %v2645_v35 = vmul.f32 %v4793_v6, %v2603_v63  ;;  %v2703_v32 = vsel %vm2693_vm13, %v2702_v45, %v2698_v43  ;;  %v5814_v43 = vld [vmem:[#allocation5 + $0x118] sm:$0xff] }
0x11fc   :  { %v2647_v61 = vmul.f32 %v4795_v18, %v2606_v52 }
0x11fd   :  { %v2711_v41 = vrot.slane %v2645_v35, %v5772_v1 }
0x11fe   :  { %v2609_v40 = vpop.xlane.xlu0 %2608  ;;  %v2716_v44 = vrot.slane %v2647_v61, %v5775_v12 }
0x11ff   :  { %v2612_v19 = vpop.xlane.xlu1 %2611  ;;  %v2649_v54 = vmul.f32 %v4797_v55, %v2609_v40  ;;  %v2712_v38 = vsel %vm2693_vm13, %v2711_v41, %v2707_v30 }
0x1200   :  { %v2651_v26 = vmul.f32 %v4803_v20, %v2612_v19  ;;  %v2694_v19 = vsel %vm2693_vm13, %v2692_v56, %v2687_v10 }
0x1201   :  { %v2720_v7 = vrot.slane %v2649_v54, %v5772_v1 }
0x1202   :  { %v2615_v8 = vpop.xlane.xlu0 %2614  ;;  %v2725_v15 = vrot.slane %v2651_v26, %v5775_v12 }
0x1203   :  { %v2618_v50 = vpop.xlane.xlu1 %2617  ;;  %v2653_v0 = vmul.f32 %v4799_v46, %v2615_v8  ;;  %v2721_v4 = vsel %vm2693_vm13, %v2720_v7, %v2716_v44 }
0x1204   :  { %v2655_v22 = vmul.f32 %v4805_v28, %v2618_v50  ;;  %v2758_v50 = vsel %vm460_vm3, %v2703_v32, %v2694_v19  ;;  %v5807_v28 = vld [vmem:[#allocation5 + $0x108] sm:$0xff] }
0x1205   :  { %v2729_v51 = vrot.slane %v2653_v0, %v5772_v1  ;;  %v2759_v46 = vsel %vm462_vm4, %v2712_v38, %v2758_v50 }
0x1206   :  { %v2621_v37 = vpop.xlane.xlu0 %2620  ;;  %v2734_v6 = vrot.slane %v2655_v22, %v5775_v12 }
0x1207   :  { %v2657_v21 = vmul.f32 %v4801_v36, %v2621_v37  ;;  %v2624_v23 = vpop.xlane.xlu1 %2623  ;;  %v2730_v55 = vsel %vm2693_vm13, %v2729_v51, %v2725_v15  ;;  %v2760_v36 = vsel %vm464_vm7, %v2721_v4, %v2759_v46  ;;  %v5837_v46 = vld [vmem:[#allocation5 + $0x130] sm:$0xff] }
0x1208   :  { %v2659_v63 = vmul.f32 %v4807_v49, %v2624_v23  ;;  %v2761_v14 = vsel %vm1711_vm12, %v2730_v55, %v2760_v36 }
0x1209   :  { %v2738_v42 = vrot.slane %v2657_v21, %v5772_v1 }
0x120a   :  { %v2627_v52 = vpop.xlane.xlu0 %2626  ;;  %v2743_v33 = vrot.slane %v2659_v63, %v5775_v12 }
0x120b   :  { %v2661_v60 = vmul.f32 %v4809_v5, %v2627_v52  ;;  %v2630_v40 = vpop.xlane.xlu1 %2629  ;;  %v2739_v29 = vsel %vm2693_vm13, %v2738_v42, %v2734_v6 }
0x120c   :  { %v2663_v18 = vmul.f32 %v4811_v59, %v2630_v40  ;;  %v2762_v45 = vsel %vm471_vm5, %v2739_v29, %v2761_v14 }
0x120d   :  { %v2747_v8 = vrot.slane %v2661_v60, %v5772_v1 }
0x120e   :  { %v2633_v35 = vpop.xlane.xlu0 %2632  ;;  %v2752_v0 = vrot.slane %v2663_v18, %v5775_v12 }
0x120f   :  { %v2665_v54 = vmul.f32 %v4813_v3, %v2633_v35  ;;  %v2748_v11 = vsel %vm2693_vm13, %v2747_v8, %v2743_v33  ;;  %v5821_v3 = vpop.permute.xlu1 %2864  ;;  %v5826_v33 = vld [vmem:[#allocation5 + $0x120] sm:$0xff]  ;;  %v5829_v35 = vld [vmem:[#allocation5 + $0x128] sm:$0xff] }
0x1210   :  { %v2763_v23 = vsel %vm473_vm6, %v2748_v11, %v2762_v45 }
0x1211   :  { %v2756_v37 = vrot.slane %v2665_v54, %v5772_v1 }
0x1212   :  { %v2015_v20 = vpop.xlane.xlu0 %2014 }
0x1213   :  { %v2017_v61 = vmul.f32 0.0625, %v2015_v20  ;;  %v2757_v21 = vsel %vm2693_vm13, %v2756_v37, %v2752_v0 }
0x1214   :  { %v2764_v56 = vsel %vm475_vm8, %v2757_v21, %v2763_v23 }
0x1215   :  { %v2019_v41 = vsub.f32 %v5765_v9, %v2017_v61  ;;  %4478 = vmatpush3.msra.mxu1 %v2764_v56 }
0x1216   :  { %4480 = vmatmul.mubr.msk.f32.vlgmr.msra.gmra.mrb[12].mxu1 %vm744_vm11, %v5807_v28 }
0x1217   :  { %v2021_v26 = vmul.f32 %v2019_v41, %v2019_v41  ;;  %4484 = vmatprep.mubr.msk.f32.mxu1 %vm744_vm11, %v5814_v43 }
0x1219   :  { %v2025_v49 = vsel %vm54_vm1, %v2021_v26, 0.0 }
0x121a   :  { %2026 = vadd.xlane.f32.xlu0 %v2025_v49 }
0x12a7   :  { %v2027_v29 = vpop.xlane.xlu0 %2026 }
0x12a8   :  { %v2029_v54 = vmul.f32 0.0625, %v2027_v29 }
0x12aa   :  { %v2031_v36 = vadd.f32 1e-05, %v2029_v54 }
0x12e9   :  { %v2835_v7 = vpop.f32.mrb[12].mxu1 }
0x12ea   :  { %v2839_v22 = vadd.f32 %v2835_v7, %v5526_v2  ;;  %v4481_v5 = vpop.f32.mrb[13].mxu1  ;;  %v5844_v7 = vld [vmem:[#allocation5 + $0x138] sm:$0xff] }
0x12eb   :  { %v4888_v5 = vld [vmem:[#allocation5 + $0xf0] sm:$0xff] }
0x12ec   :  { %v2840_v10 = vsel %vm54_vm1, %v2839_v22, 0.0 }
0x12ed   :  { %v2841_v9 = vrot.slane %v2840_v10, 4 }
0x12ef   :  { %v2842_v30 = vadd.f32 %v2841_v9, %v2840_v10 }
0x12f1   :  { %v2843_v51 = vrot.slane %v2842_v30, 2 }
0x12f3   :  { %v2844_v63 = vadd.f32 %v2843_v51, %v2842_v30 }
0x12f5   :  { %v2845_v52 = vrot.slane %v2844_v63, 1 }
0x12f7   :  { %v2846_v32 = vadd.f32 %v2845_v52, %v2844_v63 }
0x12f9   :  { %v2848_v44 = vmul.f32 0.125, %v2846_v32 }
0x12fb   :  { %v2849_v42 = vsub.f32 %v2839_v22, %v2848_v44 }
0x12fd   :  { %v2850_v60 = vmul.f32 %v2849_v42, %v2849_v42 }
0x12ff   :  { %v2851_v40 = vsel %vm54_vm1, %v2850_v60, 0.0 }
0x1300   :  { %v2852_v59 = vrot.slane %v2851_v40, 4 }
0x1302   :  { %v2853_v19 = vadd.f32 %v2852_v59, %v2851_v40 }
0x1304   :  { %v2854_v38 = vrot.slane %v2853_v19, 2 }
0x1306   :  { %v2855_v15 = vadd.f32 %v2854_v38, %v2853_v19 }
0x1308   :  { %v2856_v4 = vrot.slane %v2855_v15, 1 }
0x130a   :  { %v2857_v2 = vadd.f32 %v2856_v4, %v2855_v15 }
0x130c   :  { %v2858_v6 = vmul.f32 0.125, %v2857_v2 }
0x130e   :  { %v2859_v8 = vadd.f32 1e-05, %v2858_v6 }
0x1310   :  { %4814 = vrsqrt.f32 %v2859_v8 }
0x1311   :  { %4816 = vrsqrt.f32 %v2031_v36 }
0x131a   :  { %v4815_v18 = vpop.eup %4814 }
0x131b   :  { %v2861_v50 = vmul.f32 %v4815_v18, %v2849_v42  ;;  %v4817_v61 = vpop.eup %4816 }
0x131c   :  { %v2035_v49 = vmul.f32 %v4817_v61, %v2019_v41 }
0x131d   :  { %v5824_v55 = vmul.f32 %v5821_v3, %v2861_v50 }
0x131e   :  { %v5848_v22 = vmul.f32 %v5523_v25, %v2035_v49 }
0x131f   :  { %4482 = vmatprep.subr.mxu1 %v5824_v55 }
0x1320   :  { %4483 = vmatpush3.msra.mxu1 %v5824_v55 }
0x1321   :  { %4485 = vmatmul.mubr.msk.f32.vlgmr.msra.gmra.mrb[14].mxu1 %vm744_vm11, %v5826_v33  ;;  %4512 = vmatprep.subr.mxu1 %v6176_v53 }
0x1322   :  { %4487 = vmatprep.mubr.msk.f32.mxu1 %vm744_vm11, %v5829_v35 }
0x1325   :  { %4488 = vmatmul.mubr.msk.f32.gmra.mrb[16].mxu1 %vm744_vm11, %v5837_v46 }
0x1326   :  { %4514 = vmatprep.mubr.msk.f32.mxu1 %vm4990_vm0, %v6176_v53 }
0x13f4   :  { %v4486_v11 = vpop.f32.mrb[14].mxu1 }
0x13f5   :  { %v2966_v14 = vmax.f32 %v4486_v11, 0.0  ;;  %v2946_v0 = vpop.f32.mrb[15].mxu1 }
0x13f6   :  { %v2965_v37 = vmax.f32 %v2946_v0, 0.0 }
0x13f8   :  { %v4598_v20 = vpack.c.bf16 %v2966_v14, %v2965_v37  ;;  %v4489_v45 = vpop.f32.mrb[16].mxu1 }
0x13f9   :  { %v2968_v21 = vmax.f32 %v4489_v45, 0.0  ;;  %v2956_v23 = vpop.f32.mrb[17].mxu1 }
0x13fa   :  { %v2967_v56 = vmax.f32 %v2956_v23, 0.0  ;;  %4599 = vmatpush3.bf16.msra.mxu0 %v4598_v20 }
0x13fb   :  { %4600 = vmatprep.subr.bf16.mxu0 %v6177_v13 }
0x13fc   :  { %v4601_v26 = vpack.c.bf16 %v2968_v21, %v2967_v56 }
0x13fe   :  { %4602 = vmatpush3.bf16.msra.mxu0 %v4601_v26 }
0x13ff   :  { %4501 = vmatprep.subr.mxu0 %v6176_v53 }
0x1401   :  { %4499 = vmatmul.mubr.msk.f32.vlgmr.msra.gmra.mrb[16].mxu0 %vm647_vm10, %v5844_v7 }
0x1402   :  { %4502 = vmatpush3.msra.mxu0 %v5848_v22  ;;  %4503 = vmatprep.mubr.msk.f32.mxu0 %vm4990_vm0, %v6176_v53 }
0x1403   :  { %4603 = vmatprep.subr.bf16.mxu0 %v6177_v13 }
0x1405   :  { %4504 = vmatmul.mubr.msk.f32.vlgmr.msra.gmra.mrb[18].mxu0 %vm744_vm11, %v4888_v5 }
0x1406   :  { %4506 = vmatprep.mubr.msk.f32.mxu0 %vm4990_vm0, %v6176_v53 }
0x1409   :  { %4507 = vmatmul.mubr.msk.f32.gmra.mrb[20].mxu0 %vm744_vm11, %v5533_v24 }
0x140a   :  { %4509 = vmatprep.mubr.msk.f32.mxu0 %vm4990_vm0, %v6176_v53 }
0x140d   :  { %4510 = vmatmul.mubr.msk.f32.gmra.mrb[22].mxu0 %vm744_vm11, %v5539_v31 }
0x140e   :  { %4533 = vmatprep.mubr.msk.f32.mxu0 %vm4990_vm0, %v6176_v53 }
0x14d4   :  { %v5867_v25 = vpop.f32.mrb[16].mxu0 }
0x14d5   :  { %v4500_v41 = vpop.f32.mrb[17].mxu0 }
0x14d8   :  { %v3136_v10 = vpop.f32.mrb[18].mxu0 }
0x14d9   :  { %v4505_v9 = vpop.f32.mrb[19].mxu0  ;;  %v3153_v30 = vrot.slane %v3136_v10, %v5083_v27  ;;  %v3164_v24 = vrot.slane %v3136_v10, %v2155_v39  ;;  %v3175_v63 = vrot.slane %v3136_v10, %v2166_v48  ;;  %v3186_v53 = vrot.slane %v3136_v10, %v2177_v62 }
0x14da   :  { %v3197_v52 = vrot.slane %v3136_v10, %v2188_v58  ;;  %v3208_v32 = vrot.slane %v3136_v10, %v2199_v34  ;;  %v3219_v48 = vrot.slane %v3136_v10, %v2210_v57  ;;  %v3230_v39 = vrot.slane %v3136_v10, %v2221_v47 }
0x14db   :  { %3159 = vbcast.lane.b32.xlu1 %v3153_v30, 264  ;;  %3155 = vbcast.lane.b32.xlu0 %v3153_v30, 256 }
0x14dc   :  { %v3141_v51 = vpop.f32.mrb[20].mxu0 }
0x14dd   :  { %v4508_v31 = vpop.f32.mrb[21].mxu0  ;;  %v3246_v62 = vrot.slane %v3141_v51, %v5074_v17  ;;  %v3239_v2 = vcombine.high %v3141_v51, %v3141_v51 }
0x14df   :  { %3166 = vbcast.lane.b32.xlu1 %v3164_v24, 256  ;;  %3181 = vbcast.lane.b32.xlu0 %v3175_v63, 264  ;;  %v3254_v58 = vcombine.high %v3246_v62, %v3246_v62  ;;  %v3262_v44 = vrot.slane %v3246_v62, %v5074_v17  ;;  %v3253_v36 = vrot.slane %v3239_v2, %v5074_v17 }
0x14e0   :  { %v5950_v2 = vpop.f32.mrb[22].mxu0 }
0x14e1   :  { %v3291_v34 = vrot.slane %v3262_v44, %v5083_v27  ;;  %v3276_v42 = vrot.slane %v3254_v58, %v5074_v17  ;;  %v3284_v47 = vcombine.high %v3262_v44, %v3262_v44  ;;  %v3255_v61 = vcombine.high %v3253_v36, %v3253_v36 }
0x14e2   :  { %v3269_v23 = vrot.slane %v3253_v36, %v5074_v17 }
0x14e3   :  { %3170 = vbcast.lane.b32.xlu1 %v3164_v24, 264  ;;  %3192 = vbcast.lane.b32.xlu0 %v3186_v53, 264  ;;  %v3295_v16 = vrot.slane %v3276_v42, %v5083_v27  ;;  %v3299_v8 = vrot.slane %v3284_v47, %v5083_v27  ;;  %v3286_v18 = vcombine.high %v3276_v42, %v3276_v42 }
0x14e4   :  { %v3307_v10 = vrot.slane %v3269_v23, %v5083_v27  ;;  %v3283_v30 = vrot.slane %v3255_v61, %v5074_v17 }
0x14e5   :  { %v3303_v0 = vrot.slane %v3286_v18, %v5083_v27 }
0x14e7   :  { %3177 = vbcast.lane.b32.xlu1 %v3175_v63, 256  ;;  %3203 = vbcast.lane.b32.xlu0 %v3197_v52, 264 }
0x14eb   :  { %3188 = vbcast.lane.b32.xlu1 %v3186_v53, 256  ;;  %3214 = vbcast.lane.b32.xlu0 %v3208_v32, 264  ;;  %v3311_v53 = vrot.slane %v3283_v30, %v5083_v27 }
0x14ef   :  { %3199 = vbcast.lane.b32.xlu1 %v3197_v52, 256  ;;  %3225 = vbcast.lane.b32.xlu0 %v3219_v48, 264 }
0x14f3   :  { %3210 = vbcast.lane.b32.xlu1 %v3208_v32, 256  ;;  %3236 = vbcast.lane.b32.xlu0 %v3230_v39, 264  ;;  %v3285_v32 = vcombine.high %v3269_v23, %v3269_v23 }
0x14f7   :  { %3221 = vbcast.lane.b32.xlu1 %v3219_v48, 256 }
0x14fb   :  { %3232 = vbcast.lane.b32.xlu1 %v3230_v39, 256 }
0x154d   :  { %v3160_v60 = vpop.permute.xlu1 %3159  ;;  %v3156_v57 = vpop.permute.xlu0 %3155 }
0x154e   :  { %v5888_v40 = vmul.f32 %v3291_v34, %v3160_v60  ;;  %v5890_v59 = vmul.f32 %v3291_v34, %v3156_v57  ;;  %v3315_v34 = vrot.slane %v3285_v32, %v5083_v27  ;;  %v3287_v60 = vcombine.high %v3283_v30, %v3283_v30 }
0x1550   :  { %v3347_v19 = vsel %vm54_vm1, %v5888_v40, -inf  ;;  %v3344_v38 = vsel %vm54_vm1, %v5890_v59, -inf }
0x1551   :  { %v3167_v15 = vpop.permute.xlu1 %3166  ;;  %v3182_v4 = vpop.permute.xlu0 %3181  ;;  %3348 = vmax.xlane.f32.xlu0 %v3347_v19  ;;  %3345 = vmax.xlane.f32.xlu1 %v3344_v38 }
0x1552   :  { %v5897_v6 = vmul.f32 %v3295_v16, %v3167_v15  ;;  %v5905_v14 = vmul.f32 %v3299_v8, %v3182_v4  ;;  %v3319_v15 = vrot.slane %v3287_v60, %v5083_v27 }
0x1554   :  { %v3350_v50 = vsel %vm54_vm1, %v5897_v6, -inf  ;;  %v3359_v26 = vsel %vm54_vm1, %v5905_v14, -inf }
0x1555   :  { %v3171_v29 = vpop.permute.xlu1 %3170  ;;  %v3193_v54 = vpop.permute.xlu0 %3192  ;;  %3351 = vmax.xlane.f32.xlu0 %v3350_v50 }
0x1556   :  { %v5903_v11 = vmul.f32 %v3295_v16, %v3171_v29  ;;  %v5913_v56 = vmul.f32 %v3303_v0, %v3193_v54  ;;  %v4511_v29 = vpop.f32.mrb[23].mxu0 }
0x1558   :  { %v3353_v37 = vsel %vm54_vm1, %v5903_v11, -inf  ;;  %v3365_v24 = vsel %vm54_vm1, %v5913_v56, -inf }
0x1559   :  { %v3178_v20 = vpop.permute.xlu1 %3177  ;;  %v3204_v45 = vpop.permute.xlu0 %3203  ;;  %3354 = vmax.xlane.f32.xlu1 %v3353_v37 }
0x155a   :  { %v5910_v21 = vmul.f32 %v3299_v8, %v3178_v20  ;;  %v5923_v51 = vmul.f32 %v3307_v10, %v3204_v45 }
0x155c   :  { %v3356_v49 = vsel %vm54_vm1, %v5910_v21, -inf  ;;  %v3371_v62 = vsel %vm54_vm1, %v5923_v51, -inf }
0x155d   :  { %v3189_v5 = vpop.permute.xlu1 %3188  ;;  %v3215_v41 = vpop.permute.xlu0 %3214  ;;  %3360 = vmax.xlane.f32.xlu1 %v3359_v26  ;;  %3357 = vmax.xlane.f32.xlu0 %v3356_v49 }
0x155e   :  { %v5920_v9 = vmul.f32 %v3303_v0, %v3189_v5  ;;  %v5932_v39 = vmul.f32 %v3311_v53, %v3215_v41 }
0x1560   :  { %v3362_v63 = vsel %vm54_vm1, %v5920_v9, -inf  ;;  %v3377_v16 = vsel %vm54_vm1, %v5932_v39, -inf }
0x1561   :  { %v3200_v31 = vpop.permute.xlu1 %3199  ;;  %3366 = vmax.xlane.f32.xlu1 %v3365_v24  ;;  %3363 = vmax.xlane.f32.xlu0 %v3362_v63  ;;  %v3226_v48 = vpop.permute.xlu0 %3225 }
0x1562   :  { %v5930_v52 = vmul.f32 %v3307_v10, %v3200_v31  ;;  %v5941_v57 = vmul.f32 %v3315_v34, %v3226_v48 }
0x1564   :  { %v3368_v58 = vsel %vm54_vm1, %v5930_v52, -inf  ;;  %v3383_v18 = vsel %vm54_vm1, %v5941_v57, -inf }
0x1565   :  { %v3211_v44 = vpop.permute.xlu1 %3210  ;;  %3372 = vmax.xlane.f32.xlu1 %v3371_v62  ;;  %3369 = vmax.xlane.f32.xlu0 %v3368_v58  ;;  %v3237_v19 = vpop.permute.xlu0 %3236 }
0x1566   :  { %v5939_v42 = vmul.f32 %v3311_v53, %v3211_v44  ;;  %v5952_v8 = vmul.f32 %v3319_v15, %v3237_v19 }
0x1568   :  { %v3374_v47 = vsel %vm54_vm1, %v5939_v42, -inf  ;;  %v3389_v0 = vsel %vm54_vm1, %v5952_v8, -inf }
0x1569   :  { %v3222_v38 = vpop.permute.xlu1 %3221  ;;  %3378 = vmax.xlane.f32.xlu1 %v3377_v16  ;;  %3375 = vmax.xlane.f32.xlu0 %v3374_v47 }
0x156a   :  { %v5948_v4 = vmul.f32 %v3315_v34, %v3222_v38 }
0x156c   :  { %v3380_v50 = vsel %vm54_vm1, %v5948_v4, -inf }
0x156d   :  { %v3233_v54 = vpop.permute.xlu1 %3232  ;;  %3384 = vmax.xlane.f32.xlu1 %v3383_v18  ;;  %3381 = vmax.xlane.f32.xlu0 %v3380_v50 }
0x156e   :  { %v5958_v36 = vmul.f32 %v3319_v15, %v3233_v54 }
0x1570   :  { %v3386_v37 = vsel %vm54_vm1, %v5958_v36, -inf }
0x1571   :  { %3390 = vmax.xlane.f32.xlu1 %v3389_v0  ;;  %3387 = vmax.xlane.f32.xlu0 %v3386_v37 }
0x15de   :  { %v3349_v20 = vpop.xlane.xlu0 %3348  ;;  %v3346_v45 = vpop.xlane.xlu1 %3345 }
0x15df   :  { %v3393_v61 = vsub.f32 %v5888_v40, %v3349_v20  ;;  %v3392_v23 = vsub.f32 %v5890_v59, %v3346_v45 }
0x15e1   :  { %v3410_v26 = vmul.f32 1.442695, %v3393_v61  ;;  %v3408_v49 = vmul.f32 1.442695, %v3392_v23 }
0x15e2   :  { %v3352_v5 = vpop.xlane.xlu0 %3351 }
0x15e3   :  { %4818 = vpow2.f32 %v3410_v26  ;;  %v3394_v41 = vsub.f32 %v5897_v6, %v3352_v5 }
0x15e4   :  { %4820 = vpow2.f32 %v3408_v49 }
0x15e5   :  { %v3412_v10 = vmul.f32 1.442695, %v3394_v41 }
0x15e6   :  { %v3355_v30 = vpop.xlane.xlu1 %3354 }
0x15e7   :  { %4822 = vpow2.f32 %v3412_v10  ;;  %v3395_v24 = vsub.f32 %v5903_v11, %v3355_v30 }
0x15e9   :  { %v3414_v63 = vmul.f32 1.442695, %v3395_v24 }
0x15ea   :  { %v3361_v31 = vpop.xlane.xlu1 %3360  ;;  %v3358_v53 = vpop.xlane.xlu0 %3357 }
0x15eb   :  { %4824 = vpow2.f32 %v3414_v63  ;;  %v3397_v40 = vsub.f32 %v5905_v14, %v3361_v31  ;;  %v3396_v59 = vsub.f32 %v5910_v21, %v3358_v53 }
0x15ed   :  { %v5970_v32 = vpop.eup %4818  ;;  %v3418_v48 = vmul.f32 1.442695, %v3397_v40  ;;  %v3416_v62 = vmul.f32 1.442695, %v3396_v59 }
0x15ee   :  { %v5972_v58 = vpop.eup %4820  ;;  %v3367_v6 = vpop.xlane.xlu1 %3366  ;;  %v3443_v34 = vsel %vm54_vm1, %v5970_v32, 0.0 }
0x15ef   :  { %v3364_v44 = vpop.xlane.xlu0 %3363  ;;  %4826 = vpow2.f32 %v3418_v48  ;;  %v3399_v11 = vsub.f32 %v5913_v56, %v3367_v6  ;;  %3444 = vadd.xlane.f32.xlu1 %v3443_v34  ;;  %v3440_v14 = vsel %vm54_vm1, %v5972_v58, 0.0  ;;  %v3496_v34 = vrot.slane %v5950_v2, %v5074_v17 }
0x15f0   :  { %v3398_v60 = vsub.f32 %v5920_v9, %v3364_v44  ;;  %4828 = vpow2.f32 %v3416_v62  ;;  %3441 = vadd.xlane.f32.xlu0 %v3440_v14 }
0x15f1   :  { %v5980_v21 = vpop.eup %4822  ;;  %v3422_v16 = vmul.f32 1.442695, %v3399_v11  ;;  %v3512_v14 = vrot.slane %v3496_v34, %v5074_v17 }
0x15f2   :  { %v3420_v47 = vmul.f32 1.442695, %v3398_v60  ;;  %v3373_v19 = vpop.xlane.xlu1 %3372  ;;  %v3446_v15 = vsel %vm54_vm1, %v5980_v21, 0.0 }
0x15f3   :  { %v3370_v38 = vpop.xlane.xlu0 %3369  ;;  %4830 = vpow2.f32 %v3422_v16  ;;  %v3401_v56 = vsub.f32 %v5923_v51, %v3373_v19 }
0x15f4   :  { %v3400_v9 = vsub.f32 %v5930_v52, %v3370_v38  ;;  %4832 = vpow2.f32 %v3420_v47  ;;  %3447 = vadd.xlane.f32.xlu0 %v3446_v15  ;;  %v3504_v47 = vcombine.high %v3496_v34, %v3496_v34 }
0x15f5   :  { %v5986_v18 = vpop.eup %4824  ;;  %v3426_v50 = vmul.f32 1.442695, %v3401_v56 }
0x15f6   :  { %v3424_v29 = vmul.f32 1.442695, %v3400_v9  ;;  %v3379_v54 = vpop.xlane.xlu1 %3378  ;;  %v3449_v37 = vsel %vm54_vm1, %v5986_v18, 0.0  ;;  %v3541_v9 = vrot.slane %v3512_v14, %v5083_v27 }
0x15f7   :  { %v3376_v0 = vpop.xlane.xlu0 %3375  ;;  %4834 = vpow2.f32 %v3426_v50  ;;  %v3403_v20 = vsub.f32 %v5932_v39, %v3379_v54  ;;  %3450 = vadd.xlane.f32.xlu1 %v3449_v37  ;;  %v3526_v50 = vrot.slane %v3504_v47, %v5074_v17 }
0x15f8   :  { %v3402_v45 = vsub.f32 %v5939_v42, %v3376_v0  ;;  %4836 = vpow2.f32 %v3424_v29  ;;  %v3489_v0 = vcombine.high %v5950_v2, %v5950_v2 }
0x15f9   :  { %v5992_v51 = vpop.eup %4826  ;;  %v3430_v52 = vmul.f32 1.442695, %v3403_v20  ;;  %v3534_v20 = vcombine.high %v3512_v14, %v3512_v14 }
0x15fa   :  { %v3428_v61 = vmul.f32 1.442695, %v3402_v45  ;;  %v5994_v23 = vpop.eup %4828  ;;  %v3385_v26 = vpop.xlane.xlu1 %3384  ;;  %v3455_v5 = vsel %vm54_vm1, %v5992_v51, 0.0 }
0x15fb   :  { %v3382_v49 = vpop.xlane.xlu0 %3381  ;;  %4838 = vpow2.f32 %v3430_v52  ;;  %v3405_v41 = vsub.f32 %v5941_v57, %v3385_v26  ;;  %3456 = vadd.xlane.f32.xlu1 %v3455_v5  ;;  %v3452_v42 = vsel %vm54_vm1, %v5994_v23, 0.0  ;;  %v3579_v52 = vmul.f32 %v5970_v32, %v3541_v9 }
0x15fc   :  { %v3404_v39 = vsub.f32 %v5948_v4, %v3382_v49  ;;  %4840 = vpow2.f32 %v3428_v61  ;;  %3453 = vadd.xlane.f32.xlu0 %v3452_v42  ;;  %v3578_v26 = vmul.f32 %v5972_v58, %v3541_v9  ;;  %v3545_v49 = vrot.slane %v3526_v50, %v5083_v27 }
0x15fd   :  { %v6002_v10 = vpop.eup %4830  ;;  %v3434_v30 = vmul.f32 1.442695, %v3405_v41  ;;  %v3503_v5 = vrot.slane %v3489_v0, %v5074_v17  ;;  %v3597_v41 = vsel %vm54_vm1, %v3579_v52, 0.0  ;;  %v3536_v42 = vcombine.high %v3526_v50, %v3526_v50 }
0x15fe   :  { %v3432_v24 = vmul.f32 1.442695, %v3404_v39  ;;  %v6004_v63 = vpop.eup %4832  ;;  %v3391_v31 = vpop.xlane.xlu1 %3390  ;;  %v3461_v40 = vsel %vm54_vm1, %v6002_v10, 0.0  ;;  %v3581_v2 = vmul.f32 %v5986_v18, %v3545_v49  ;;  %v3549_v39 = vrot.slane %v3534_v20, %v5083_v27 }
0x15ff   :  { %v3388_v53 = vpop.xlane.xlu0 %3387  ;;  %4842 = vpow2.f32 %v3434_v30  ;;  %v3407_v57 = vsub.f32 %v5952_v8, %v3391_v31  ;;  %3462 = vadd.xlane.f32.xlu1 %v3461_v40  ;;  %v3458_v59 = vsel %vm54_vm1, %v6004_v63, 0.0  ;;  %v3594_v32 = vsel %vm54_vm1, %v3578_v26, 0.0 }
0x1600   :  { %v3406_v4 = vsub.f32 %v5958_v36, %v3388_v53  ;;  %4844 = vpow2.f32 %v3432_v24  ;;  %3459 = vadd.xlane.f32.xlu0 %v3458_v59  ;;  %v3580_v30 = vmul.f32 %v5980_v21, %v3545_v49  ;;  %v3505_v24 = vcombine.high %v3503_v5, %v3503_v5 }
0x1601   :  { %v6012_v48 = vpop.eup %4834  ;;  %v3438_v62 = vmul.f32 1.442695, %v3407_v57  ;;  %v3519_v58 = vrot.slane %v3503_v5, %v5074_v17  ;;  %v3603_v31 = vsel %vm54_vm1, %v3581_v2, 0.0  ;;  %v3583_v53 = vmul.f32 %v5992_v51, %v3549_v39 }
0x1602   :  { %v3436_v6 = vmul.f32 1.442695, %v3406_v4  ;;  %v6014_v44 = vpop.eup %4836  ;;  %v3467_v8 = vsel %vm54_vm1, %v6012_v48, 0.0  ;;  %v3553_v40 = vrot.slane %v3536_v42, %v5083_v27  ;;  %v3600_v18 = vsel %vm54_vm1, %v3580_v30, 0.0 }
0x1603   :  { %4846 = vpow2.f32 %v3438_v62  ;;  %3468 = vadd.xlane.f32.xlu1 %v3467_v8  ;;  %v3464_v36 = vsel %vm54_vm1, %v6014_v44, 0.0  ;;  %v3582_v57 = vmul.f32 %v5994_v23, %v3549_v39  ;;  %v3609_v4 = vsel %vm54_vm1, %v3583_v53, 0.0 }
0x1604   :  { %4848 = vpow2.f32 %v3436_v6  ;;  %3465 = vadd.xlane.f32.xlu0 %v3464_v36  ;;  %v3585_v21 = vmul.f32 %v6002_v10, %v3553_v40  ;;  %v3557_v59 = vrot.slane %v3519_v58, %v5083_v27  ;;  %v3533_v62 = vrot.slane %v3505_v24, %v5074_v17 }
0x1605   :  { %v4839_v11 = vpop.eup %4838  ;;  %v3606_v6 = vsel %vm54_vm1, %v3582_v57, 0.0  ;;  %v3584_v51 = vmul.f32 %v6004_v63, %v3553_v40  ;;  %v3535_v36 = vcombine.high %v3519_v58, %v3519_v58 }
0x1606   :  { %v6022_v60 = vpop.eup %4840  ;;  %v3473_v16 = vsel %vm54_vm1, %v4839_v11, 0.0  ;;  %v3615_v34 = vsel %vm54_vm1, %v3585_v21, 0.0  ;;  %v3587_v8 = vmul.f32 %v6012_v48, %v3557_v59  ;;  %v3561_v23 = vrot.slane %v3533_v62, %v5083_v27 }
0x1607   :  { %3474 = vadd.xlane.f32.xlu1 %v3473_v16  ;;  %v3470_v19 = vsel %vm54_vm1, %v6022_v60, 0.0  ;;  %v3612_v10 = vsel %vm54_vm1, %v3584_v51, 0.0  ;;  %v3586_v14 = vmul.f32 %v6014_v44, %v3557_v59  ;;  %v3565_v47 = vrot.slane %v3535_v36, %v5083_v27 }
0x1608   :  { %3471 = vadd.xlane.f32.xlu0 %v3470_v19  ;;  %v3621_v17 = vsel %vm54_vm1, %v3587_v8, 0.0  ;;  %v3589_v16 = vmul.f32 %v4839_v11, %v3561_v23  ;;  %v3537_v63 = vcombine.high %v3533_v62, %v3533_v62  ;;  %v3588_v48 = vmul.f32 %v6022_v60, %v3561_v23 }
0x1609   :  { %v4843_v38 = vpop.eup %4842  ;;  %v3618_v19 = vsel %vm54_vm1, %v3586_v14, 0.0 }
0x160a   :  { %v6028_v15 = vpop.eup %4844  ;;  %v3479_v56 = vsel %vm54_vm1, %v4843_v38, 0.0  ;;  %v3591_v9 = vmul.f32 %v4843_v38, %v3565_v47  ;;  %v3569_v50 = vrot.slane %v3537_v63, %v5083_v27  ;;  %v3624_v44 = vsel %vm54_vm1, %v3588_v48, 0.0  ;;  %v2052_v27 = vld [vmem:[#allocation5 + $0x140] sm:$0xff] }
0x160b   :  { %3480 = vadd.xlane.f32.xlu1 %v3479_v56  ;;  %v3476_v29 = vsel %vm54_vm1, %v6028_v15, 0.0  ;;  %v3627_v56 = vsel %vm54_vm1, %v3589_v16, 0.0 }
0x160c   :  { %3477 = vadd.xlane.f32.xlu0 %v3476_v29  ;;  %v3590_v29 = vmul.f32 %v6028_v15, %v3565_v47  ;;  %v3633_v11 = vsel %vm54_vm1, %v3591_v9, 0.0 }
0x160d   :  { %v4847_v54 = vpop.eup %4846 }
0x160e   :  { %v4849_v37 = vpop.eup %4848  ;;  %v3485_v45 = vsel %vm54_vm1, %v4847_v54, 0.0  ;;  %v3593_v0 = vmul.f32 %v4847_v54, %v3569_v50  ;;  %v3630_v20 = vsel %vm54_vm1, %v3590_v29, 0.0 }
0x160f   :  { %3486 = vadd.xlane.f32.xlu1 %v3485_v45  ;;  %v3482_v61 = vsel %vm54_vm1, %v4849_v37, 0.0  ;;  %v3592_v45 = vmul.f32 %v4849_v37, %v3569_v50 }
0x1610   :  { %3483 = vadd.xlane.f32.xlu0 %v3482_v61  ;;  %v3639_v60 = vsel %vm54_vm1, %v3593_v0, 0.0 }
0x1611   :  { %v3636_v38 = vsel %vm54_vm1, %v3592_v45, 0.0 }
0x1613   :  { %3598 = vadd.xlane.f32.xlu1 %v3597_v41 }
0x1614   :  { %3595 = vadd.xlane.f32.xlu0 %v3594_v32 }
0x1617   :  { %3604 = vadd.xlane.f32.xlu1 %v3603_v31 }
0x1618   :  { %3601 = vadd.xlane.f32.xlu0 %v3600_v18 }
0x161b   :  { %3610 = vadd.xlane.f32.xlu1 %v3609_v4 }
0x161c   :  { %3607 = vadd.xlane.f32.xlu0 %v3606_v6 }
0x161f   :  { %3616 = vadd.xlane.f32.xlu1 %v3615_v34 }
0x1620   :  { %3613 = vadd.xlane.f32.xlu0 %v3612_v10 }
0x1623   :  { %3622 = vadd.xlane.f32.xlu1 %v3621_v17 }
0x1624   :  { %3619 = vadd.xlane.f32.xlu0 %v3618_v19 }
0x1627   :  { %3628 = vadd.xlane.f32.xlu1 %v3627_v56 }
0x1628   :  { %3625 = vadd.xlane.f32.xlu0 %v3624_v44 }
0x162b   :  { %3634 = vadd.xlane.f32.xlu1 %v3633_v11 }
0x162c   :  { %3631 = vadd.xlane.f32.xlu0 %v3630_v20 }
0x162f   :  { %3640 = vadd.xlane.f32.xlu1 %v3639_v60 }
0x1630   :  { %3637 = vadd.xlane.f32.xlu0 %v3636_v38 }
0x1646   :  { %3066 = vperm.xlu0 %4635, %v2052_v27  }
0x167c   :  { %v3445_v61 = vpop.xlane.xlu1 %3444 }
0x167d   :  { %v3442_v52 = vpop.xlane.xlu0 %3441  ;;  %4850 = vrcp.f32 %v3445_v61 }
0x167e   :  { %4852 = vrcp.f32 %v3442_v52 }
0x1681   :  { %v3448_v26 = vpop.xlane.xlu0 %3447 }
0x1682   :  { %4854 = vrcp.f32 %v3448_v26 }
0x1684   :  { %v3451_v15 = vpop.xlane.xlu1 %3450 }
0x1685   :  { %4856 = vrcp.f32 %v3451_v15 }
0x1687   :  { %v4851_v21 = vpop.eup %4850 }
0x1688   :  { %v3457_v49 = vpop.xlane.xlu1 %3456  ;;  %v4853_v59 = vpop.eup %4852 }
0x1689   :  { %v3454_v5 = vpop.xlane.xlu0 %3453  ;;  %4858 = vrcp.f32 %v3457_v49 }
0x168a   :  { %4860 = vrcp.f32 %v3454_v5 }
0x168c   :  { %v3463_v54 = vpop.xlane.xlu1 %3462  ;;  %v4855_v62 = vpop.eup %4854 }
0x168d   :  { %v3460_v41 = vpop.xlane.xlu0 %3459  ;;  %4862 = vrcp.f32 %v3463_v54 }
0x168e   :  { %4864 = vrcp.f32 %v3460_v41 }
0x168f   :  { %v4857_v51 = vpop.eup %4856 }
0x1690   :  { %v3469_v2 = vpop.xlane.xlu1 %3468 }
0x1691   :  { %v3466_v39 = vpop.xlane.xlu0 %3465  ;;  %4866 = vrcp.f32 %v3469_v2 }
0x1692   :  { %4868 = vrcp.f32 %v3466_v39 }
0x1693   :  { %v4859_v8 = vpop.eup %4858 }
0x1694   :  { %v3475_v37 = vpop.xlane.xlu1 %3474  ;;  %v4861_v23 = vpop.eup %4860 }
0x1695   :  { %v3472_v42 = vpop.xlane.xlu0 %3471  ;;  %4870 = vrcp.f32 %v3475_v37 }
0x1696   :  { %4872 = vrcp.f32 %v3472_v42 }
0x1697   :  { %v4863_v36 = vpop.eup %4862 }
0x1698   :  { %v3481_v32 = vpop.xlane.xlu1 %3480  ;;  %v4865_v14 = vpop.eup %4864 }
0x1699   :  { %v3478_v30 = vpop.xlane.xlu0 %3477  ;;  %4874 = vrcp.f32 %v3481_v32 }
0x169a   :  { %4876 = vrcp.f32 %v3478_v30 }
0x169b   :  { %v4867_v16 = vpop.eup %4866 }
0x169c   :  { %v3487_v24 = vpop.xlane.xlu1 %3486  ;;  %v4869_v19 = vpop.eup %4868 }
0x169d   :  { %v3484_v58 = vpop.xlane.xlu0 %3483  ;;  %4878 = vrcp.f32 %v3487_v24 }
0x169e   :  { %4880 = vrcp.f32 %v3484_v58 }
0x169f   :  { %v4871_v9 = vpop.eup %4870 }
0x16a0   :  { %v3599_v31 = vpop.xlane.xlu1 %3598  ;;  %v4873_v20 = vpop.eup %4872 }
0x16a1   :  { %v3596_v53 = vpop.xlane.xlu0 %3595  ;;  %v3645_v50 = vmul.f32 %v4851_v21, %v3599_v31 }
0x16a2   :  { %v3643_v44 = vmul.f32 %v4853_v59, %v3596_v53 }
0x16a3   :  { %v4875_v5 = vpop.eup %4874  ;;  %v3697_v54 = vrot.slane %v3645_v50, %v5772_v1 }
0x16a4   :  { %v3605_v40 = vpop.xlane.xlu1 %3604  ;;  %v3693_v41 = vrot.slane %v3643_v44, %v5775_v12  ;;  %v4877_v42 = vpop.eup %4876 }
0x16a5   :  { %v3602_v18 = vpop.xlane.xlu0 %3601  ;;  %v3649_v47 = vmul.f32 %v4857_v51, %v3605_v40 }
0x16a6   :  { %v3647_v63 = vmul.f32 %v4855_v62, %v3602_v18  ;;  %v3698_v59 = vsel %vm2693_vm13, %v3697_v54, %v3693_v41 }
0x16a7   :  { %v3706_v27 = vrot.slane %v3649_v47, %v5772_v1  ;;  %v4879_v21 = vpop.eup %4878 }
0x16a8   :  { %v3611_v57 = vpop.xlane.xlu1 %3610  ;;  %v3702_v52 = vrot.slane %v3647_v63, %v5775_v12 }
0x16a9   :  { %v3608_v4 = vpop.xlane.xlu0 %3607  ;;  %v3653_v48 = vmul.f32 %v4859_v8, %v3611_v57 }
0x16aa   :  { %v3651_v56 = vmul.f32 %v4861_v23, %v3608_v4  ;;  %v3707_v31 = vsel %vm2693_vm13, %v3706_v27, %v3702_v52 }
0x16ab   :  { %v3715_v26 = vrot.slane %v3653_v48, %v5772_v1  ;;  %v3762_v8 = vsel %vm460_vm3, %v3707_v31, %v3698_v59 }
0x16ac   :  { %v3617_v6 = vpop.xlane.xlu1 %3616  ;;  %v3711_v49 = vrot.slane %v3651_v56, %v5775_v12 }
0x16ad   :  { %v3614_v34 = vpop.xlane.xlu0 %3613  ;;  %v3657_v29 = vmul.f32 %v4863_v36, %v3617_v6 }
0x16ae   :  { %v3655_v11 = vmul.f32 %v4865_v14, %v3614_v34  ;;  %v3716_v57 = vsel %vm2693_vm13, %v3715_v26, %v3711_v49  ;;  %v4881_v34 = vpop.eup %4880 }
0x16af   :  { %v3724_v2 = vrot.slane %v3657_v29, %v5772_v1  ;;  %v3763_v14 = vsel %vm462_vm4, %v3716_v57, %v3762_v8 }
0x16b0   :  { %v3623_v10 = vpop.xlane.xlu1 %3622  ;;  %v3720_v39 = vrot.slane %v3655_v11, %v5775_v12 }
0x16b1   :  { %v3620_v17 = vpop.xlane.xlu0 %3619  ;;  %v3661_v45 = vmul.f32 %v4867_v16, %v3623_v10 }
0x16b2   :  { %v3659_v60 = vmul.f32 %v4869_v19, %v3620_v17  ;;  %v3725_v62 = vsel %vm2693_vm13, %v3724_v2, %v3720_v39 }
0x16b3   :  { %v3733_v32 = vrot.slane %v3661_v45, %v5772_v1  ;;  %v3764_v47 = vsel %vm464_vm7, %v3725_v62, %v3763_v14 }
0x16b4   :  { %v3629_v0 = vpop.xlane.xlu1 %3628  ;;  %v3729_v30 = vrot.slane %v3659_v60, %v5775_v12 }
0x16b5   :  { %v3626_v38 = vpop.xlane.xlu0 %3625  ;;  %v3665_v61 = vmul.f32 %v4871_v9, %v3629_v0 }
0x16b6   :  { %v3663_v15 = vmul.f32 %v4873_v20, %v3626_v38  ;;  %v3734_v23 = vsel %vm2693_vm13, %v3733_v32, %v3729_v30 }
0x16b7   :  { %v3742_v53 = vrot.slane %v3665_v61, %v5772_v1  ;;  %v3765_v48 = vsel %vm1711_vm12, %v3734_v23, %v3764_v47 }
0x16b8   :  { %v3635_v37 = vpop.xlane.xlu1 %3634  ;;  %v3738_v40 = vrot.slane %v3663_v15, %v5775_v12 }
0x16b9   :  { %v3669_v24 = vmul.f32 %v4875_v5, %v3635_v37  ;;  %v3632_v58 = vpop.xlane.xlu0 %3631 }
0x16ba   :  { %v3667_v18 = vmul.f32 %v4877_v42, %v3632_v58  ;;  %v3743_v17 = vsel %vm2693_vm13, %v3742_v53, %v3738_v40 }
0x16bb   :  { %v3751_v4 = vrot.slane %v3669_v24, %v5772_v1  ;;  %v3766_v9 = vsel %vm471_vm5, %v3743_v17, %v3765_v48 }
0x16bc   :  { %v3747_v6 = vrot.slane %v3667_v18, %v5775_v12  ;;  %v3641_v51 = vpop.xlane.xlu1 %3640 }
0x16bd   :  { %v3673_v36 = vmul.f32 %v4879_v21, %v3641_v51  ;;  %v3638_v10 = vpop.xlane.xlu0 %3637 }
0x16be   :  { %v3671_v16 = vmul.f32 %v4881_v34, %v3638_v10  ;;  %v3752_v63 = vsel %vm2693_vm13, %v3751_v4, %v3747_v6 }
0x16bf   :  { %v3760_v19 = vrot.slane %v3673_v36, %v5772_v1  ;;  %v3767_v44 = vsel %vm473_vm6, %v3752_v63, %v3766_v9  ;;  %v3042_v1 = vadd.f32 %v5867_v25, %v5824_v55 }
0x16c0   :  { %v3756_v56 = vrot.slane %v3671_v16, %v5775_v12 }
0x16c1   :  { %v3043_v12 = vsel %vm54_vm1, %v3042_v1, 0.0 }
0x16c2   :  { %v3761_v50 = vsel %vm2693_vm13, %v3760_v19, %v3756_v56  ;;  %v3044_v11 = vrot.slane %v3043_v12, 4 }
0x16c3   :  { %v3768_v29 = vsel %vm475_vm8, %v3761_v50, %v3767_v44 }
0x16c4   :  { %4513 = vmatpush3.msra.mxu1 %v3768_v29  ;;  %v3045_v0 = vadd.f32 %v3044_v11, %v3043_v12  ;;  %v4131_v12 = vld [vmem:[#allocation5 + $0x160] sm:$0xff] }
0x16c5   :  { %4515 = vmatmul.mubr.msk.f32.vlgmr.msra.gmra.mrb[18].mxu1 %vm744_vm11, %v5807_v28  ;;  %v3067_v14 = vpop.permute.xlu0 %3066 }
0x16c6   :  { %4519 = vmatprep.mubr.msk.f32.mxu1 %vm744_vm11, %v5814_v43  ;;  %v3046_v20 = vrot.slane %v3045_v0, 2 }
0x16c8   :  { %v3047_v45 = vadd.f32 %v3046_v20, %v3045_v0 }
0x16ca   :  { %v3048_v60 = vrot.slane %v3047_v45, 1 }
0x16cc   :  { %v3049_v38 = vadd.f32 %v3048_v60, %v3047_v45 }
0x16ce   :  { %v3050_v27 = vmul.f32 0.125, %v3049_v38 }
0x16d0   :  { %v3051_v61 = vsub.f32 %v3042_v1, %v3050_v27  ;;  %v4130_v1 = vld [vmem:[#allocation5 + $0x158] sm:$0xff] }
0x16d1   :  { %v4613_v11 = vpack.c.bf16 %v4131_v12, %v4130_v1 }
0x16d2   :  { %v3052_v49 = vmul.f32 %v3051_v61, %v3051_v61 }
0x16d4   :  { %v3053_v25 = vsel %vm54_vm1, %v3052_v49, 0.0 }
0x16d5   :  { %v3054_v41 = vrot.slane %v3053_v25, 4 }
0x16d7   :  { %v3055_v37 = vadd.f32 %v3054_v41, %v3053_v25 }
0x16d9   :  { %v3056_v30 = vrot.slane %v3055_v37, 2 }
0x16db   :  { %v3057_v31 = vadd.f32 %v3056_v30, %v3055_v37  ;;  %v4132_v30 = vld [vmem:[#allocation5 + $0x168] sm:$0xff] }
0x16dd   :  { %v3058_v18 = vrot.slane %v3057_v31, 1 }
0x16df   :  { %v3059_v21 = vadd.f32 %v3058_v18, %v3057_v31 }
0x16e1   :  { %v3060_v6 = vmul.f32 0.125, %v3059_v21 }
0x16e3   :  { %v3061_v34 = vadd.f32 1e-05, %v3060_v6 }
0x1798   :  { %v3836_v52 = vpop.f32.mrb[18].mxu1 }
0x1799   :  { %v3840_v15 = vadd.f32 %v3836_v52, %v5848_v22  ;;  %v4516_v28 = vpop.f32.mrb[19].mxu1 }
0x179b   :  { %v3841_v26 = vsel %vm54_vm1, %v3840_v15, 0.0 }
0x179c   :  { %v3842_v43 = vrot.slane %v3841_v26, 4 }
0x179e   :  { %v3843_v5 = vadd.f32 %v3842_v43, %v3841_v26 }
0x17a0   :  { %v3844_v55 = vrot.slane %v3843_v5, 2 }
0x17a2   :  { %v3845_v54 = vadd.f32 %v3844_v55, %v3843_v5 }
0x17a4   :  { %v3846_v2 = vrot.slane %v3845_v54, 1 }
0x17a6   :  { %v3847_v39 = vadd.f32 %v3846_v2, %v3845_v54 }
0x17a8   :  { %v3848_v42 = vmul.f32 0.125, %v3847_v39 }
0x17aa   :  { %v3849_v32 = vsub.f32 %v3840_v15, %v3848_v42 }
0x17ac   :  { %v3850_v24 = vmul.f32 %v3849_v32, %v3849_v32 }
0x17ae   :  { %v3851_v22 = vsel %vm54_vm1, %v3850_v24, 0.0  ;;  %v4133_v24 = vld [vmem:[#allocation5 + $0x170] sm:$0xff] }
0x17af   :  { %v3852_v58 = vrot.slane %v3851_v22, 4 }
0x17b1   :  { %v3853_v53 = vadd.f32 %v3852_v58, %v3851_v22  ;;  %v4617_v22 = vpack.c.bf16 %v4133_v24, %v4132_v30 }
0x17b3   :  { %v3854_v40 = vrot.slane %v3853_v53, 2 }
0x17b5   :  { %v3855_v57 = vadd.f32 %v3854_v40, %v3853_v53 }
0x17b7   :  { %v3856_v4 = vrot.slane %v3855_v57, 1 }
0x17b9   :  { %v3857_v59 = vadd.f32 %v3856_v4, %v3855_v57 }
0x17bb   :  { %v3858_v62 = vmul.f32 0.125, %v3857_v59 }
0x17bd   :  { %v3859_v51 = vadd.f32 1e-05, %v3858_v62 }
0x17bf   :  { %4882 = vrsqrt.f32 %v3859_v51 }
0x17c0   :  { %4884 = vrsqrt.f32 %v3061_v34 }
0x17c9   :  { %v4883_v8 = vpop.eup %4882 }
0x17ca   :  { %v3861_v23 = vmul.f32 %v4883_v8, %v3849_v32  ;;  %v4885_v10 = vpop.eup %4884 }
0x17cb   :  { %v3063_v17 = vmul.f32 %v4885_v10, %v3051_v61 }
0x17cc   :  { %v3862_v36 = vmul.f32 %v3861_v23, %v5821_v3 }
0x17cd   :  { %v3069_v16 = vmul.f32 %v3067_v14, %v3063_v17 }
0x17ce   :  { %4517 = vmatprep.subr.mxu1 %v3862_v36 }
0x17cf   :  { %4518 = vmatpush3.msra.mxu1 %v3862_v36 }
0x17d0   :  { %4520 = vmatmul.mubr.msk.f32.vlgmr.msra.gmra.mrb[20].mxu1 %vm744_vm11, %v5826_v33 }
0x17d1   :  { %4522 = vmatprep.mubr.msk.f32.mxu1 %vm744_vm11, %v5829_v35  ;;  %v4045_v35 = vld [vmem:[#allocation5 + $0x148] sm:$0xff] }
0x17d4   :  { %4523 = vmatmul.mubr.msk.f32.gmra.mrb[22].mxu1 %vm744_vm11, %v5837_v46  ;;  %v4046_v46 = vld [vmem:[#allocation5 + $0x150] sm:$0xff] }
0x17d5   :  { %4540 = vmatprep.mubr.msk.f32.mxu1 %vm54_vm1, %v3069_v16  ;;  %v4609_v29 = vpack.c.bf16 %v4046_v46, %v4045_v35 }
0x17d7   :  { %4610 = vmatprep.subr.bf16.mxu1 %v4609_v29 }
0x17d8   :  { %4612 = vmatpush3.bf16.msra.mxu1 %v4609_v29 }
0x18a3   :  { %v4521_v47 = vpop.f32.mrb[20].mxu1 }
0x18a4   :  { %v3949_v63 = vmax.f32 %v4521_v47, 0.0  ;;  %v3929_v3 = vpop.f32.mrb[21].mxu1 }
0x18a5   :  { %v3948_v19 = vmax.f32 %v3929_v3, 0.0 }
0x18a7   :  { %v4604_v48 = vpack.c.bf16 %v3949_v63, %v3948_v19  ;;  %v4524_v56 = vpop.f32.mrb[22].mxu1 }
0x18a8   :  { %v3951_v9 = vmax.f32 %v4524_v56, 0.0  ;;  %v3939_v50 = vpop.f32.mrb[23].mxu1 }
0x18a9   :  { %v3950_v44 = vmax.f32 %v3939_v50, 0.0  ;;  %4605 = vmatpush3.bf16.msra.mxu0 %v4604_v48 }
0x18aa   :  { %4606 = vmatprep.subr.bf16.mxu0 %v6177_v13 }
0x18ab   :  { %v4607_v33 = vpack.c.bf16 %v3951_v9, %v3950_v44 }
0x18ad   :  { %4608 = vmatpush3.bf16.msra.mxu0 %v4607_v33 }
0x18ae   :  { %4614 = vmatprep.subr.bf16.mxu0 %v4613_v11 }
0x18b0   :  { %4534 = vmatmul.mubr.msk.f32.vlgmr.msra.gmra.mrb[24].mxu0 %vm647_vm10, %v5844_v7 }
0x18b1   :  { %4616 = vmatpush3.bf16.msra.mxu0 %v4613_v11 }
0x18b2   :  { %4618 = vmatprep.subr.bf16.mxu0 %v4617_v22 }
0x18b5   :  { %4620 = vmatpush3.bf16.msra.mxu0 %v4617_v22 }
0x1983   :  { %v4018_v0 = vpop.f32.mrb[24].mxu0 }
0x1984   :  { %v4022_v20 = vadd.f32 %v4018_v0, %v3862_v36  ;;  %v4535_v45 = vpop.f32.mrb[25].mxu0 }
0x1986   :  { %v4023_v13 = vsel %vm54_vm1, %v4022_v20, 0.0 }
0x1987   :  { %v4024_v60 = vrot.slane %v4023_v13, 4 }
0x1989   :  { %v4025_v38 = vadd.f32 %v4024_v60, %v4023_v13 }
0x198b   :  { %v4026_v27 = vrot.slane %v4025_v38, 2 }
0x198d   :  { %v4027_v52 = vadd.f32 %v4026_v27, %v4025_v38 }
0x198f   :  { %v4028_v7 = vrot.slane %v4027_v52, 1 }
0x1991   :  { %v4029_v61 = vadd.f32 %v4028_v7, %v4027_v52 }
0x1993   :  { %v4030_v15 = vmul.f32 0.125, %v4029_v61 }
0x1995   :  { %v4031_v28 = vsub.f32 %v4022_v20, %v4030_v15 }
0x1997   :  { %v4032_v26 = vmul.f32 %v4031_v28, %v4031_v28 }
0x1999   :  { %v4033_v43 = vsel %vm54_vm1, %v4032_v26, 0.0 }
0x199a   :  { %v4034_v49 = vrot.slane %v4033_v43, 4 }
0x199c   :  { %v4035_v5 = vadd.f32 %v4034_v49, %v4033_v43 }
0x199e   :  { %v4036_v55 = vrot.slane %v4035_v5, 2 }
0x19a0   :  { %v4037_v25 = vadd.f32 %v4036_v55, %v4035_v5 }
0x19a2   :  { %v4038_v54 = vrot.slane %v4037_v25, 1 }
0x19a4   :  { %v4039_v41 = vadd.f32 %v4038_v54, %v4037_v25 }
0x19a6   :  { %v4040_v2 = vmul.f32 0.125, %v4039_v41 }
0x19a8   :  { %v4041_v39 = vadd.f32 1e-05, %v4040_v2 }
0x19aa   :  { %4886 = vrsqrt.f32 %v4041_v39 }
0x19b4   :  { %v4887_v37 = vpop.eup %4886 }
0x19b5   :  { %v4043_v42 = vmul.f32 %v4887_v37, %v4031_v28 }
0x19b7   :  { %v4044_v32 = vmul.f32 %v4043_v42, %v3067_v14 }
0x19b9   :  { %4541 = vmatmul.mubr.msk.f32.vlgmr.msra.gmra.mrb[24].mxu1 %vm54_vm1, %v4044_v32 }
0x1a8c   :  { %v4542_v58 = vpop.f32.mrb[24].mxu1 }
0x1a8d   :  { %v4119_v31 = vpop.f32.mrb[25].mxu1  ;;  %v4129_v40 = vmax.f32 %v4542_v58, 0.0 }
0x1a8e   :  { %v4128_v53 = vmax.f32 %v4119_v31, 0.0 }
0x1a90   :  { %4551 = vmatprep.mubr.msk.f32.mxu0 %vm647_vm10, %v4128_v53 }
0x1a91   :  { %4552 = vmatmul.mubr.msk.f32.vlgmr.msra.gmra.mrb[26].mxu0 %vm647_vm10, %v4129_v40 }
0x1a92   :  { %4944 = shalt.err (!%p4941_p6)
}
0x1a93   :  { %s4945_s16 = scalar_lea.hbm %s6168_s3, 256 }
0x1a94   :  { %p4946_p7 = scmp.ne.s32.totalorder %s6168_s3, %s4945_s16  ;;  %p4949_p8 = scmp.lt.u32.totalorder %s4945_s16, %s6168_s3 }
0x1a96   :  { %p4951_p9 = pnand %p4949_p8, %p4946_p7 }
0x1a98   :  { %4954 = shalt.err (!%p4951_p9)
}
0x1a99   :  { %4243 = dma.vmem_to_hbm [thread:$0]  %s4238_s12, 256, %s6168_s3, [#allocation9], %s4987_s0, %s4987_s0, %s4988_s7   ;;  %vm4215_vm14 = vcmask 195584  }
0x1a9a   :  { %s4997_s23 = smov [#allocation7]  }
0x1a9b   :  { %s4225_s24 = sshll.u32 %s4997_s23, 4  ;;  %s4226_s24 = int_to_ptr.vmem [resolvable:$true] %s4225_s24 }
0x1a9c   :  { %s4955_s25 = scalar_lea.vmem %s4226_s24, 256  ;;  %p4960_p11 = scmp.lt.s32.totalorder %s4226_s24, %s4226_s24 }
0x1a9d   :  { %p4956_p10 = scmp.ne.s32.totalorder %s4226_s24, %s4955_s25  ;;  %p4961_p12 = scmp.lt.s32.totalorder %s4955_s25, %s4955_s25 }
0x1a9f   :  { %p4962_p13 = por %p4961_p12, %p4960_p11 }
0x1aa1   :  { %p4963_p0 = pnand %p4962_p13, %p4956_p10 }
0x1b64   :  { %v4553_v18 = vpop.f32.mrb[26].mxu0 }
0x1b65   :  { %4217 = vst.msk [vmem:[#allocation7 + $0x8] sm:$0xff] %vm4215_vm14, %v4553_v18  ;;  %v4206_v57 = vpop.f32.mrb[27].mxu0 }
0x1b66   :  { %4216 = vst.msk [vmem:[#allocation7] sm:$0xff] %vm4215_vm14, %v4206_v57 }
0x1b67   :  { %4966 = shalt.err (!%p4963_p0)
}
0x1b68   :  { %s4967_s28 = scalar_lea.hbm %s6167_s2, 256 }
0x1b69   :  { %p4968_p1 = scmp.ne.s32.totalorder %s6167_s2, %s4967_s28  ;;  %p4971_p2 = scmp.lt.u32.totalorder %s4967_s28, %s6167_s2 }
0x1b6b   :  { %p4973_p3 = pnand %p4971_p2, %p4968_p1 }
0x1b6d   :  { %4976 = shalt.err (!%p4973_p3)
}
0x1b6e   :  { %4231 = dma.vmem_to_hbm [thread:$0]  %s4226_s24, 256, %s6167_s2, [#allocation4], %s4987_s0, %s4987_s0, %s4988_s7  }
0x1b6f   :  { %4981 = dma.done.wait [#allocation4], 256  }
0x1b70   :  { %4982 = vsyncadd [#allocation4], 4294967040 }
0x1b71   :  { %4983 = dma.done.wait [#allocation9], 256  }
0x1b72   :  { %4984 = vsyncadd [#allocation9], 4294967040 }
0x1b73   :  { %4250 = vsyncpa [#allocation3], 1 }
0x1b74   :  { %4251 = vsyncpa [#allocation6], 1 }
0x1b75   :  { %4252 = vsyncpa [#allocation4], 1 }
0x1b76   :  { %4253 = vsyncpa [#allocation9], 1 }

</bundles_post_ra>
